<compile_context>
chip_gen: v6e
topology: v6e:2x2x1
jax: 0.10.0
libtpu: 0.0.40
codegen_flags: <defaults>
</compile_context>

<pallas_src>
import functools
import math

import jax
import jax.numpy as jnp
from jax import lax
from jax.experimental import pallas as pl
from jax.experimental.pallas import tpu as pltpu

# ---------------- config (small shapes consistent with the module) ----------------
B = 2
S = 16
D_MODEL = 64
N_HEADS = 8
D_K = D_MODEL // N_HEADS
D_FF = 128
N_LAYERS = 2
DIM_G = 64          # trigonometric geometric embedding dim
WAVE_LEN = 1000.0
LN_EPS = 1e-6


# ------------------------------- Pallas kernels -------------------------------

def _wg_kernel(emb_ref, w_ref, b_ref, o_ref):
    """Geometric attention bias for all layers/heads at once:
       o = log(max(relu(emb @ Wg_all + bg_all), 1e-6)),   emb:(B*S*S, dim_g),
       Wg_all:(dim_g, L*H)  ->  o:(B*S*S, L*H)."""
    y = jnp.dot(emb_ref[...], w_ref[...], preferred_element_type=jnp.float32)
    y = jnp.maximum(y + b_ref[...], 0.0)
    o_ref[...] = jnp.log(jnp.maximum(y, 1e-6)).astype(o_ref.dtype)


def wg_log_bias(emb_flat, wg_all, bg_all):
    M = emb_flat.shape[0]
    N = wg_all.shape[1]
    return pl.pallas_call(
        _wg_kernel,
        out_shape=jax.ShapeDtypeStruct((M, N), emb_flat.dtype),
    )(emb_flat, wg_all, bg_all)


def _encoder_kernel(x_ref, wg_ref, m_ref,
                    wqkv_ref, bqkv_ref, wo_ref, bo_ref,
                    w1_ref, b1_ref, w2_ref, b2_ref,
                    ln1g_ref, ln1b_ref, ln2g_ref, ln2b_ref,
                    lnfg_ref, lnfb_ref,
                    o_ref, attn_scr,
                    *, n_layers, n_heads, d_k, d_model, scale, eps):
    """Fused BoxEncoder stack for ONE batch element (grid=(B,)).

    x_ref:(S,D)  wg_ref:(L,1,H,S,S) precomputed log(clamp(relu(emb@Wg),1e-6))
    m_ref:(1,1,S) key mask  |  weights stacked along leading layer axis.
    """
    x = x_ref[...].astype(jnp.float32)          # (S, D)
    m = m_ref[0]                                # (1, S)

    def ln(v, g, b):
        # annotated-transformer LayerNorm: a2*(x-mean)/(std+eps)+b2, unbiased std
        mean = jnp.mean(v, axis=-1, keepdims=True)
        c = v - mean
        var = jnp.sum(c * c, axis=-1, keepdims=True) * (1.0 / (v.shape[-1] - 1))
        inv = pl.reciprocal(jnp.sqrt(var) + eps, approx=True)
        return g * (c * inv) + b

    for l in range(n_layers):
        # ---- sublayer 0: x + W_o( BoxAttention(norm(x)) ) ----
        h = ln(x, ln1g_ref[l], ln1b_ref[l])
        qkv = jnp.dot(h, wqkv_ref[l],
                      preferred_element_type=jnp.float32) + bqkv_ref[l]   # (S, 3D)
        for hd in range(n_heads):
            q = qkv[:, hd * d_k:(hd + 1) * d_k]
            k = qkv[:, d_model + hd * d_k: d_model + (hd + 1) * d_k]
            v = qkv[:, 2 * d_model + hd * d_k: 2 * d_model + (hd + 1) * d_k]
            s = lax.dot_general(q, k, (((1,), (1,)), ((), ())),
                                preferred_element_type=jnp.float32) * scale   # (S,S)
            w = wg_ref[l, 0, hd] + s                      # log-geometry bias + scores
            w = jnp.where(m == 0.0, jnp.float32(-1e9), w)
            w = w - jnp.max(w, axis=-1, keepdims=True)
            p = jnp.exp(w)
            p = p * pl.reciprocal(jnp.sum(p, axis=-1, keepdims=True), approx=True)
            attn_scr[:, hd * d_k:(hd + 1) * d_k] = jnp.dot(
                p, v, preferred_element_type=jnp.float32)
        attn = attn_scr[...]                                              # (S, D)
        x = x + jnp.dot(attn, wo_ref[l],
                        preferred_element_type=jnp.float32) + bo_ref[l]

        # ---- sublayer 1: x + FFN(norm(x)) ----
        h2 = ln(x, ln2g_ref[l], ln2b_ref[l])
        ff = jnp.maximum(
            jnp.dot(h2, w1_ref[l], preferred_element_type=jnp.float32) + b1_ref[l],
            0.0)
        x = x + jnp.dot(ff, w2_ref[l],
                        preferred_element_type=jnp.float32) + b2_ref[l]

    o_ref[...] = ln(x, lnfg_ref[...], lnfb_ref[...]).astype(o_ref.dtype)


def fused_box_encoder(x2, wg_log, maskf, p):
    """x2:(B*S,D), wg_log:(L,B,H,S,S), maskf:(B,1,S). One pallas_call, grid over batch."""
    Bx = maskf.shape[0]
    Sx = maskf.shape[2]
    D = x2.shape[1]
    L = wg_log.shape[0]
    H = wg_log.shape[2]

    kernel = functools.partial(
        _encoder_kernel, n_layers=L, n_heads=H, d_k=D // H, d_model=D,
        scale=1.0 / math.sqrt(D // H), eps=LN_EPS)

    const = lambda b: (0, 0, 0)     # whole stacked-weight array, same block every step
    return pl.pallas_call(
        kernel,
        out_shape=jax.ShapeDtypeStruct((Bx * Sx, D), x2.dtype),
        grid=(Bx,),
        in_specs=[
            pl.BlockSpec((Sx, D), lambda b: (b, 0)),                       # x rows of batch b
            pl.BlockSpec((L, 1, H, Sx, Sx), lambda b: (0, b, 0, 0, 0)),    # wg_log[:, b]
            pl.BlockSpec((1, 1, Sx), lambda b: (b, 0, 0)),                 # mask[b]
            pl.BlockSpec((L, D, 3 * D), const),                            # Wqkv
            pl.BlockSpec((L, 1, 3 * D), const),                            # bqkv
            pl.BlockSpec((L, D, D), const),                                # Wo
            pl.BlockSpec((L, 1, D), const),                                # bo
            pl.BlockSpec((L, D, D_FF), const),                             # W1
            pl.BlockSpec((L, 1, D_FF), const),                             # b1
            pl.BlockSpec((L, D_FF, D), const),                             # W2
            pl.BlockSpec((L, 1, D), const),                                # b2
            pl.BlockSpec((L, 1, D), const),                                # ln1_g
            pl.BlockSpec((L, 1, D), const),                                # ln1_b
            pl.BlockSpec((L, 1, D), const),                                # ln2_g
            pl.BlockSpec((L, 1, D), const),                                # ln2_b
            pl.BlockSpec((1, D), lambda b: (0, 0)),                        # lnf_g
            pl.BlockSpec((1, D), lambda b: (0, 0)),                        # lnf_b
        ],
        out_specs=pl.BlockSpec((Sx, D), lambda b: (b, 0)),
        scratch_shapes=[pltpu.VMEM((Sx, D), jnp.float32)],
        compiler_params=pltpu.CompilerParams(dimension_semantics=("parallel",)),
    )(x2, wg_log, maskf,
      p["Wqkv"], p["bqkv"], p["Wo"], p["bo"],
      p["W1"], p["b1"], p["W2"], p["b2"],
      p["ln1_g"], p["ln1_b"], p["ln2_g"], p["ln2_b"],
      p["lnf_g"], p["lnf_b"])


# ------------------------------ plain-JAX glue ------------------------------

def box_relational_embedding(boxes, dim_g=DIM_G, wave_len=WAVE_LEN):
    """BoxRelationalEmbedding: pairwise log-ratio geometry + sinusoid features (glue)."""
    Bb, Sb, _ = boxes.shape
    x_min, y_min, x_max, y_max = jnp.split(boxes, 4, axis=-1)          # each (B,S,1)
    cx = (x_min + x_max) * 0.5
    cy = (y_min + y_max) * 0.5
    w = (x_max - x_min) + 1.0
    h = (y_max - y_min) + 1.0
    delta_x = jnp.log(jnp.maximum(jnp.abs((cx - cx.reshape(Bb, 1, Sb)) / w), 1e-3))
    delta_y = jnp.log(jnp.maximum(jnp.abs((cy - cy.reshape(Bb, 1, Sb)) / h), 1e-3))
    delta_w = jnp.log(w / w.reshape(Bb, 1, Sb))
    delta_h = jnp.log(h / h.reshape(Bb, 1, Sb))
    position_mat = jnp.stack([delta_x, delta_y, delta_w, delta_h], axis=-1)   # (B,S,S,4)
    feat_range = jnp.arange(dim_g // 8, dtype=jnp.float32)
    dim_mat = 1.0 / (wave_len ** (feat_range / (dim_g / 8.0)))                # (8,)
    mul_mat = (position_mat[..., None] * 100.0) * dim_mat                     # (B,S,S,4,8)
    mul_mat = mul_mat.reshape(Bb, Sb, Sb, -1)                                 # (B,S,S,32)
    return jnp.concatenate([jnp.sin(mul_mat), jnp.cos(mul_mat)], axis=-1)     # (B,S,S,64)


# ------------------------------ parameters ------------------------------

def _linear_params(key, fan_in, fan_out):
    kw, kb = jax.random.split(key)
    bound = 1.0 / math.sqrt(fan_in)
    w = jax.random.uniform(kw, (fan_in, fan_out), jnp.float32, -bound, bound)
    b = jax.random.uniform(kb, (1, fan_out), jnp.float32, -bound, bound)
    return w, b


def init_params(key):
    Wqkv, bqkv, Wo, bo, W1, b1, W2, b2 = [], [], [], [], [], [], [], []
    Wg, bg = [], []
    ones = jnp.ones((1, D_MODEL), jnp.float32)
    zeros = jnp.zeros((1, D_MODEL), jnp.float32)
    for _ in range(N_LAYERS):
        keys = jax.random.split(key, 8)
        key = keys[0]
        wq, bq_ = _linear_params(keys[1], D_MODEL, D_MODEL)
        wk, bk_ = _linear_params(keys[2], D_MODEL, D_MODEL)
        wv, bv_ = _linear_params(keys[3], D_MODEL, D_MODEL)
        wo, bo_ = _linear_params(keys[4], D_MODEL, D_MODEL)
        wg, bg_ = _linear_params(keys[5], DIM_G, N_HEADS)   # h x Linear(dim_g,1) stacked
        w1, b1_ = _linear_params(keys[6], D_MODEL, D_FF)
        w2, b2_ = _linear_params(keys[7], D_FF, D_MODEL)
        Wqkv.append(jnp.concatenate([wq, wk, wv], axis=1))   # (D, 3D) fused QKV
        bqkv.append(jnp.concatenate([bq_, bk_, bv_], axis=1))
        Wo.append(wo); bo.append(bo_)
        W1.append(w1); b1.append(b1_); W2.append(w2); b2.append(b2_)
        Wg.append(wg); bg.append(bg_)
    return dict(
        Wqkv=jnp.stack(Wqkv), bqkv=jnp.stack(bqkv),
        Wo=jnp.stack(Wo), bo=jnp.stack(bo),
        W1=jnp.stack(W1), b1=jnp.stack(b1),
        W2=jnp.stack(W2), b2=jnp.stack(b2),
        Wg_all=jnp.concatenate(Wg, axis=1),     # (dim_g, L*H), layer-major columns
        bg_all=jnp.concatenate(bg, axis=1),     # (1, L*H)
        ln1_g=jnp.stack([ones] * N_LAYERS), ln1_b=jnp.stack([zeros] * N_LAYERS),
        ln2_g=jnp.stack([ones] * N_LAYERS), ln2_b=jnp.stack([zeros] * N_LAYERS),
        lnf_g=ones, lnf_b=zeros,
    )


# ------------------------------ forward pass ------------------------------

def box_encoder_forward(params, x, box, mask):
    """BoxEncoder.forward: N x (pre-norm box self-attn + FFN, residuals) then LayerNorm."""
    Bx, Sx, D = x.shape
    maskf = mask.astype(jnp.float32)                              # (B,1,S)

    # pairwise geometry features (glue) -> per-layer/per-head log attention bias (Pallas)
    rel_emb = box_relational_embedding(box)                       # (B,S,S,dim_g)
    emb_flat = rel_emb.reshape(Bx * Sx * Sx, DIM_G)
    wg_flat = wg_log_bias(emb_flat, params["Wg_all"], params["bg_all"])   # (B*S*S, L*H)
    wg_log = jnp.transpose(
        wg_flat.reshape(Bx, Sx, Sx, N_LAYERS, N_HEADS), (3, 0, 4, 1, 2))  # (L,B,H,S,S)

    # TODO(synk): dropout layers are eval-mode identity and therefore omitted.
    x2 = x.reshape(Bx * Sx, D)
    out = fused_box_encoder(x2, wg_log, maskf, params)            # whole stack, 1 launch
    return out.reshape(Bx, Sx, D)


if __name__ == "__main__":
    key = jax.random.PRNGKey(0)
    kx, kb, kp = jax.random.split(key, 3)

    x = jax.random.normal(kx, (B, S, D_MODEL), dtype=jnp.float32)

    raw = jax.random.uniform(kb, (B, S, 4), dtype=jnp.float32)
    x_min = jnp.minimum(raw[..., 0], raw[..., 2])
    x_max = jnp.maximum(raw[..., 0], raw[..., 2])
    y_min = jnp.minimum(raw[..., 1], raw[..., 3])
    y_max = jnp.maximum(raw[..., 1], raw[..., 3])
    box = jnp.stack([x_min, y_min, x_max, y_max], axis=-1)        # (B,S,4)

    lengths = jnp.array([S, S - 5], dtype=jnp.int32)
    mask = (jnp.arange(S)[None, :] < lengths[:, None]).astype(jnp.float32)[:, None, :]  # (B,1,S)

    params = init_params(kp)

    fwd = jax.jit(box_encoder_forward)
    out = fwd(params, x, box, mask)
    out = jax.block_until_ready(out)

    assert out.shape == (B, S, D_MODEL)
    assert bool(jnp.all(jnp.isfinite(out)))
    print("KERNEL_OK")
</pallas_src>

<mosaic_0001>
module attributes {stable_mosaic.version = 11 : i64} {
  func.func @_wg_kernel(%arg0: memref<512x64xf32, #tpu.memory_space<vmem>>, %arg1: memref<64x16xf32, #tpu.memory_space<vmem>>, %arg2: memref<1x16xf32, #tpu.memory_space<vmem>>, %arg3: memref<512x16xf32, #tpu.memory_space<vmem>>) attributes {dimension_semantics = [], scalar_prefetch = 0 : i64, scratch_operands = 0 : i64, tpu.core_type = #tpu.core_type<tc>} {
    %c0 = arith.constant 0 : index
    %c0_0 = arith.constant 0 : index
    %0 = vector.load %arg0[%c0, %c0_0] : memref<512x64xf32, #tpu.memory_space<vmem>>, vector<512x64xf32>
    %c0_1 = arith.constant 0 : index
    %c0_2 = arith.constant 0 : index
    %1 = vector.load %arg1[%c0_1, %c0_2] : memref<64x16xf32, #tpu.memory_space<vmem>>, vector<64x16xf32>
    %cst = arith.constant dense<0.000000e+00> : vector<512x16xf32>
    %2 = tpu.matmul %0, %1, %cst {dimension_numbers = #tpu.dot_dimension_numbers<[1], [0], [0], [1], [0, 0, 1, 1], [], []>} : vector<512x64xf32>, vector<64x16xf32>, vector<512x16xf32> -> vector<512x16xf32>
    %c0_3 = arith.constant 0 : index
    %c0_4 = arith.constant 0 : index
    %3 = vector.load %arg2[%c0_3, %c0_4] : memref<1x16xf32, #tpu.memory_space<vmem>>, vector<1x16xf32>
    %4 = vector.broadcast %3 : vector<1x16xf32> to vector<512x16xf32>
    %5 = arith.addf %2, %4 : vector<512x16xf32>
    %cst_5 = arith.constant 0.000000e+00 : f32
    %6 = vector.broadcast %cst_5 : f32 to vector<512x16xf32>
    %7 = arith.maximumf %5, %6 : vector<512x16xf32>
    %cst_6 = arith.constant 9.99999997E-7 : f32
    %8 = vector.broadcast %cst_6 : f32 to vector<512x16xf32>
    %9 = arith.maximumf %7, %8 : vector<512x16xf32>
    %10 = math.log %9 : vector<512x16xf32>
    %c0_7 = arith.constant 0 : index
    %c0_8 = arith.constant 0 : index
    %11 = vector.load %arg3[%c0_7, %c0_8] : memref<512x16xf32, #tpu.memory_space<vmem>>, vector<512x16xf32>
    tpu.vector_store %arg3[%c0_7, %c0_8], %10 {strides = array<i32>} : memref<512x16xf32, #tpu.memory_space<vmem>>, vector<512x16xf32>,
    return
  }
}

module attributes {stable_mosaic.version = 11 : i64} {
  func.func @_encoder_kernel(%arg0: i32, %arg1: memref<16x64xf32, #tpu.memory_space<vmem>>, %arg2: memref<2x1x8x16x16xf32, #tpu.memory_space<vmem>>, %arg3: memref<1x1x16xf32, #tpu.memory_space<vmem>>, %arg4: memref<2x64x192xf32, #tpu.memory_space<vmem>>, %arg5: memref<2x1x192xf32, #tpu.memory_space<vmem>>, %arg6: memref<2x64x64xf32, #tpu.memory_space<vmem>>, %arg7: memref<2x1x64xf32, #tpu.memory_space<vmem>>, %arg8: memref<2x64x128xf32, #tpu.memory_space<vmem>>, %arg9: memref<2x1x128xf32, #tpu.memory_space<vmem>>, %arg10: memref<2x128x64xf32, #tpu.memory_space<vmem>>, %arg11: memref<2x1x64xf32, #tpu.memory_space<vmem>>, %arg12: memref<2x1x64xf32, #tpu.memory_space<vmem>>, %arg13: memref<2x1x64xf32, #tpu.memory_space<vmem>>, %arg14: memref<2x1x64xf32, #tpu.memory_space<vmem>>, %arg15: memref<2x1x64xf32, #tpu.memory_space<vmem>>, %arg16: memref<1x64xf32, #tpu.memory_space<vmem>>, %arg17: memref<1x64xf32, #tpu.memory_space<vmem>>, %arg18: memref<16x64xf32, #tpu.memory_space<vmem>>, %arg19: memref<16x64xf32, #tpu.memory_space<vmem>>) attributes {dimension_semantics = [#tpu.dimension_semantics<parallel>], iteration_bounds = array<i64: 2>, scalar_prefetch = 0 : i64, scratch_operands = 1 : i64, tpu.core_type = #tpu.core_type<tc>, window_params = [{transform_indices = @transform_0, window_bounds = array<i64: 16, 64>}, {transform_indices = @transform_1, window_bounds = array<i64: 2, 1, 8, 16, 16>}, {transform_indices = @transform_2, window_bounds = array<i64: 1, 1, 16>}, {pipeline_mode = #tpu.pipeline_mode<synchronous>, transform_indices = @transform_3, window_bounds = array<i64: 2, 64, 192>}, {pipeline_mode = #tpu.pipeline_mode<synchronous>, transform_indices = @transform_4, window_bounds = array<i64: 2, 1, 192>}, {pipeline_mode = #tpu.pipeline_mode<synchronous>, transform_indices = @transform_5, window_bounds = array<i64: 2, 64, 64>}, {pipeline_mode = #tpu.pipeline_mode<synchronous>, transform_indices = @transform_6, window_bounds = array<i64: 2, 1, 64>}, {pipeline_mode = #tpu.pipeline_mode<synchronous>, transform_indices = @transform_7, window_bounds = array<i64: 2, 64, 128>}, {pipeline_mode = #tpu.pipeline_mode<synchronous>, transform_indices = @transform_8, window_bounds = array<i64: 2, 1, 128>}, {pipeline_mode = #tpu.pipeline_mode<synchronous>, transform_indices = @transform_9, window_bounds = array<i64: 2, 128, 64>}, {pipeline_mode = #tpu.pipeline_mode<synchronous>, transform_indices = @transform_10, window_bounds = array<i64: 2, 1, 64>}, {pipeline_mode = #tpu.pipeline_mode<synchronous>, transform_indices = @transform_11, window_bounds = array<i64: 2, 1, 64>}, {pipeline_mode = #tpu.pipeline_mode<synchronous>, transform_indices = @transform_12, window_bounds = array<i64: 2, 1, 64>}, {pipeline_mode = #tpu.pipeline_mode<synchronous>, transform_indices = @transform_13, window_bounds = array<i64: 2, 1, 64>}, {pipeline_mode = #tpu.pipeline_mode<synchronous>, transform_indices = @transform_14, window_bounds = array<i64: 2, 1, 64>}, {pipeline_mode = #tpu.pipeline_mode<synchronous>, transform_indices = @transform_15, window_bounds = array<i64: 1, 64>}, {pipeline_mode = #tpu.pipeline_mode<synchronous>, transform_indices = @transform_16, window_bounds = array<i64: 1, 64>}, {transform_indices = @transform_17, window_bounds = array<i64: 16, 64>}]} {
    %c0 = arith.constant 0 : index
    %c0_0 = arith.constant 0 : index
    %0 = vector.load %arg1[%c0, %c0_0] : memref<16x64xf32, #tpu.memory_space<vmem>>, vector<16x64xf32>
    %c0_1 = arith.constant 0 : index
    %c0_2 = arith.constant 0 : index
    %c0_3 = arith.constant 0 : index
    %1 = vector.load %arg3[%c0_1, %c0_2, %c0_3] : memref<1x1x16xf32, #tpu.memory_space<vmem>>, vector<1x1x16xf32>
    %2 = vector.shape_cast %1 : vector<1x1x16xf32> to vector<1x16xf32>
    %c0_4 = arith.constant 0 : index
    %c0_5 = arith.constant 0 : index
    %c0_6 = arith.constant 0 : index
    %3 = vector.load %arg12[%c0_4, %c0_5, %c0_6] : memref<2x1x64xf32, #tpu.memory_space<vmem>>, vector<1x1x64xf32>
    %4 = vector.shape_cast %3 : vector<1x1x64xf32> to vector<1x64xf32>
    %c0_7 = arith.constant 0 : index
    %c0_8 = arith.constant 0 : index
    %c0_9 = arith.constant 0 : index
    %5 = vector.load %arg13[%c0_7, %c0_8, %c0_9] : memref<2x1x64xf32, #tpu.memory_space<vmem>>, vector<1x1x64xf32>
    %6 = vector.shape_cast %5 : vector<1x1x64xf32> to vector<1x64xf32>
    %cst = arith.constant dense<0.000000e+00> : vector<16xf32>
    %7 = vector.multi_reduction <add>, %0, %cst [1] : vector<16x64xf32> to vector<16xf32>
    %8 = vector.shape_cast %7 : vector<16xf32> to vector<16x1xf32>
    %cst_10 = arith.constant 6.400000e+01 : f32
    %9 = vector.broadcast %cst_10 : f32 to vector<16x1xf32>
    %10 = arith.divf %8, %9 : vector<16x1xf32>
    %11 = vector.broadcast %10 : vector<16x1xf32> to vector<16x64xf32>
    %12 = arith.subf %0, %11 : vector<16x64xf32>
    %13 = arith.mulf %12, %12 : vector<16x64xf32>
    %cst_11 = arith.constant dense<0.000000e+00> : vector<16xf32>
    %14 = vector.multi_reduction <add>, %13, %cst_11 [1] : vector<16x64xf32> to vector<16xf32>
    %15 = vector.shape_cast %14 : vector<16xf32> to vector<16x1xf32>
    %cst_12 = arith.constant 0.0158730168 : f32
    %16 = vector.broadcast %cst_12 : f32 to vector<16x1xf32>
    %17 = arith.mulf %15, %16 : vector<16x1xf32>
    %18 = math.sqrt %17 : vector<16x1xf32>
    %cst_13 = arith.constant 9.99999997E-7 : f32
    %19 = vector.broadcast %cst_13 : f32 to vector<16x1xf32>
    %20 = arith.addf %18, %19 : vector<16x1xf32>
    %21 = tpu.reciprocal %20 {approx = true} : vector<16x1xf32> -> vector<16x1xf32>
    %22 = vector.broadcast %21 : vector<16x1xf32> to vector<16x64xf32>
    %23 = arith.mulf %12, %22 : vector<16x64xf32>
    %24 = vector.broadcast %4 : vector<1x64xf32> to vector<16x64xf32>
    %25 = arith.mulf %24, %23 : vector<16x64xf32>
    %26 = vector.broadcast %6 : vector<1x64xf32> to vector<16x64xf32>
    %27 = arith.addf %25, %26 : vector<16x64xf32>
    %c0_14 = arith.constant 0 : index
    %c0_15 = arith.constant 0 : index
    %c0_16 = arith.constant 0 : index
    %28 = vector.load %arg4[%c0_14, %c0_15, %c0_16] : memref<2x64x192xf32, #tpu.memory_space<vmem>>, vector<1x64x192xf32>
    %29 = vector.shape_cast %28 : vector<1x64x192xf32> to vector<64x192xf32>
    %cst_17 = arith.constant dense<0.000000e+00> : vector<16x192xf32>
    %30 = tpu.matmul %27, %29, %cst_17 {dimension_numbers = #tpu.dot_dimension_numbers<[1], [0], [0], [1], [0, 0, 1, 1], [], []>} : vector<16x64xf32>, vector<64x192xf32>, vector<16x192xf32> -> vector<16x192xf32>
    %c0_18 = arith.constant 0 : index
    %c0_19 = arith.constant 0 : index
    %c0_20 = arith.constant 0 : index
    %31 = vector.load %arg5[%c0_18, %c0_19, %c0_20] : memref<2x1x192xf32, #tpu.memory_space<vmem>>, vector<1x1x192xf32>
    %32 = vector.shape_cast %31 : vector<1x1x192xf32> to vector<1x192xf32>
    %33 = vector.broadcast %32 : vector<1x192xf32> to vector<16x192xf32>
    %34 = arith.addf %30, %33 : vector<16x192xf32>
    %35 = vector.extract_strided_slice %34 {offsets = [0, 0], sizes = [16, 8], strides = [1, 1]} : vector<16x192xf32> to vector<16x8xf32>
    %36 = vector.extract_strided_slice %34 {offsets = [0, 64], sizes = [16, 8], strides = [1, 1]} : vector<16x192xf32> to vector<16x8xf32>
    %37 = vector.extract_strided_slice %34 {offsets = [0, 128], sizes = [16, 8], strides = [1, 1]} : vector<16x192xf32> to vector<16x8xf32>
    %cst_21 = arith.constant dense<0.000000e+00> : vector<16x16xf32>
    %38 = tpu.matmul %35, %36, %cst_21 {dimension_numbers = #tpu.dot_dimension_numbers<[1], [1], [0], [0], [0, 0, 1, 0], [], []>} : vector<16x8xf32>, vector<16x8xf32>, vector<16x16xf32> -> vector<16x16xf32>
    %cst_22 = arith.constant 0.353553385 : f32
    %39 = vector.broadcast %cst_22 : f32 to vector<16x16xf32>
    %40 = arith.mulf %38, %39 : vector<16x16xf32>
    %c0_23 = arith.constant 0 : index
    %c0_24 = arith.constant 0 : index
    %c0_25 = arith.constant 0 : index
    %c0_26 = arith.constant 0 : index
    %c0_27 = arith.constant 0 : index
    %41 = vector.load %arg2[%c0_23, %c0_24, %c0_25, %c0_26, %c0_27] : memref<2x1x8x16x16xf32, #tpu.memory_space<vmem>>, vector<1x1x1x16x16xf32>
    %42 = vector.shape_cast %41 : vector<1x1x1x16x16xf32> to vector<16x16xf32>
    %43 = arith.addf %42, %40 : vector<16x16xf32>
    %cst_28 = arith.constant 0.000000e+00 : f32
    %44 = vector.broadcast %cst_28 : f32 to vector<1x16xf32>
    %45 = arith.cmpf oeq, %2, %44 : vector<1x16xf32>
    %cst_29 = arith.constant -1.000000e+09 : f32
    %46 = vector.shape_cast %45 : vector<1x16xi1> to vector<1x16xi1>
    %47 = vector.broadcast %46 : vector<1x16xi1> to vector<16x16xi1>
    %48 = vector.broadcast %cst_29 : f32 to vector<16x16xf32>
    %49 = arith.select %47, %48, %43 : vector<16x16xi1>, vector<16x16xf32>
    %cst_30 = arith.constant dense<0xFF800000> : vector<16xf32>
    %50 = vector.multi_reduction <maximumf>, %49, %cst_30 [1] : vector<16x16xf32> to vector<16xf32>
    %51 = vector.shape_cast %50 : vector<16xf32> to vector<16x1xf32>
    %52 = vector.broadcast %51 : vector<16x1xf32> to vector<16x16xf32>
    %53 = arith.subf %49, %52 : vector<16x16xf32>
    %54 = math.exp %53 : vector<16x16xf32>
    %cst_31 = arith.constant dense<0.000000e+00> : vector<16xf32>
    %55 = vector.multi_reduction <add>, %54, %cst_31 [1] : vector<16x16xf32> to vector<16xf32>
    %56 = vector.shape_cast %55 : vector<16xf32> to vector<16x1xf32>
    %57 = tpu.reciprocal %56 {approx = true} : vector<16x1xf32> -> vector<16x1xf32>
    %58 = vector.broadcast %57 : vector<16x1xf32> to vector<16x16xf32>
    %59 = arith.mulf %54, %58 : vector<16x16xf32>
    %cst_32 = arith.constant dense<0.000000e+00> : vector<16x8xf32>
    %60 = tpu.matmul %59, %37, %cst_32 {dimension_numbers = #tpu.dot_dimension_numbers<[1], [0], [0], [1], [0, 0, 1, 1], [], []>} : vector<16x16xf32>, vector<16x8xf32>, vector<16x8xf32> -> vector<16x8xf32>
    %c0_33 = arith.constant 0 : index
    %c0_34 = arith.constant 0 : index
    %61 = vector.load %arg19[%c0_33, %c0_34] : memref<16x64xf32, #tpu.memory_space<vmem>>, vector<16x8xf32>
    tpu.vector_store %arg19[%c0_33, %c0_34], %60 {strides = array<i32>} : memref<16x64xf32, #tpu.memory_space<vmem>>, vector<16x8xf32>,
    %62 = vector.extract_strided_slice %34 {offsets = [0, 8], sizes = [16, 8], strides = [1, 1]} : vector<16x192xf32> to vector<16x8xf32>
    %63 = vector.extract_strided_slice %34 {offsets = [0, 72], sizes = [16, 8], strides = [1, 1]} : vector<16x192xf32> to vector<16x8xf32>
    %64 = vector.extract_strided_slice %34 {offsets = [0, 136], sizes = [16, 8], strides = [1, 1]} : vector<16x192xf32> to vector<16x8xf32>
    %cst_35 = arith.constant dense<0.000000e+00> : vector<16x16xf32>
    %65 = tpu.matmul %62, %63, %cst_35 {dimension_numbers = #tpu.dot_dimension_numbers<[1], [1], [0], [0], [0, 0, 1, 0], [], []>} : vector<16x8xf32>, vector<16x8xf32>, vector<16x16xf32> -> vector<16x16xf32>
    %cst_36 = arith.constant 0.353553385 : f32
    %66 = vector.broadcast %cst_36 : f32 to vector<16x16xf32>
    %67 = arith.mulf %65, %66 : vector<16x16xf32>
    %c0_37 = arith.constant 0 : index
    %c0_38 = arith.constant 0 : index
    %c1 = arith.constant 1 : index
    %c0_39 = arith.constant 0 : index
    %c0_40 = arith.constant 0 : index
    %68 = vector.load %arg2[%c0_37, %c0_38, %c1, %c0_39, %c0_40] : memref<2x1x8x16x16xf32, #tpu.memory_space<vmem>>, vector<1x1x1x16x16xf32>
    %69 = vector.shape_cast %68 : vector<1x1x1x16x16xf32> to vector<16x16xf32>
    %70 = arith.addf %69, %67 : vector<16x16xf32>
    %cst_41 = arith.constant 0.000000e+00 : f32
    %71 = vector.broadcast %cst_41 : f32 to vector<1x16xf32>
    %72 = arith.cmpf oeq, %2, %71 : vector<1x16xf32>
    %cst_42 = arith.constant -1.000000e+09 : f32
    %73 = vector.shape_cast %72 : vector<1x16xi1> to vector<1x16xi1>
    %74 = vector.broadcast %73 : vector<1x16xi1> to vector<16x16xi1>
    %75 = vector.broadcast %cst_42 : f32 to vector<16x16xf32>
    %76 = arith.select %74, %75, %70 : vector<16x16xi1>, vector<16x16xf32>
    %cst_43 = arith.constant dense<0xFF800000> : vector<16xf32>
    %77 = vector.multi_reduction <maximumf>, %76, %cst_43 [1] : vector<16x16xf32> to vector<16xf32>
    %78 = vector.shape_cast %77 : vector<16xf32> to vector<16x1xf32>
    %79 = vector.broadcast %78 : vector<16x1xf32> to vector<16x16xf32>
    %80 = arith.subf %76, %79 : vector<16x16xf32>
    %81 = math.exp %80 : vector<16x16xf32>
    %cst_44 = arith.constant dense<0.000000e+00> : vector<16xf32>
    %82 = vector.multi_reduction <add>, %81, %cst_44 [1] : vector<16x16xf32> to vector<16xf32>
    %83 = vector.shape_cast %82 : vector<16xf32> to vector<16x1xf32>
    %84 = tpu.reciprocal %83 {approx = true} : vector<16x1xf32> -> vector<16x1xf32>
    %85 = vector.broadcast %84 : vector<16x1xf32> to vector<16x16xf32>
    %86 = arith.mulf %81, %85 : vector<16x16xf32>
    %cst_45 = arith.constant dense<0.000000e+00> : vector<16x8xf32>
    %87 = tpu.matmul %86, %64, %cst_45 {dimension_numbers = #tpu.dot_dimension_numbers<[1], [0], [0], [1], [0, 0, 1, 1], [], []>} : vector<16x16xf32>, vector<16x8xf32>, vector<16x8xf32> -> vector<16x8xf32>
    %c0_46 = arith.constant 0 : index
    %c8 = arith.constant 8 : index
    %88 = vector.load %arg19[%c0_46, %c8] : memref<16x64xf32, #tpu.memory_space<vmem>>, vector<16x8xf32>
    tpu.vector_store %arg19[%c0_46, %c8], %87 {strides = array<i32>} : memref<16x64xf32, #tpu.memory_space<vmem>>, vector<16x8xf32>,
    %89 = vector.extract_strided_slice %34 {offsets = [0, 16], sizes = [16, 8], strides = [1, 1]} : vector<16x192xf32> to vector<16x8xf32>
    %90 = vector.extract_strided_slice %34 {offsets = [0, 80], sizes = [16, 8], strides = [1, 1]} : vector<16x192xf32> to vector<16x8xf32>
    %91 = vector.extract_strided_slice %34 {offsets = [0, 144], sizes = [16, 8], strides = [1, 1]} : vector<16x192xf32> to vector<16x8xf32>
    %cst_47 = arith.constant dense<0.000000e+00> : vector<16x16xf32>
    %92 = tpu.matmul %89, %90, %cst_47 {dimension_numbers = #tpu.dot_dimension_numbers<[1], [1], [0], [0], [0, 0, 1, 0], [], []>} : vector<16x8xf32>, vector<16x8xf32>, vector<16x16xf32> -> vector<16x16xf32>
    %cst_48 = arith.constant 0.353553385 : f32
    %93 = vector.broadcast %cst_48 : f32 to vector<16x16xf32>
    %94 = arith.mulf %92, %93 : vector<16x16xf32>
    %c0_49 = arith.constant 0 : index
    %c0_50 = arith.constant 0 : index
    %c2 = arith.constant 2 : index
    %c0_51 = arith.constant 0 : index
    %c0_52 = arith.constant 0 : index
    %95 = vector.load %arg2[%c0_49, %c0_50, %c2, %c0_51, %c0_52] : memref<2x1x8x16x16xf32, #tpu.memory_space<vmem>>, vector<1x1x1x16x16xf32>
    %96 = vector.shape_cast %95 : vector<1x1x1x16x16xf32> to vector<16x16xf32>
    %97 = arith.addf %96, %94 : vector<16x16xf32>
    %cst_53 = arith.constant 0.000000e+00 : f32
    %98 = vector.broadcast %cst_53 : f32 to vector<1x16xf32>
    %99 = arith.cmpf oeq, %2, %98 : vector<1x16xf32>
    %cst_54 = arith.constant -1.000000e+09 : f32
    %100 = vector.shape_cast %99 : vector<1x16xi1> to vector<1x16xi1>
    %101 = vector.broadcast %100 : vector<1x16xi1> to vector<16x16xi1>
    %102 = vector.broadcast %cst_54 : f32 to vector<16x16xf32>
    %103 = arith.select %101, %102, %97 : vector<16x16xi1>, vector<16x16xf32>
    %cst_55 = arith.constant dense<0xFF800000> : vector<16xf32>
    %104 = vector.multi_reduction <maximumf>, %103, %cst_55 [1] : vector<16x16xf32> to vector<16xf32>
    %105 = vector.shape_cast %104 : vector<16xf32> to vector<16x1xf32>
    %106 = vector.broadcast %105 : vector<16x1xf32> to vector<16x16xf32>
    %107 = arith.subf %103, %106 : vector<16x16xf32>
    %108 = math.exp %107 : vector<16x16xf32>
    %cst_56 = arith.constant dense<0.000000e+00> : vector<16xf32>
    %109 = vector.multi_reduction <add>, %108, %cst_56 [1] : vector<16x16xf32> to vector<16xf32>
    %110 = vector.shape_cast %109 : vector<16xf32> to vector<16x1xf32>
    %111 = tpu.reciprocal %110 {approx = true} : vector<16x1xf32> -> vector<16x1xf32>
    %112 = vector.broadcast %111 : vector<16x1xf32> to vector<16x16xf32>
    %113 = arith.mulf %108, %112 : vector<16x16xf32>
    %cst_57 = arith.constant dense<0.000000e+00> : vector<16x8xf32>
    %114 = tpu.matmul %113, %91, %cst_57 {dimension_numbers = #tpu.dot_dimension_numbers<[1], [0], [0], [1], [0, 0, 1, 1], [], []>} : vector<16x16xf32>, vector<16x8xf32>, vector<16x8xf32> -> vector<16x8xf32>
    %c0_58 = arith.constant 0 : index
    %c16 = arith.constant 16 : index
    %115 = vector.load %arg19[%c0_58, %c16] : memref<16x64xf32, #tpu.memory_space<vmem>>, vector<16x8xf32>
    tpu.vector_store %arg19[%c0_58, %c16], %114 {strides = array<i32>} : memref<16x64xf32, #tpu.memory_space<vmem>>, vector<16x8xf32>,
    %116 = vector.extract_strided_slice %34 {offsets = [0, 24], sizes = [16, 8], strides = [1, 1]} : vector<16x192xf32> to vector<16x8xf32>
    %117 = vector.extract_strided_slice %34 {offsets = [0, 88], sizes = [16, 8], strides = [1, 1]} : vector<16x192xf32> to vector<16x8xf32>
    %118 = vector.extract_strided_slice %34 {offsets = [0, 152], sizes = [16, 8], strides = [1, 1]} : vector<16x192xf32> to vector<16x8xf32>
    %cst_59 = arith.constant dense<0.000000e+00> : vector<16x16xf32>
    %119 = tpu.matmul %116, %117, %cst_59 {dimension_numbers = #tpu.dot_dimension_numbers<[1], [1], [0], [0], [0, 0, 1, 0], [], []>} : vector<16x8xf32>, vector<16x8xf32>, vector<16x16xf32> -> vector<16x16xf32>
    %cst_60 = arith.constant 0.353553385 : f32
    %120 = vector.broadcast %cst_60 : f32 to vector<16x16xf32>
    %121 = arith.mulf %119, %120 : vector<16x16xf32>
    %c0_61 = arith.constant 0 : index
    %c0_62 = arith.constant 0 : index
    %c3 = arith.constant 3 : index
    %c0_63 = arith.constant 0 : index
    %c0_64 = arith.constant 0 : index
    %122 = vector.load %arg2[%c0_61, %c0_62, %c3, %c0_63, %c0_64] : memref<2x1x8x16x16xf32, #tpu.memory_space<vmem>>, vector<1x1x1x16x16xf32>
    %123 = vector.shape_cast %122 : vector<1x1x1x16x16xf32> to vector<16x16xf32>
    %124 = arith.addf %123, %121 : vector<16x16xf32>
    %cst_65 = arith.constant 0.000000e+00 : f32
    %125 = vector.broadcast %cst_65 : f32 to vector<1x16xf32>
    %126 = arith.cmpf oeq, %2, %125 : vector<1x16xf32>
    %cst_66 = arith.constant -1.000000e+09 : f32
    %127 = vector.shape_cast %126 : vector<1x16xi1> to vector<1x16xi1>
    %128 = vector.broadcast %127 : vector<1x16xi1> to vector<16x16xi1>
    %129 = vector.broadcast %cst_66 : f32 to vector<16x16xf32>
    %130 = arith.select %128, %129, %124 : vector<16x16xi1>, vector<16x16xf32>
    %cst_67 = arith.constant dense<0xFF800000> : vector<16xf32>
    %131 = vector.multi_reduction <maximumf>, %130, %cst_67 [1] : vector<16x16xf32> to vector<16xf32>
    %132 = vector.shape_cast %131 : vector<16xf32> to vector<16x1xf32>
    %133 = vector.broadcast %132 : vector<16x1xf32> to vector<16x16xf32>
    %134 = arith.subf %130, %133 : vector<16x16xf32>
    %135 = math.exp %134 : vector<16x16xf32>
    %cst_68 = arith.constant dense<0.000000e+00> : vector<16xf32>
    %136 = vector.multi_reduction <add>, %135, %cst_68 [1] : vector<16x16xf32> to vector<16xf32>
    %137 = vector.shape_cast %136 : vector<16xf32> to vector<16x1xf32>
    %138 = tpu.reciprocal %137 {approx = true} : vector<16x1xf32> -> vector<16x1xf32>
    %139 = vector.broadcast %138 : vector<16x1xf32> to vector<16x16xf32>
    %140 = arith.mulf %135, %139 : vector<16x16xf32>
    %cst_69 = arith.constant dense<0.000000e+00> : vector<16x8xf32>
    %141 = tpu.matmul %140, %118, %cst_69 {dimension_numbers = #tpu.dot_dimension_numbers<[1], [0], [0], [1], [0, 0, 1, 1], [], []>} : vector<16x16xf32>, vector<16x8xf32>, vector<16x8xf32> -> vector<16x8xf32>
    %c0_70 = arith.constant 0 : index
    %c24 = arith.constant 24 : index
    %142 = vector.load %arg19[%c0_70, %c24] : memref<16x64xf32, #tpu.memory_space<vmem>>, vector<16x8xf32>
    tpu.vector_store %arg19[%c0_70, %c24], %141 {strides = array<i32>} : memref<16x64xf32, #tpu.memory_space<vmem>>, vector<16x8xf32>,
    %143 = vector.extract_strided_slice %34 {offsets = [0, 32], sizes = [16, 8], strides = [1, 1]} : vector<16x192xf32> to vector<16x8xf32>
    %144 = vector.extract_strided_slice %34 {offsets = [0, 96], sizes = [16, 8], strides = [1, 1]} : vector<16x192xf32> to vector<16x8xf32>
    %145 = vector.extract_strided_slice %34 {offsets = [0, 160], sizes = [16, 8], strides = [1, 1]} : vector<16x192xf32> to vector<16x8xf32>
    %cst_71 = arith.constant dense<0.000000e+00> : vector<16x16xf32>
    %146 = tpu.matmul %143, %144, %cst_71 {dimension_numbers = #tpu.dot_dimension_numbers<[1], [1], [0], [0], [0, 0, 1, 0], [], []>} : vector<16x8xf32>, vector<16x8xf32>, vector<16x16xf32> -> vector<16x16xf32>
    %cst_72 = arith.constant 0.353553385 : f32
    %147 = vector.broadcast %cst_72 : f32 to vector<16x16xf32>
    %148 = arith.mulf %146, %147 : vector<16x16xf32>
    %c0_73 = arith.constant 0 : index
    %c0_74 = arith.constant 0 : index
    %c4 = arith.constant 4 : index
    %c0_75 = arith.constant 0 : index
    %c0_76 = arith.constant 0 : index
    %149 = vector.load %arg2[%c0_73, %c0_74, %c4, %c0_75, %c0_76] : memref<2x1x8x16x16xf32, #tpu.memory_space<vmem>>, vector<1x1x1x16x16xf32>
    %150 = vector.shape_cast %149 : vector<1x1x1x16x16xf32> to vector<16x16xf32>
    %151 = arith.addf %150, %148 : vector<16x16xf32>
    %cst_77 = arith.constant 0.000000e+00 : f32
    %152 = vector.broadcast %cst_77 : f32 to vector<1x16xf32>
    %153 = arith.cmpf oeq, %2, %152 : vector<1x16xf32>
    %cst_78 = arith.constant -1.000000e+09 : f32
    %154 = vector.shape_cast %153 : vector<1x16xi1> to vector<1x16xi1>
    %155 = vector.broadcast %154 : vector<1x16xi1> to vector<16x16xi1>
    %156 = vector.broadcast %cst_78 : f32 to vector<16x16xf32>
    %157 = arith.select %155, %156, %151 : vector<16x16xi1>, vector<16x16xf32>
    %cst_79 = arith.constant dense<0xFF800000> : vector<16xf32>
    %158 = vector.multi_reduction <maximumf>, %157, %cst_79 [1] : vector<16x16xf32> to vector<16xf32>
    %159 = vector.shape_cast %158 : vector<16xf32> to vector<16x1xf32>
    %160 = vector.broadcast %159 : vector<16x1xf32> to vector<16x16xf32>
    %161 = arith.subf %157, %160 : vector<16x16xf32>
    %162 = math.exp %161 : vector<16x16xf32>
    %cst_80 = arith.constant dense<0.000000e+00> : vector<16xf32>
    %163 = vector.multi_reduction <add>, %162, %cst_80 [1] : vector<16x16xf32> to vector<16xf32>
    %164 = vector.shape_cast %163 : vector<16xf32> to vector<16x1xf32>
    %165 = tpu.reciprocal %164 {approx = true} : vector<16x1xf32> -> vector<16x1xf32>
    %166 = vector.broadcast %165 : vector<16x1xf32> to vector<16x16xf32>
    %167 = arith.mulf %162, %166 : vector<16x16xf32>
    %cst_81 = arith.constant dense<0.000000e+00> : vector<16x8xf32>
    %168 = tpu.matmul %167, %145, %cst_81 {dimension_numbers = #tpu.dot_dimension_numbers<[1], [0], [0], [1], [0, 0, 1, 1], [], []>} : vector<16x16xf32>, vector<16x8xf32>, vector<16x8xf32> -> vector<16x8xf32>
    %c0_82 = arith.constant 0 : index
    %c32 = arith.constant 32 : index
    %169 = vector.load %arg19[%c0_82, %c32] : memref<16x64xf32, #tpu.memory_space<vmem>>, vector<16x8xf32>
    tpu.vector_store %arg19[%c0_82, %c32], %168 {strides = array<i32>} : memref<16x64xf32, #tpu.memory_space<vmem>>, vector<16x8xf32>,
    %170 = vector.extract_strided_slice %34 {offsets = [0, 40], sizes = [16, 8], strides = [1, 1]} : vector<16x192xf32> to vector<16x8xf32>
    %171 = vector.extract_strided_slice %34 {offsets = [0, 104], sizes = [16, 8], strides = [1, 1]} : vector<16x192xf32> to vector<16x8xf32>
    %172 = vector.extract_strided_slice %34 {offsets = [0, 168], sizes = [16, 8], strides = [1, 1]} : vector<16x192xf32> to vector<16x8xf32>
    %cst_83 = arith.constant dense<0.000000e+00> : vector<16x16xf32>
    %173 = tpu.matmul %170, %171, %cst_83 {dimension_numbers = #tpu.dot_dimension_numbers<[1], [1], [0], [0], [0, 0, 1, 0], [], []>} : vector<16x8xf32>, vector<16x8xf32>, vector<16x16xf32> -> vector<16x16xf32>
    %cst_84 = arith.constant 0.353553385 : f32
    %174 = vector.broadcast %cst_84 : f32 to vector<16x16xf32>
    %175 = arith.mulf %173, %174 : vector<16x16xf32>
    %c0_85 = arith.constant 0 : index
    %c0_86 = arith.constant 0 : index
    %c5 = arith.constant 5 : index
    %c0_87 = arith.constant 0 : index
    %c0_88 = arith.constant 0 : index
    %176 = vector.load %arg2[%c0_85, %c0_86, %c5, %c0_87, %c0_88] : memref<2x1x8x16x16xf32, #tpu.memory_space<vmem>>, vector<1x1x1x16x16xf32>
    %177 = vector.shape_cast %176 : vector<1x1x1x16x16xf32> to vector<16x16xf32>
    %178 = arith.addf %177, %175 : vector<16x16xf32>
    %cst_89 = arith.constant 0.000000e+00 : f32
    %179 = vector.broadcast %cst_89 : f32 to vector<1x16xf32>
    %180 = arith.cmpf oeq, %2, %179 : vector<1x16xf32>
    %cst_90 = arith.constant -1.000000e+09 : f32
    %181 = vector.shape_cast %180 : vector<1x16xi1> to vector<1x16xi1>
    %182 = vector.broadcast %181 : vector<1x16xi1> to vector<16x16xi1>
    %183 = vector.broadcast %cst_90 : f32 to vector<16x16xf32>
    %184 = arith.select %182, %183, %178 : vector<16x16xi1>, vector<16x16xf32>
    %cst_91 = arith.constant dense<0xFF800000> : vector<16xf32>
    %185 = vector.multi_reduction <maximumf>, %184, %cst_91 [1] : vector<16x16xf32> to vector<16xf32>
    %186 = vector.shape_cast %185 : vector<16xf32> to vector<16x1xf32>
    %187 = vector.broadcast %186 : vector<16x1xf32> to vector<16x16xf32>
    %188 = arith.subf %184, %187 : vector<16x16xf32>
    %189 = math.exp %188 : vector<16x16xf32>
    %cst_92 = arith.constant dense<0.000000e+00> : vector<16xf32>
    %190 = vector.multi_reduction <add>, %189, %cst_92 [1] : vector<16x16xf32> to vector<16xf32>
    %191 = vector.shape_cast %190 : vector<16xf32> to vector<16x1xf32>
    %192 = tpu.reciprocal %191 {approx = true} : vector<16x1xf32> -> vector<16x1xf32>
    %193 = vector.broadcast %192 : vector<16x1xf32> to vector<16x16xf32>
    %194 = arith.mulf %189, %193 : vector<16x16xf32>
    %cst_93 = arith.constant dense<0.000000e+00> : vector<16x8xf32>
    %195 = tpu.matmul %194, %172, %cst_93 {dimension_numbers = #tpu.dot_dimension_numbers<[1], [0], [0], [1], [0, 0, 1, 1], [], []>} : vector<16x16xf32>, vector<16x8xf32>, vector<16x8xf32> -> vector<16x8xf32>
    %c0_94 = arith.constant 0 : index
    %c40 = arith.constant 40 : index
    %196 = vector.load %arg19[%c0_94, %c40] : memref<16x64xf32, #tpu.memory_space<vmem>>, vector<16x8xf32>
    tpu.vector_store %arg19[%c0_94, %c40], %195 {strides = array<i32>} : memref<16x64xf32, #tpu.memory_space<vmem>>, vector<16x8xf32>,
    %197 = vector.extract_strided_slice %34 {offsets = [0, 48], sizes = [16, 8], strides = [1, 1]} : vector<16x192xf32> to vector<16x8xf32>
    %198 = vector.extract_strided_slice %34 {offsets = [0, 112], sizes = [16, 8], strides = [1, 1]} : vector<16x192xf32> to vector<16x8xf32>
    %199 = vector.extract_strided_slice %34 {offsets = [0, 176], sizes = [16, 8], strides = [1, 1]} : vector<16x192xf32> to vector<16x8xf32>
    %cst_95 = arith.constant dense<0.000000e+00> : vector<16x16xf32>
    %200 = tpu.matmul %197, %198, %cst_95 {dimension_numbers = #tpu.dot_dimension_numbers<[1], [1], [0], [0], [0, 0, 1, 0], [], []>} : vector<16x8xf32>, vector<16x8xf32>, vector<16x16xf32> -> vector<16x16xf32>
    %cst_96 = arith.constant 0.353553385 : f32
    %201 = vector.broadcast %cst_96 : f32 to vector<16x16xf32>
    %202 = arith.mulf %200, %201 : vector<16x16xf32>
    %c0_97 = arith.constant 0 : index
    %c0_98 = arith.constant 0 : index
    %c6 = arith.constant 6 : index
    %c0_99 = arith.constant 0 : index
    %c0_100 = arith.constant 0 : index
    %203 = vector.load %arg2[%c0_97, %c0_98, %c6, %c0_99, %c0_100] : memref<2x1x8x16x16xf32, #tpu.memory_space<vmem>>, vector<1x1x1x16x16xf32>
    %204 = vector.shape_cast %203 : vector<1x1x1x16x16xf32> to vector<16x16xf32>
    %205 = arith.addf %204, %202 : vector<16x16xf32>
    %cst_101 = arith.constant 0.000000e+00 : f32
    %206 = vector.broadcast %cst_101 : f32 to vector<1x16xf32>
    %207 = arith.cmpf oeq, %2, %206 : vector<1x16xf32>
    %cst_102 = arith.constant -1.000000e+09 : f32
    %208 = vector.shape_cast %207 : vector<1x16xi1> to vector<1x16xi1>
    %209 = vector.broadcast %208 : vector<1x16xi1> to vector<16x16xi1>
    %210 = vector.broadcast %cst_102 : f32 to vector<16x16xf32>
    %211 = arith.select %209, %210, %205 : vector<16x16xi1>, vector<16x16xf32>
    %cst_103 = arith.constant dense<0xFF800000> : vector<16xf32>
    %212 = vector.multi_reduction <maximumf>, %211, %cst_103 [1] : vector<16x16xf32> to vector<16xf32>
    %213 = vector.shape_cast %212 : vector<16xf32> to vector<16x1xf32>
    %214 = vector.broadcast %213 : vector<16x1xf32> to vector<16x16xf32>
    %215 = arith.subf %211, %214 : vector<16x16xf32>
    %216 = math.exp %215 : vector<16x16xf32>
    %cst_104 = arith.constant dense<0.000000e+00> : vector<16xf32>
    %217 = vector.multi_reduction <add>, %216, %cst_104 [1] : vector<16x16xf32> to vector<16xf32>
    %218 = vector.shape_cast %217 : vector<16xf32> to vector<16x1xf32>
    %219 = tpu.reciprocal %218 {approx = true} : vector<16x1xf32> -> vector<16x1xf32>
    %220 = vector.broadcast %219 : vector<16x1xf32> to vector<16x16xf32>
    %221 = arith.mulf %216, %220 : vector<16x16xf32>
    %cst_105 = arith.constant dense<0.000000e+00> : vector<16x8xf32>
    %222 = tpu.matmul %221, %199, %cst_105 {dimension_numbers = #tpu.dot_dimension_numbers<[1], [0], [0], [1], [0, 0, 1, 1], [], []>} : vector<16x16xf32>, vector<16x8xf32>, vector<16x8xf32> -> vector<16x8xf32>
    %c0_106 = arith.constant 0 : index
    %c48 = arith.constant 48 : index
    %223 = vector.load %arg19[%c0_106, %c48] : memref<16x64xf32, #tpu.memory_space<vmem>>, vector<16x8xf32>
    tpu.vector_store %arg19[%c0_106, %c48], %222 {strides = array<i32>} : memref<16x64xf32, #tpu.memory_space<vmem>>, vector<16x8xf32>,
    %224 = vector.extract_strided_slice %34 {offsets = [0, 56], sizes = [16, 8], strides = [1, 1]} : vector<16x192xf32> to vector<16x8xf32>
    %225 = vector.extract_strided_slice %34 {offsets = [0, 120], sizes = [16, 8], strides = [1, 1]} : vector<16x192xf32> to vector<16x8xf32>
    %226 = vector.extract_strided_slice %34 {offsets = [0, 184], sizes = [16, 8], strides = [1, 1]} : vector<16x192xf32> to vector<16x8xf32>
    %cst_107 = arith.constant dense<0.000000e+00> : vector<16x16xf32>
    %227 = tpu.matmul %224, %225, %cst_107 {dimension_numbers = #tpu.dot_dimension_numbers<[1], [1], [0], [0], [0, 0, 1, 0], [], []>} : vector<16x8xf32>, vector<16x8xf32>, vector<16x16xf32> -> vector<16x16xf32>
    %cst_108 = arith.constant 0.353553385 : f32
    %228 = vector.broadcast %cst_108 : f32 to vector<16x16xf32>
    %229 = arith.mulf %227, %228 : vector<16x16xf32>
    %c0_109 = arith.constant 0 : index
    %c0_110 = arith.constant 0 : index
    %c7 = arith.constant 7 : index
    %c0_111 = arith.constant 0 : index
    %c0_112 = arith.constant 0 : index
    %230 = vector.load %arg2[%c0_109, %c0_110, %c7, %c0_111, %c0_112] : memref<2x1x8x16x16xf32, #tpu.memory_space<vmem>>, vector<1x1x1x16x16xf32>
    %231 = vector.shape_cast %230 : vector<1x1x1x16x16xf32> to vector<16x16xf32>
    %232 = arith.addf %231, %229 : vector<16x16xf32>
    %cst_113 = arith.constant 0.000000e+00 : f32
    %233 = vector.broadcast %cst_113 : f32 to vector<1x16xf32>
    %234 = arith.cmpf oeq, %2, %233 : vector<1x16xf32>
    %cst_114 = arith.constant -1.000000e+09 : f32
    %235 = vector.shape_cast %234 : vector<1x16xi1> to vector<1x16xi1>
    %236 = vector.broadcast %235 : vector<1x16xi1> to vector<16x16xi1>
    %237 = vector.broadcast %cst_114 : f32 to vector<16x16xf32>
    %238 = arith.select %236, %237, %232 : vector<16x16xi1>, vector<16x16xf32>
    %cst_115 = arith.constant dense<0xFF800000> : vector<16xf32>
    %239 = vector.multi_reduction <maximumf>, %238, %cst_115 [1] : vector<16x16xf32> to vector<16xf32>
    %240 = vector.shape_cast %239 : vector<16xf32> to vector<16x1xf32>
    %241 = vector.broadcast %240 : vector<16x1xf32> to vector<16x16xf32>
    %242 = arith.subf %238, %241 : vector<16x16xf32>
    %243 = math.exp %242 : vector<16x16xf32>
    %cst_116 = arith.constant dense<0.000000e+00> : vector<16xf32>
    %244 = vector.multi_reduction <add>, %243, %cst_116 [1] : vector<16x16xf32> to vector<16xf32>
    %245 = vector.shape_cast %244 : vector<16xf32> to vector<16x1xf32>
    %246 = tpu.reciprocal %245 {approx = true} : vector<16x1xf32> -> vector<16x1xf32>
    %247 = vector.broadcast %246 : vector<16x1xf32> to vector<16x16xf32>
    %248 = arith.mulf %243, %247 : vector<16x16xf32>
    %cst_117 = arith.constant dense<0.000000e+00> : vector<16x8xf32>
    %249 = tpu.matmul %248, %226, %cst_117 {dimension_numbers = #tpu.dot_dimension_numbers<[1], [0], [0], [1], [0, 0, 1, 1], [], []>} : vector<16x16xf32>, vector<16x8xf32>, vector<16x8xf32> -> vector<16x8xf32>
    %c0_118 = arith.constant 0 : index
    %c56 = arith.constant 56 : index
    %250 = vector.load %arg19[%c0_118, %c56] : memref<16x64xf32, #tpu.memory_space<vmem>>, vector<16x8xf32>
    tpu.vector_store %arg19[%c0_118, %c56], %249 {strides = array<i32>} : memref<16x64xf32, #tpu.memory_space<vmem>>, vector<16x8xf32>,
    %c0_119 = arith.constant 0 : index
    %c0_120 = arith.constant 0 : index
    %251 = vector.load %arg19[%c0_119, %c0_120] : memref<16x64xf32, #tpu.memory_space<vmem>>, vector<16x64xf32>
    %c0_121 = arith.constant 0 : index
    %c0_122 = arith.constant 0 : index
    %c0_123 = arith.constant 0 : index
    %252 = vector.load %arg6[%c0_121, %c0_122, %c0_123] : memref<2x64x64xf32, #tpu.memory_space<vmem>>, vector<1x64x64xf32>
    %253 = vector.shape_cast %252 : vector<1x64x64xf32> to vector<64x64xf32>
    %cst_124 = arith.constant dense<0.000000e+00> : vector<16x64xf32>
    %254 = tpu.matmul %251, %253, %cst_124 {dimension_numbers = #tpu.dot_dimension_numbers<[1], [0], [0], [1], [0, 0, 1, 1], [], []>} : vector<16x64xf32>, vector<64x64xf32>, vector<16x64xf32> -> vector<16x64xf32>
    %255 = arith.addf %0, %254 : vector<16x64xf32>
    %c0_125 = arith.constant 0 : index
    %c0_126 = arith.constant 0 : index
    %c0_127 = arith.constant 0 : index
    %256 = vector.load %arg7[%c0_125, %c0_126, %c0_127] : memref<2x1x64xf32, #tpu.memory_space<vmem>>, vector<1x1x64xf32>
    %257 = vector.shape_cast %256 : vector<1x1x64xf32> to vector<1x64xf32>
    %258 = vector.broadcast %257 : vector<1x64xf32> to vector<16x64xf32>
    %259 = arith.addf %255, %258 : vector<16x64xf32>
    %c0_128 = arith.constant 0 : index
    %c0_129 = arith.constant 0 : index
    %c0_130 = arith.constant 0 : index
    %260 = vector.load %arg14[%c0_128, %c0_129, %c0_130] : memref<2x1x64xf32, #tpu.memory_space<vmem>>, vector<1x1x64xf32>
    %261 = vector.shape_cast %260 : vector<1x1x64xf32> to vector<1x64xf32>
    %c0_131 = arith.constant 0 : index
    %c0_132 = arith.constant 0 : index
    %c0_133 = arith.constant 0 : index
    %262 = vector.load %arg15[%c0_131, %c0_132, %c0_133] : memref<2x1x64xf32, #tpu.memory_space<vmem>>, vector<1x1x64xf32>
    %263 = vector.shape_cast %262 : vector<1x1x64xf32> to vector<1x64xf32>
    %cst_134 = arith.constant dense<0.000000e+00> : vector<16xf32>
    %264 = vector.multi_reduction <add>, %259, %cst_134 [1] : vector<16x64xf32> to vector<16xf32>
    %265 = vector.shape_cast %264 : vector<16xf32> to vector<16x1xf32>
    %cst_135 = arith.constant 6.400000e+01 : f32
    %266 = vector.broadcast %cst_135 : f32 to vector<16x1xf32>
    %267 = arith.divf %265, %266 : vector<16x1xf32>
    %268 = vector.broadcast %267 : vector<16x1xf32> to vector<16x64xf32>
    %269 = arith.subf %259, %268 : vector<16x64xf32>
    %270 = arith.mulf %269, %269 : vector<16x64xf32>
    %cst_136 = arith.constant dense<0.000000e+00> : vector<16xf32>
    %271 = vector.multi_reduction <add>, %270, %cst_136 [1] : vector<16x64xf32> to vector<16xf32>
    %272 = vector.shape_cast %271 : vector<16xf32> to vector<16x1xf32>
    %cst_137 = arith.constant 0.0158730168 : f32
    %273 = vector.broadcast %cst_137 : f32 to vector<16x1xf32>
    %274 = arith.mulf %272, %273 : vector<16x1xf32>
    %275 = math.sqrt %274 : vector<16x1xf32>
    %cst_138 = arith.constant 9.99999997E-7 : f32
    %276 = vector.broadcast %cst_138 : f32 to vector<16x1xf32>
    %277 = arith.addf %275, %276 : vector<16x1xf32>
    %278 = tpu.reciprocal %277 {approx = true} : vector<16x1xf32> -> vector<16x1xf32>
    %279 = vector.broadcast %278 : vector<16x1xf32> to vector<16x64xf32>
    %280 = arith.mulf %269, %279 : vector<16x64xf32>
    %281 = vector.broadcast %261 : vector<1x64xf32> to vector<16x64xf32>
    %282 = arith.mulf %281, %280 : vector<16x64xf32>
    %283 = vector.broadcast %263 : vector<1x64xf32> to vector<16x64xf32>
    %284 = arith.addf %282, %283 : vector<16x64xf32>
    %c0_139 = arith.constant 0 : index
    %c0_140 = arith.constant 0 : index
    %c0_141 = arith.constant 0 : index
    %285 = vector.load %arg8[%c0_139, %c0_140, %c0_141] : memref<2x64x128xf32, #tpu.memory_space<vmem>>, vector<1x64x128xf32>
    %286 = vector.shape_cast %285 : vector<1x64x128xf32> to vector<64x128xf32>
    %cst_142 = arith.constant dense<0.000000e+00> : vector<16x128xf32>
    %287 = tpu.matmul %284, %286, %cst_142 {dimension_numbers = #tpu.dot_dimension_numbers<[1], [0], [0], [1], [0, 0, 1, 1], [], []>} : vector<16x64xf32>, vector<64x128xf32>, vector<16x128xf32> -> vector<16x128xf32>
    %c0_143 = arith.constant 0 : index
    %c0_144 = arith.constant 0 : index
    %c0_145 = arith.constant 0 : index
    %288 = vector.load %arg9[%c0_143, %c0_144, %c0_145] : memref<2x1x128xf32, #tpu.memory_space<vmem>>, vector<1x1x128xf32>
    %289 = vector.shape_cast %288 : vector<1x1x128xf32> to vector<1x128xf32>
    %290 = vector.broadcast %289 : vector<1x128xf32> to vector<16x128xf32>
    %291 = arith.addf %287, %290 : vector<16x128xf32>
    %cst_146 = arith.constant 0.000000e+00 : f32
    %292 = vector.broadcast %cst_146 : f32 to vector<16x128xf32>
    %293 = arith.maximumf %291, %292 : vector<16x128xf32>
    %c0_147 = arith.constant 0 : index
    %c0_148 = arith.constant 0 : index
    %c0_149 = arith.constant 0 : index
    %294 = vector.load %arg10[%c0_147, %c0_148, %c0_149] : memref<2x128x64xf32, #tpu.memory_space<vmem>>, vector<1x128x64xf32>
    %295 = vector.shape_cast %294 : vector<1x128x64xf32> to vector<128x64xf32>
    %cst_150 = arith.constant dense<0.000000e+00> : vector<16x64xf32>
    %296 = tpu.matmul %293, %295, %cst_150 {dimension_numbers = #tpu.dot_dimension_numbers<[1], [0], [0], [1], [0, 0, 1, 1], [], []>} : vector<16x128xf32>, vector<128x64xf32>, vector<16x64xf32> -> vector<16x64xf32>
    %297 = arith.addf %259, %296 : vector<16x64xf32>
    %c0_151 = arith.constant 0 : index
    %c0_152 = arith.constant 0 : index
    %c0_153 = arith.constant 0 : index
    %298 = vector.load %arg11[%c0_151, %c0_152, %c0_153] : memref<2x1x64xf32, #tpu.memory_space<vmem>>, vector<1x1x64xf32>
    %299 = vector.shape_cast %298 : vector<1x1x64xf32> to vector<1x64xf32>
    %300 = vector.broadcast %299 : vector<1x64xf32> to vector<16x64xf32>
    %301 = arith.addf %297, %300 : vector<16x64xf32>
    %c1_154 = arith.constant 1 : index
    %c0_155 = arith.constant 0 : index
    %c0_156 = arith.constant 0 : index
    %302 = vector.load %arg12[%c1_154, %c0_155, %c0_156] : memref<2x1x64xf32, #tpu.memory_space<vmem>>, vector<1x1x64xf32>
    %303 = vector.shape_cast %302 : vector<1x1x64xf32> to vector<1x64xf32>
    %c1_157 = arith.constant 1 : index
    %c0_158 = arith.constant 0 : index
    %c0_159 = arith.constant 0 : index
    %304 = vector.load %arg13[%c1_157, %c0_158, %c0_159] : memref<2x1x64xf32, #tpu.memory_space<vmem>>, vector<1x1x64xf32>
    %305 = vector.shape_cast %304 : vector<1x1x64xf32> to vector<1x64xf32>
    %cst_160 = arith.constant dense<0.000000e+00> : vector<16xf32>
    %306 = vector.multi_reduction <add>, %301, %cst_160 [1] : vector<16x64xf32> to vector<16xf32>
    %307 = vector.shape_cast %306 : vector<16xf32> to vector<16x1xf32>
    %cst_161 = arith.constant 6.400000e+01 : f32
    %308 = vector.broadcast %cst_161 : f32 to vector<16x1xf32>
    %309 = arith.divf %307, %308 : vector<16x1xf32>
    %310 = vector.broadcast %309 : vector<16x1xf32> to vector<16x64xf32>
    %311 = arith.subf %301, %310 : vector<16x64xf32>
    %312 = arith.mulf %311, %311 : vector<16x64xf32>
    %cst_162 = arith.constant dense<0.000000e+00> : vector<16xf32>
    %313 = vector.multi_reduction <add>, %312, %cst_162 [1] : vector<16x64xf32> to vector<16xf32>
    %314 = vector.shape_cast %313 : vector<16xf32> to vector<16x1xf32>
    %cst_163 = arith.constant 0.0158730168 : f32
    %315 = vector.broadcast %cst_163 : f32 to vector<16x1xf32>
    %316 = arith.mulf %314, %315 : vector<16x1xf32>
    %317 = math.sqrt %316 : vector<16x1xf32>
    %cst_164 = arith.constant 9.99999997E-7 : f32
    %318 = vector.broadcast %cst_164 : f32 to vector<16x1xf32>
    %319 = arith.addf %317, %318 : vector<16x1xf32>
    %320 = tpu.reciprocal %319 {approx = true} : vector<16x1xf32> -> vector<16x1xf32>
    %321 = vector.broadcast %320 : vector<16x1xf32> to vector<16x64xf32>
    %322 = arith.mulf %311, %321 : vector<16x64xf32>
    %323 = vector.broadcast %303 : vector<1x64xf32> to vector<16x64xf32>
    %324 = arith.mulf %323, %322 : vector<16x64xf32>
    %325 = vector.broadcast %305 : vector<1x64xf32> to vector<16x64xf32>
    %326 = arith.addf %324, %325 : vector<16x64xf32>
    %c1_165 = arith.constant 1 : index
    %c0_166 = arith.constant 0 : index
    %c0_167 = arith.constant 0 : index
    %327 = vector.load %arg4[%c1_165, %c0_166, %c0_167] : memref<2x64x192xf32, #tpu.memory_space<vmem>>, vector<1x64x192xf32>
    %328 = vector.shape_cast %327 : vector<1x64x192xf32> to vector<64x192xf32>
    %cst_168 = arith.constant dense<0.000000e+00> : vector<16x192xf32>
    %329 = tpu.matmul %326, %328, %cst_168 {dimension_numbers = #tpu.dot_dimension_numbers<[1], [0], [0], [1], [0, 0, 1, 1], [], []>} : vector<16x64xf32>, vector<64x192xf32>, vector<16x192xf32> -> vector<16x192xf32>
    %c1_169 = arith.constant 1 : index
    %c0_170 = arith.constant 0 : index
    %c0_171 = arith.constant 0 : index
    %330 = vector.load %arg5[%c1_169, %c0_170, %c0_171] : memref<2x1x192xf32, #tpu.memory_space<vmem>>, vector<1x1x192xf32>
    %331 = vector.shape_cast %330 : vector<1x1x192xf32> to vector<1x192xf32>
    %332 = vector.broadcast %331 : vector<1x192xf32> to vector<16x192xf32>
    %333 = arith.addf %329, %332 : vector<16x192xf32>
    %334 = vector.extract_strided_slice %333 {offsets = [0, 0], sizes = [16, 8], strides = [1, 1]} : vector<16x192xf32> to vector<16x8xf32>
    %335 = vector.extract_strided_slice %333 {offsets = [0, 64], sizes = [16, 8], strides = [1, 1]} : vector<16x192xf32> to vector<16x8xf32>
    %336 = vector.extract_strided_slice %333 {offsets = [0, 128], sizes = [16, 8], strides = [1, 1]} : vector<16x192xf32> to vector<16x8xf32>
    %cst_172 = arith.constant dense<0.000000e+00> : vector<16x16xf32>
    %337 = tpu.matmul %334, %335, %cst_172 {dimension_numbers = #tpu.dot_dimension_numbers<[1], [1], [0], [0], [0, 0, 1, 0], [], []>} : vector<16x8xf32>, vector<16x8xf32>, vector<16x16xf32> -> vector<16x16xf32>
    %cst_173 = arith.constant 0.353553385 : f32
    %338 = vector.broadcast %cst_173 : f32 to vector<16x16xf32>
    %339 = arith.mulf %337, %338 : vector<16x16xf32>
    %c1_174 = arith.constant 1 : index
    %c0_175 = arith.constant 0 : index
    %c0_176 = arith.constant 0 : index
    %c0_177 = arith.constant 0 : index
    %c0_178 = arith.constant 0 : index
    %340 = vector.load %arg2[%c1_174, %c0_175, %c0_176, %c0_177, %c0_178] : memref<2x1x8x16x16xf32, #tpu.memory_space<vmem>>, vector<1x1x1x16x16xf32>
    %341 = vector.shape_cast %340 : vector<1x1x1x16x16xf32> to vector<16x16xf32>
    %342 = arith.addf %341, %339 : vector<16x16xf32>
    %cst_179 = arith.constant 0.000000e+00 : f32
    %343 = vector.broadcast %cst_179 : f32 to vector<1x16xf32>
    %344 = arith.cmpf oeq, %2, %343 : vector<1x16xf32>
    %cst_180 = arith.constant -1.000000e+09 : f32
    %345 = vector.shape_cast %344 : vector<1x16xi1> to vector<1x16xi1>
    %346 = vector.broadcast %345 : vector<1x16xi1> to vector<16x16xi1>
    %347 = vector.broadcast %cst_180 : f32 to vector<16x16xf32>
    %348 = arith.select %346, %347, %342 : vector<16x16xi1>, vector<16x16xf32>
    %cst_181 = arith.constant dense<0xFF800000> : vector<16xf32>
    %349 = vector.multi_reduction <maximumf>, %348, %cst_181 [1] : vector<16x16xf32> to vector<16xf32>
    %350 = vector.shape_cast %349 : vector<16xf32> to vector<16x1xf32>
    %351 = vector.broadcast %350 : vector<16x1xf32> to vector<16x16xf32>
    %352 = arith.subf %348, %351 : vector<16x16xf32>
    %353 = math.exp %352 : vector<16x16xf32>
    %cst_182 = arith.constant dense<0.000000e+00> : vector<16xf32>
    %354 = vector.multi_reduction <add>, %353, %cst_182 [1] : vector<16x16xf32> to vector<16xf32>
    %355 = vector.shape_cast %354 : vector<16xf32> to vector<16x1xf32>
    %356 = tpu.reciprocal %355 {approx = true} : vector<16x1xf32> -> vector<16x1xf32>
    %357 = vector.broadcast %356 : vector<16x1xf32> to vector<16x16xf32>
    %358 = arith.mulf %353, %357 : vector<16x16xf32>
    %cst_183 = arith.constant dense<0.000000e+00> : vector<16x8xf32>
    %359 = tpu.matmul %358, %336, %cst_183 {dimension_numbers = #tpu.dot_dimension_numbers<[1], [0], [0], [1], [0, 0, 1, 1], [], []>} : vector<16x16xf32>, vector<16x8xf32>, vector<16x8xf32> -> vector<16x8xf32>
    %c0_184 = arith.constant 0 : index
    %c0_185 = arith.constant 0 : index
    %360 = vector.load %arg19[%c0_184, %c0_185] : memref<16x64xf32, #tpu.memory_space<vmem>>, vector<16x8xf32>
    tpu.vector_store %arg19[%c0_184, %c0_185], %359 {strides = array<i32>} : memref<16x64xf32, #tpu.memory_space<vmem>>, vector<16x8xf32>,
    %361 = vector.extract_strided_slice %333 {offsets = [0, 8], sizes = [16, 8], strides = [1, 1]} : vector<16x192xf32> to vector<16x8xf32>
    %362 = vector.extract_strided_slice %333 {offsets = [0, 72], sizes = [16, 8], strides = [1, 1]} : vector<16x192xf32> to vector<16x8xf32>
    %363 = vector.extract_strided_slice %333 {offsets = [0, 136], sizes = [16, 8], strides = [1, 1]} : vector<16x192xf32> to vector<16x8xf32>
    %cst_186 = arith.constant dense<0.000000e+00> : vector<16x16xf32>
    %364 = tpu.matmul %361, %362, %cst_186 {dimension_numbers = #tpu.dot_dimension_numbers<[1], [1], [0], [0], [0, 0, 1, 0], [], []>} : vector<16x8xf32>, vector<16x8xf32>, vector<16x16xf32> -> vector<16x16xf32>
    %cst_187 = arith.constant 0.353553385 : f32
    %365 = vector.broadcast %cst_187 : f32 to vector<16x16xf32>
    %366 = arith.mulf %364, %365 : vector<16x16xf32>
    %c1_188 = arith.constant 1 : index
    %c0_189 = arith.constant 0 : index
    %c1_190 = arith.constant 1 : index
    %c0_191 = arith.constant 0 : index
    %c0_192 = arith.constant 0 : index
    %367 = vector.load %arg2[%c1_188, %c0_189, %c1_190, %c0_191, %c0_192] : memref<2x1x8x16x16xf32, #tpu.memory_space<vmem>>, vector<1x1x1x16x16xf32>
    %368 = vector.shape_cast %367 : vector<1x1x1x16x16xf32> to vector<16x16xf32>
    %369 = arith.addf %368, %366 : vector<16x16xf32>
    %cst_193 = arith.constant 0.000000e+00 : f32
    %370 = vector.broadcast %cst_193 : f32 to vector<1x16xf32>
    %371 = arith.cmpf oeq, %2, %370 : vector<1x16xf32>
    %cst_194 = arith.constant -1.000000e+09 : f32
    %372 = vector.shape_cast %371 : vector<1x16xi1> to vector<1x16xi1>
    %373 = vector.broadcast %372 : vector<1x16xi1> to vector<16x16xi1>
    %374 = vector.broadcast %cst_194 : f32 to vector<16x16xf32>
    %375 = arith.select %373, %374, %369 : vector<16x16xi1>, vector<16x16xf32>
    %cst_195 = arith.constant dense<0xFF800000> : vector<16xf32>
    %376 = vector.multi_reduction <maximumf>, %375, %cst_195 [1] : vector<16x16xf32> to vector<16xf32>
    %377 = vector.shape_cast %376 : vector<16xf32> to vector<16x1xf32>
    %378 = vector.broadcast %377 : vector<16x1xf32> to vector<16x16xf32>
    %379 = arith.subf %375, %378 : vector<16x16xf32>
    %380 = math.exp %379 : vector<16x16xf32>
    %cst_196 = arith.constant dense<0.000000e+00> : vector<16xf32>
    %381 = vector.multi_reduction <add>, %380, %cst_196 [1] : vector<16x16xf32> to vector<16xf32>
    %382 = vector.shape_cast %381 : vector<16xf32> to vector<16x1xf32>
    %383 = tpu.reciprocal %382 {approx = true} : vector<16x1xf32> -> vector<16x1xf32>
    %384 = vector.broadcast %383 : vector<16x1xf32> to vector<16x16xf32>
    %385 = arith.mulf %380, %384 : vector<16x16xf32>
    %cst_197 = arith.constant dense<0.000000e+00> : vector<16x8xf32>
    %386 = tpu.matmul %385, %363, %cst_197 {dimension_numbers = #tpu.dot_dimension_numbers<[1], [0], [0], [1], [0, 0, 1, 1], [], []>} : vector<16x16xf32>, vector<16x8xf32>, vector<16x8xf32> -> vector<16x8xf32>
    %c0_198 = arith.constant 0 : index
    %c8_199 = arith.constant 8 : index
    %387 = vector.load %arg19[%c0_198, %c8_199] : memref<16x64xf32, #tpu.memory_space<vmem>>, vector<16x8xf32>
    tpu.vector_store %arg19[%c0_198, %c8_199], %386 {strides = array<i32>} : memref<16x64xf32, #tpu.memory_space<vmem>>, vector<16x8xf32>,
    %388 = vector.extract_strided_slice %333 {offsets = [0, 16], sizes = [16, 8], strides = [1, 1]} : vector<16x192xf32> to vector<16x8xf32>
    %389 = vector.extract_strided_slice %333 {offsets = [0, 80], sizes = [16, 8], strides = [1, 1]} : vector<16x192xf32> to vector<16x8xf32>
    %390 = vector.extract_strided_slice %333 {offsets = [0, 144], sizes = [16, 8], strides = [1, 1]} : vector<16x192xf32> to vector<16x8xf32>
    %cst_200 = arith.constant dense<0.000000e+00> : vector<16x16xf32>
    %391 = tpu.matmul %388, %389, %cst_200 {dimension_numbers = #tpu.dot_dimension_numbers<[1], [1], [0], [0], [0, 0, 1, 0], [], []>} : vector<16x8xf32>, vector<16x8xf32>, vector<16x16xf32> -> vector<16x16xf32>
    %cst_201 = arith.constant 0.353553385 : f32
    %392 = vector.broadcast %cst_201 : f32 to vector<16x16xf32>
    %393 = arith.mulf %391, %392 : vector<16x16xf32>
    %c1_202 = arith.constant 1 : index
    %c0_203 = arith.constant 0 : index
    %c2_204 = arith.constant 2 : index
    %c0_205 = arith.constant 0 : index
    %c0_206 = arith.constant 0 : index
    %394 = vector.load %arg2[%c1_202, %c0_203, %c2_204, %c0_205, %c0_206] : memref<2x1x8x16x16xf32, #tpu.memory_space<vmem>>, vector<1x1x1x16x16xf32>
    %395 = vector.shape_cast %394 : vector<1x1x1x16x16xf32> to vector<16x16xf32>
    %396 = arith.addf %395, %393 : vector<16x16xf32>
    %cst_207 = arith.constant 0.000000e+00 : f32
    %397 = vector.broadcast %cst_207 : f32 to vector<1x16xf32>
    %398 = arith.cmpf oeq, %2, %397 : vector<1x16xf32>
    %cst_208 = arith.constant -1.000000e+09 : f32
    %399 = vector.shape_cast %398 : vector<1x16xi1> to vector<1x16xi1>
    %400 = vector.broadcast %399 : vector<1x16xi1> to vector<16x16xi1>
    %401 = vector.broadcast %cst_208 : f32 to vector<16x16xf32>
    %402 = arith.select %400, %401, %396 : vector<16x16xi1>, vector<16x16xf32>
    %cst_209 = arith.constant dense<0xFF800000> : vector<16xf32>
    %403 = vector.multi_reduction <maximumf>, %402, %cst_209 [1] : vector<16x16xf32> to vector<16xf32>
    %404 = vector.shape_cast %403 : vector<16xf32> to vector<16x1xf32>
    %405 = vector.broadcast %404 : vector<16x1xf32> to vector<16x16xf32>
    %406 = arith.subf %402, %405 : vector<16x16xf32>
    %407 = math.exp %406 : vector<16x16xf32>
    %cst_210 = arith.constant dense<0.000000e+00> : vector<16xf32>
    %408 = vector.multi_reduction <add>, %407, %cst_210 [1] : vector<16x16xf32> to vector<16xf32>
    %409 = vector.shape_cast %408 : vector<16xf32> to vector<16x1xf32>
    %410 = tpu.reciprocal %409 {approx = true} : vector<16x1xf32> -> vector<16x1xf32>
    %411 = vector.broadcast %410 : vector<16x1xf32> to vector<16x16xf32>
    %412 = arith.mulf %407, %411 : vector<16x16xf32>
    %cst_211 = arith.constant dense<0.000000e+00> : vector<16x8xf32>
    %413 = tpu.matmul %412, %390, %cst_211 {dimension_numbers = #tpu.dot_dimension_numbers<[1], [0], [0], [1], [0, 0, 1, 1], [], []>} : vector<16x16xf32>, vector<16x8xf32>, vector<16x8xf32> -> vector<16x8xf32>
    %c0_212 = arith.constant 0 : index
    %c16_213 = arith.constant 16 : index
    %414 = vector.load %arg19[%c0_212, %c16_213] : memref<16x64xf32, #tpu.memory_space<vmem>>, vector<16x8xf32>
    tpu.vector_store %arg19[%c0_212, %c16_213], %413 {strides = array<i32>} : memref<16x64xf32, #tpu.memory_space<vmem>>, vector<16x8xf32>,
    %415 = vector.extract_strided_slice %333 {offsets = [0, 24], sizes = [16, 8], strides = [1, 1]} : vector<16x192xf32> to vector<16x8xf32>
    %416 = vector.extract_strided_slice %333 {offsets = [0, 88], sizes = [16, 8], strides = [1, 1]} : vector<16x192xf32> to vector<16x8xf32>
    %417 = vector.extract_strided_slice %333 {offsets = [0, 152], sizes = [16, 8], strides = [1, 1]} : vector<16x192xf32> to vector<16x8xf32>
    %cst_214 = arith.constant dense<0.000000e+00> : vector<16x16xf32>
    %418 = tpu.matmul %415, %416, %cst_214 {dimension_numbers = #tpu.dot_dimension_numbers<[1], [1], [0], [0], [0, 0, 1, 0], [], []>} : vector<16x8xf32>, vector<16x8xf32>, vector<16x16xf32> -> vector<16x16xf32>
    %cst_215 = arith.constant 0.353553385 : f32
    %419 = vector.broadcast %cst_215 : f32 to vector<16x16xf32>
    %420 = arith.mulf %418, %419 : vector<16x16xf32>
    %c1_216 = arith.constant 1 : index
    %c0_217 = arith.constant 0 : index
    %c3_218 = arith.constant 3 : index
    %c0_219 = arith.constant 0 : index
    %c0_220 = arith.constant 0 : index
    %421 = vector.load %arg2[%c1_216, %c0_217, %c3_218, %c0_219, %c0_220] : memref<2x1x8x16x16xf32, #tpu.memory_space<vmem>>, vector<1x1x1x16x16xf32>
    %422 = vector.shape_cast %421 : vector<1x1x1x16x16xf32> to vector<16x16xf32>
    %423 = arith.addf %422, %420 : vector<16x16xf32>
    %cst_221 = arith.constant 0.000000e+00 : f32
    %424 = vector.broadcast %cst_221 : f32 to vector<1x16xf32>
    %425 = arith.cmpf oeq, %2, %424 : vector<1x16xf32>
    %cst_222 = arith.constant -1.000000e+09 : f32
    %426 = vector.shape_cast %425 : vector<1x16xi1> to vector<1x16xi1>
    %427 = vector.broadcast %426 : vector<1x16xi1> to vector<16x16xi1>
    %428 = vector.broadcast %cst_222 : f32 to vector<16x16xf32>
    %429 = arith.select %427, %428, %423 : vector<16x16xi1>, vector<16x16xf32>
    %cst_223 = arith.constant dense<0xFF800000> : vector<16xf32>
    %430 = vector.multi_reduction <maximumf>, %429, %cst_223 [1] : vector<16x16xf32> to vector<16xf32>
    %431 = vector.shape_cast %430 : vector<16xf32> to vector<16x1xf32>
    %432 = vector.broadcast %431 : vector<16x1xf32> to vector<16x16xf32>
    %433 = arith.subf %429, %432 : vector<16x16xf32>
    %434 = math.exp %433 : vector<16x16xf32>
    %cst_224 = arith.constant dense<0.000000e+00> : vector<16xf32>
    %435 = vector.multi_reduction <add>, %434, %cst_224 [1] : vector<16x16xf32> to vector<16xf32>
    %436 = vector.shape_cast %435 : vector<16xf32> to vector<16x1xf32>
    %437 = tpu.reciprocal %436 {approx = true} : vector<16x1xf32> -> vector<16x1xf32>
    %438 = vector.broadcast %437 : vector<16x1xf32> to vector<16x16xf32>
    %439 = arith.mulf %434, %438 : vector<16x16xf32>
    %cst_225 = arith.constant dense<0.000000e+00> : vector<16x8xf32>
    %440 = tpu.matmul %439, %417, %cst_225 {dimension_numbers = #tpu.dot_dimension_numbers<[1], [0], [0], [1], [0, 0, 1, 1], [], []>} : vector<16x16xf32>, vector<16x8xf32>, vector<16x8xf32> -> vector<16x8xf32>
    %c0_226 = arith.constant 0 : index
    %c24_227 = arith.constant 24 : index
    %441 = vector.load %arg19[%c0_226, %c24_227] : memref<16x64xf32, #tpu.memory_space<vmem>>, vector<16x8xf32>
    tpu.vector_store %arg19[%c0_226, %c24_227], %440 {strides = array<i32>} : memref<16x64xf32, #tpu.memory_space<vmem>>, vector<16x8xf32>,
    %442 = vector.extract_strided_slice %333 {offsets = [0, 32], sizes = [16, 8], strides = [1, 1]} : vector<16x192xf32> to vector<16x8xf32>
    %443 = vector.extract_strided_slice %333 {offsets = [0, 96], sizes = [16, 8], strides = [1, 1]} : vector<16x192xf32> to vector<16x8xf32>
    %444 = vector.extract_strided_slice %333 {offsets = [0, 160], sizes = [16, 8], strides = [1, 1]} : vector<16x192xf32> to vector<16x8xf32>
    %cst_228 = arith.constant dense<0.000000e+00> : vector<16x16xf32>
    %445 = tpu.matmul %442, %443, %cst_228 {dimension_numbers = #tpu.dot_dimension_numbers<[1], [1], [0], [0], [0, 0, 1, 0], [], []>} : vector<16x8xf32>, vector<16x8xf32>, vector<16x16xf32> -> vector<16x16xf32>
    %cst_229 = arith.constant 0.353553385 : f32
    %446 = vector.broadcast %cst_229 : f32 to vector<16x16xf32>
    %447 = arith.mulf %445, %446 : vector<16x16xf32>
    %c1_230 = arith.constant 1 : index
    %c0_231 = arith.constant 0 : index
    %c4_232 = arith.constant 4 : index
    %c0_233 = arith.constant 0 : index
    %c0_234 = arith.constant 0 : index
    %448 = vector.load %arg2[%c1_230, %c0_231, %c4_232, %c0_233, %c0_234] : memref<2x1x8x16x16xf32, #tpu.memory_space<vmem>>, vector<1x1x1x16x16xf32>
    %449 = vector.shape_cast %448 : vector<1x1x1x16x16xf32> to vector<16x16xf32>
    %450 = arith.addf %449, %447 : vector<16x16xf32>
    %cst_235 = arith.constant 0.000000e+00 : f32
    %451 = vector.broadcast %cst_235 : f32 to vector<1x16xf32>
    %452 = arith.cmpf oeq, %2, %451 : vector<1x16xf32>
    %cst_236 = arith.constant -1.000000e+09 : f32
    %453 = vector.shape_cast %452 : vector<1x16xi1> to vector<1x16xi1>
    %454 = vector.broadcast %453 : vector<1x16xi1> to vector<16x16xi1>
    %455 = vector.broadcast %cst_236 : f32 to vector<16x16xf32>
    %456 = arith.select %454, %455, %450 : vector<16x16xi1>, vector<16x16xf32>
    %cst_237 = arith.constant dense<0xFF800000> : vector<16xf32>
    %457 = vector.multi_reduction <maximumf>, %456, %cst_237 [1] : vector<16x16xf32> to vector<16xf32>
    %458 = vector.shape_cast %457 : vector<16xf32> to vector<16x1xf32>
    %459 = vector.broadcast %458 : vector<16x1xf32> to vector<16x16xf32>
    %460 = arith.subf %456, %459 : vector<16x16xf32>
    %461 = math.exp %460 : vector<16x16xf32>
    %cst_238 = arith.constant dense<0.000000e+00> : vector<16xf32>
    %462 = vector.multi_reduction <add>, %461, %cst_238 [1] : vector<16x16xf32> to vector<16xf32>
    %463 = vector.shape_cast %462 : vector<16xf32> to vector<16x1xf32>
    %464 = tpu.reciprocal %463 {approx = true} : vector<16x1xf32> -> vector<16x1xf32>
    %465 = vector.broadcast %464 : vector<16x1xf32> to vector<16x16xf32>
    %466 = arith.mulf %461, %465 : vector<16x16xf32>
    %cst_239 = arith.constant dense<0.000000e+00> : vector<16x8xf32>
    %467 = tpu.matmul %466, %444, %cst_239 {dimension_numbers = #tpu.dot_dimension_numbers<[1], [0], [0], [1], [0, 0, 1, 1], [], []>} : vector<16x16xf32>, vector<16x8xf32>, vector<16x8xf32> -> vector<16x8xf32>
    %c0_240 = arith.constant 0 : index
    %c32_241 = arith.constant 32 : index
    %468 = vector.load %arg19[%c0_240, %c32_241] : memref<16x64xf32, #tpu.memory_space<vmem>>, vector<16x8xf32>
    tpu.vector_store %arg19[%c0_240, %c32_241], %467 {strides = array<i32>} : memref<16x64xf32, #tpu.memory_space<vmem>>, vector<16x8xf32>,
    %469 = vector.extract_strided_slice %333 {offsets = [0, 40], sizes = [16, 8], strides = [1, 1]} : vector<16x192xf32> to vector<16x8xf32>
    %470 = vector.extract_strided_slice %333 {offsets = [0, 104], sizes = [16, 8], strides = [1, 1]} : vector<16x192xf32> to vector<16x8xf32>
    %471 = vector.extract_strided_slice %333 {offsets = [0, 168], sizes = [16, 8], strides = [1, 1]} : vector<16x192xf32> to vector<16x8xf32>
    %cst_242 = arith.constant dense<0.000000e+00> : vector<16x16xf32>
    %472 = tpu.matmul %469, %470, %cst_242 {dimension_numbers = #tpu.dot_dimension_numbers<[1], [1], [0], [0], [0, 0, 1, 0], [], []>} : vector<16x8xf32>, vector<16x8xf32>, vector<16x16xf32> -> vector<16x16xf32>
    %cst_243 = arith.constant 0.353553385 : f32
    %473 = vector.broadcast %cst_243 : f32 to vector<16x16xf32>
    %474 = arith.mulf %472, %473 : vector<16x16xf32>
    %c1_244 = arith.constant 1 : index
    %c0_245 = arith.constant 0 : index
    %c5_246 = arith.constant 5 : index
    %c0_247 = arith.constant 0 : index
    %c0_248 = arith.constant 0 : index
    %475 = vector.load %arg2[%c1_244, %c0_245, %c5_246, %c0_247, %c0_248] : memref<2x1x8x16x16xf32, #tpu.memory_space<vmem>>, vector<1x1x1x16x16xf32>
    %476 = vector.shape_cast %475 : vector<1x1x1x16x16xf32> to vector<16x16xf32>
    %477 = arith.addf %476, %474 : vector<16x16xf32>
    %cst_249 = arith.constant 0.000000e+00 : f32
    %478 = vector.broadcast %cst_249 : f32 to vector<1x16xf32>
    %479 = arith.cmpf oeq, %2, %478 : vector<1x16xf32>
    %cst_250 = arith.constant -1.000000e+09 : f32
    %480 = vector.shape_cast %479 : vector<1x16xi1> to vector<1x16xi1>
    %481 = vector.broadcast %480 : vector<1x16xi1> to vector<16x16xi1>
    %482 = vector.broadcast %cst_250 : f32 to vector<16x16xf32>
    %483 = arith.select %481, %482, %477 : vector<16x16xi1>, vector<16x16xf32>
    %cst_251 = arith.constant dense<0xFF800000> : vector<16xf32>
    %484 = vector.multi_reduction <maximumf>, %483, %cst_251 [1] : vector<16x16xf32> to vector<16xf32>
    %485 = vector.shape_cast %484 : vector<16xf32> to vector<16x1xf32>
    %486 = vector.broadcast %485 : vector<16x1xf32> to vector<16x16xf32>
    %487 = arith.subf %483, %486 : vector<16x16xf32>
    %488 = math.exp %487 : vector<16x16xf32>
    %cst_252 = arith.constant dense<0.000000e+00> : vector<16xf32>
    %489 = vector.multi_reduction <add>, %488, %cst_252 [1] : vector<16x16xf32> to vector<16xf32>
    %490 = vector.shape_cast %489 : vector<16xf32> to vector<16x1xf32>
    %491 = tpu.reciprocal %490 {approx = true} : vector<16x1xf32> -> vector<16x1xf32>
    %492 = vector.broadcast %491 : vector<16x1xf32> to vector<16x16xf32>
    %493 = arith.mulf %488, %492 : vector<16x16xf32>
    %cst_253 = arith.constant dense<0.000000e+00> : vector<16x8xf32>
    %494 = tpu.matmul %493, %471, %cst_253 {dimension_numbers = #tpu.dot_dimension_numbers<[1], [0], [0], [1], [0, 0, 1, 1], [], []>} : vector<16x16xf32>, vector<16x8xf32>, vector<16x8xf32> -> vector<16x8xf32>
    %c0_254 = arith.constant 0 : index
    %c40_255 = arith.constant 40 : index
    %495 = vector.load %arg19[%c0_254, %c40_255] : memref<16x64xf32, #tpu.memory_space<vmem>>, vector<16x8xf32>
    tpu.vector_store %arg19[%c0_254, %c40_255], %494 {strides = array<i32>} : memref<16x64xf32, #tpu.memory_space<vmem>>, vector<16x8xf32>,
    %496 = vector.extract_strided_slice %333 {offsets = [0, 48], sizes = [16, 8], strides = [1, 1]} : vector<16x192xf32> to vector<16x8xf32>
    %497 = vector.extract_strided_slice %333 {offsets = [0, 112], sizes = [16, 8], strides = [1, 1]} : vector<16x192xf32> to vector<16x8xf32>
    %498 = vector.extract_strided_slice %333 {offsets = [0, 176], sizes = [16, 8], strides = [1, 1]} : vector<16x192xf32> to vector<16x8xf32>
    %cst_256 = arith.constant dense<0.000000e+00> : vector<16x16xf32>
    %499 = tpu.matmul %496, %497, %cst_256 {dimension_numbers = #tpu.dot_dimension_numbers<[1], [1], [0], [0], [0, 0, 1, 0], [], []>} : vector<16x8xf32>, vector<16x8xf32>, vector<16x16xf32> -> vector<16x16xf32>
    %cst_257 = arith.constant 0.353553385 : f32
    %500 = vector.broadcast %cst_257 : f32 to vector<16x16xf32>
    %501 = arith.mulf %499, %500 : vector<16x16xf32>
    %c1_258 = arith.constant 1 : index
    %c0_259 = arith.constant 0 : index
    %c6_260 = arith.constant 6 : index
    %c0_261 = arith.constant 0 : index
    %c0_262 = arith.constant 0 : index
    %502 = vector.load %arg2[%c1_258, %c0_259, %c6_260, %c0_261, %c0_262] : memref<2x1x8x16x16xf32, #tpu.memory_space<vmem>>, vector<1x1x1x16x16xf32>
    %503 = vector.shape_cast %502 : vector<1x1x1x16x16xf32> to vector<16x16xf32>
    %504 = arith.addf %503, %501 : vector<16x16xf32>
    %cst_263 = arith.constant 0.000000e+00 : f32
    %505 = vector.broadcast %cst_263 : f32 to vector<1x16xf32>
    %506 = arith.cmpf oeq, %2, %505 : vector<1x16xf32>
    %cst_264 = arith.constant -1.000000e+09 : f32
    %507 = vector.shape_cast %506 : vector<1x16xi1> to vector<1x16xi1>
    %508 = vector.broadcast %507 : vector<1x16xi1> to vector<16x16xi1>
    %509 = vector.broadcast %cst_264 : f32 to vector<16x16xf32>
    %510 = arith.select %508, %509, %504 : vector<16x16xi1>, vector<16x16xf32>
    %cst_265 = arith.constant dense<0xFF800000> : vector<16xf32>
    %511 = vector.multi_reduction <maximumf>, %510, %cst_265 [1] : vector<16x16xf32> to vector<16xf32>
    %512 = vector.shape_cast %511 : vector<16xf32> to vector<16x1xf32>
    %513 = vector.broadcast %512 : vector<16x1xf32> to vector<16x16xf32>
    %514 = arith.subf %510, %513 : vector<16x16xf32>
    %515 = math.exp %514 : vector<16x16xf32>
    %cst_266 = arith.constant dense<0.000000e+00> : vector<16xf32>
    %516 = vector.multi_reduction <add>, %515, %cst_266 [1] : vector<16x16xf32> to vector<16xf32>
    %517 = vector.shape_cast %516 : vector<16xf32> to vector<16x1xf32>
    %518 = tpu.reciprocal %517 {approx = true} : vector<16x1xf32> -> vector<16x1xf32>
    %519 = vector.broadcast %518 : vector<16x1xf32> to vector<16x16xf32>
    %520 = arith.mulf %515, %519 : vector<16x16xf32>
    %cst_267 = arith.constant dense<0.000000e+00> : vector<16x8xf32>
    %521 = tpu.matmul %520, %498, %cst_267 {dimension_numbers = #tpu.dot_dimension_numbers<[1], [0], [0], [1], [0, 0, 1, 1], [], []>} : vector<16x16xf32>, vector<16x8xf32>, vector<16x8xf32> -> vector<16x8xf32>
    %c0_268 = arith.constant 0 : index
    %c48_269 = arith.constant 48 : index
    %522 = vector.load %arg19[%c0_268, %c48_269] : memref<16x64xf32, #tpu.memory_space<vmem>>, vector<16x8xf32>
    tpu.vector_store %arg19[%c0_268, %c48_269], %521 {strides = array<i32>} : memref<16x64xf32, #tpu.memory_space<vmem>>, vector<16x8xf32>,
    %523 = vector.extract_strided_slice %333 {offsets = [0, 56], sizes = [16, 8], strides = [1, 1]} : vector<16x192xf32> to vector<16x8xf32>
    %524 = vector.extract_strided_slice %333 {offsets = [0, 120], sizes = [16, 8], strides = [1, 1]} : vector<16x192xf32> to vector<16x8xf32>
    %525 = vector.extract_strided_slice %333 {offsets = [0, 184], sizes = [16, 8], strides = [1, 1]} : vector<16x192xf32> to vector<16x8xf32>
    %cst_270 = arith.constant dense<0.000000e+00> : vector<16x16xf32>
    %526 = tpu.matmul %523, %524, %cst_270 {dimension_numbers = #tpu.dot_dimension_numbers<[1], [1], [0], [0], [0, 0, 1, 0], [], []>} : vector<16x8xf32>, vector<16x8xf32>, vector<16x16xf32> -> vector<16x16xf32>
    %cst_271 = arith.constant 0.353553385 : f32
    %527 = vector.broadcast %cst_271 : f32 to vector<16x16xf32>
    %528 = arith.mulf %526, %527 : vector<16x16xf32>
    %c1_272 = arith.constant 1 : index
    %c0_273 = arith.constant 0 : index
    %c7_274 = arith.constant 7 : index
    %c0_275 = arith.constant 0 : index
    %c0_276 = arith.constant 0 : index
    %529 = vector.load %arg2[%c1_272, %c0_273, %c7_274, %c0_275, %c0_276] : memref<2x1x8x16x16xf32, #tpu.memory_space<vmem>>, vector<1x1x1x16x16xf32>
    %530 = vector.shape_cast %529 : vector<1x1x1x16x16xf32> to vector<16x16xf32>
    %531 = arith.addf %530, %528 : vector<16x16xf32>
    %cst_277 = arith.constant 0.000000e+00 : f32
    %532 = vector.broadcast %cst_277 : f32 to vector<1x16xf32>
    %533 = arith.cmpf oeq, %2, %532 : vector<1x16xf32>
    %cst_278 = arith.constant -1.000000e+09 : f32
    %534 = vector.shape_cast %533 : vector<1x16xi1> to vector<1x16xi1>
    %535 = vector.broadcast %534 : vector<1x16xi1> to vector<16x16xi1>
    %536 = vector.broadcast %cst_278 : f32 to vector<16x16xf32>
    %537 = arith.select %535, %536, %531 : vector<16x16xi1>, vector<16x16xf32>
    %cst_279 = arith.constant dense<0xFF800000> : vector<16xf32>
    %538 = vector.multi_reduction <maximumf>, %537, %cst_279 [1] : vector<16x16xf32> to vector<16xf32>
    %539 = vector.shape_cast %538 : vector<16xf32> to vector<16x1xf32>
    %540 = vector.broadcast %539 : vector<16x1xf32> to vector<16x16xf32>
    %541 = arith.subf %537, %540 : vector<16x16xf32>
    %542 = math.exp %541 : vector<16x16xf32>
    %cst_280 = arith.constant dense<0.000000e+00> : vector<16xf32>
    %543 = vector.multi_reduction <add>, %542, %cst_280 [1] : vector<16x16xf32> to vector<16xf32>
    %544 = vector.shape_cast %543 : vector<16xf32> to vector<16x1xf32>
    %545 = tpu.reciprocal %544 {approx = true} : vector<16x1xf32> -> vector<16x1xf32>
    %546 = vector.broadcast %545 : vector<16x1xf32> to vector<16x16xf32>
    %547 = arith.mulf %542, %546 : vector<16x16xf32>
    %cst_281 = arith.constant dense<0.000000e+00> : vector<16x8xf32>
    %548 = tpu.matmul %547, %525, %cst_281 {dimension_numbers = #tpu.dot_dimension_numbers<[1], [0], [0], [1], [0, 0, 1, 1], [], []>} : vector<16x16xf32>, vector<16x8xf32>, vector<16x8xf32> -> vector<16x8xf32>
    %c0_282 = arith.constant 0 : index
    %c56_283 = arith.constant 56 : index
    %549 = vector.load %arg19[%c0_282, %c56_283] : memref<16x64xf32, #tpu.memory_space<vmem>>, vector<16x8xf32>
    tpu.vector_store %arg19[%c0_282, %c56_283], %548 {strides = array<i32>} : memref<16x64xf32, #tpu.memory_space<vmem>>, vector<16x8xf32>,
    %c0_284 = arith.constant 0 : index
    %c0_285 = arith.constant 0 : index
    %550 = vector.load %arg19[%c0_284, %c0_285] : memref<16x64xf32, #tpu.memory_space<vmem>>, vector<16x64xf32>
    %c1_286 = arith.constant 1 : index
    %c0_287 = arith.constant 0 : index
    %c0_288 = arith.constant 0 : index
    %551 = vector.load %arg6[%c1_286, %c0_287, %c0_288] : memref<2x64x64xf32, #tpu.memory_space<vmem>>, vector<1x64x64xf32>
    %552 = vector.shape_cast %551 : vector<1x64x64xf32> to vector<64x64xf32>
    %cst_289 = arith.constant dense<0.000000e+00> : vector<16x64xf32>
    %553 = tpu.matmul %550, %552, %cst_289 {dimension_numbers = #tpu.dot_dimension_numbers<[1], [0], [0], [1], [0, 0, 1, 1], [], []>} : vector<16x64xf32>, vector<64x64xf32>, vector<16x64xf32> -> vector<16x64xf32>
    %554 = arith.addf %301, %553 : vector<16x64xf32>
    %c1_290 = arith.constant 1 : index
    %c0_291 = arith.constant 0 : index
    %c0_292 = arith.constant 0 : index
    %555 = vector.load %arg7[%c1_290, %c0_291, %c0_292] : memref<2x1x64xf32, #tpu.memory_space<vmem>>, vector<1x1x64xf32>
    %556 = vector.shape_cast %555 : vector<1x1x64xf32> to vector<1x64xf32>
    %557 = vector.broadcast %556 : vector<1x64xf32> to vector<16x64xf32>
    %558 = arith.addf %554, %557 : vector<16x64xf32>
    %c1_293 = arith.constant 1 : index
    %c0_294 = arith.constant 0 : index
    %c0_295 = arith.constant 0 : index
    %559 = vector.load %arg14[%c1_293, %c0_294, %c0_295] : memref<2x1x64xf32, #tpu.memory_space<vmem>>, vector<1x1x64xf32>
    %560 = vector.shape_cast %559 : vector<1x1x64xf32> to vector<1x64xf32>
    %c1_296 = arith.constant 1 : index
    %c0_297 = arith.constant 0 : index
    %c0_298 = arith.constant 0 : index
    %561 = vector.load %arg15[%c1_296, %c0_297, %c0_298] : memref<2x1x64xf32, #tpu.memory_space<vmem>>, vector<1x1x64xf32>
    %562 = vector.shape_cast %561 : vector<1x1x64xf32> to vector<1x64xf32>
    %cst_299 = arith.constant dense<0.000000e+00> : vector<16xf32>
    %563 = vector.multi_reduction <add>, %558, %cst_299 [1] : vector<16x64xf32> to vector<16xf32>
    %564 = vector.shape_cast %563 : vector<16xf32> to vector<16x1xf32>
    %cst_300 = arith.constant 6.400000e+01 : f32
    %565 = vector.broadcast %cst_300 : f32 to vector<16x1xf32>
    %566 = arith.divf %564, %565 : vector<16x1xf32>
    %567 = vector.broadcast %566 : vector<16x1xf32> to vector<16x64xf32>
    %568 = arith.subf %558, %567 : vector<16x64xf32>
    %569 = arith.mulf %568, %568 : vector<16x64xf32>
    %cst_301 = arith.constant dense<0.000000e+00> : vector<16xf32>
    %570 = vector.multi_reduction <add>, %569, %cst_301 [1] : vector<16x64xf32> to vector<16xf32>
    %571 = vector.shape_cast %570 : vector<16xf32> to vector<16x1xf32>
    %cst_302 = arith.constant 0.0158730168 : f32
    %572 = vector.broadcast %cst_302 : f32 to vector<16x1xf32>
    %573 = arith.mulf %571, %572 : vector<16x1xf32>
    %574 = math.sqrt %573 : vector<16x1xf32>
    %cst_303 = arith.constant 9.99999997E-7 : f32
    %575 = vector.broadcast %cst_303 : f32 to vector<16x1xf32>
    %576 = arith.addf %574, %575 : vector<16x1xf32>
    %577 = tpu.reciprocal %576 {approx = true} : vector<16x1xf32> -> vector<16x1xf32>
    %578 = vector.broadcast %577 : vector<16x1xf32> to vector<16x64xf32>
    %579 = arith.mulf %568, %578 : vector<16x64xf32>
    %580 = vector.broadcast %560 : vector<1x64xf32> to vector<16x64xf32>
    %581 = arith.mulf %580, %579 : vector<16x64xf32>
    %582 = vector.broadcast %562 : vector<1x64xf32> to vector<16x64xf32>
    %583 = arith.addf %581, %582 : vector<16x64xf32>
    %c1_304 = arith.constant 1 : index
    %c0_305 = arith.constant 0 : index
    %c0_306 = arith.constant 0 : index
    %584 = vector.load %arg8[%c1_304, %c0_305, %c0_306] : memref<2x64x128xf32, #tpu.memory_space<vmem>>, vector<1x64x128xf32>
    %585 = vector.shape_cast %584 : vector<1x64x128xf32> to vector<64x128xf32>
    %cst_307 = arith.constant dense<0.000000e+00> : vector<16x128xf32>
    %586 = tpu.matmul %583, %585, %cst_307 {dimension_numbers = #tpu.dot_dimension_numbers<[1], [0], [0], [1], [0, 0, 1, 1], [], []>} : vector<16x64xf32>, vector<64x128xf32>, vector<16x128xf32> -> vector<16x128xf32>
    %c1_308 = arith.constant 1 : index
    %c0_309 = arith.constant 0 : index
    %c0_310 = arith.constant 0 : index
    %587 = vector.load %arg9[%c1_308, %c0_309, %c0_310] : memref<2x1x128xf32, #tpu.memory_space<vmem>>, vector<1x1x128xf32>
    %588 = vector.shape_cast %587 : vector<1x1x128xf32> to vector<1x128xf32>
    %589 = vector.broadcast %588 : vector<1x128xf32> to vector<16x128xf32>
    %590 = arith.addf %586, %589 : vector<16x128xf32>
    %cst_311 = arith.constant 0.000000e+00 : f32
    %591 = vector.broadcast %cst_311 : f32 to vector<16x128xf32>
    %592 = arith.maximumf %590, %591 : vector<16x128xf32>
    %c1_312 = arith.constant 1 : index
    %c0_313 = arith.constant 0 : index
    %c0_314 = arith.constant 0 : index
    %593 = vector.load %arg10[%c1_312, %c0_313, %c0_314] : memref<2x128x64xf32, #tpu.memory_space<vmem>>, vector<1x128x64xf32>
    %594 = vector.shape_cast %593 : vector<1x128x64xf32> to vector<128x64xf32>
    %cst_315 = arith.constant dense<0.000000e+00> : vector<16x64xf32>
    %595 = tpu.matmul %592, %594, %cst_315 {dimension_numbers = #tpu.dot_dimension_numbers<[1], [0], [0], [1], [0, 0, 1, 1], [], []>} : vector<16x128xf32>, vector<128x64xf32>, vector<16x64xf32> -> vector<16x64xf32>
    %596 = arith.addf %558, %595 : vector<16x64xf32>
    %c1_316 = arith.constant 1 : index
    %c0_317 = arith.constant 0 : index
    %c0_318 = arith.constant 0 : index
    %597 = vector.load %arg11[%c1_316, %c0_317, %c0_318] : memref<2x1x64xf32, #tpu.memory_space<vmem>>, vector<1x1x64xf32>
    %598 = vector.shape_cast %597 : vector<1x1x64xf32> to vector<1x64xf32>
    %599 = vector.broadcast %598 : vector<1x64xf32> to vector<16x64xf32>
    %600 = arith.addf %596, %599 : vector<16x64xf32>
    %c0_319 = arith.constant 0 : index
    %c0_320 = arith.constant 0 : index
    %601 = vector.load %arg16[%c0_319, %c0_320] : memref<1x64xf32, #tpu.memory_space<vmem>>, vector<1x64xf32>
    %c0_321 = arith.constant 0 : index
    %c0_322 = arith.constant 0 : index
    %602 = vector.load %arg17[%c0_321, %c0_322] : memref<1x64xf32, #tpu.memory_space<vmem>>, vector<1x64xf32>
    %cst_323 = arith.constant dense<0.000000e+00> : vector<16xf32>
    %603 = vector.multi_reduction <add>, %600, %cst_323 [1] : vector<16x64xf32> to vector<16xf32>
    %604 = vector.shape_cast %603 : vector<16xf32> to vector<16x1xf32>
    %cst_324 = arith.constant 6.400000e+01 : f32
    %605 = vector.broadcast %cst_324 : f32 to vector<16x1xf32>
    %606 = arith.divf %604, %605 : vector<16x1xf32>
    %607 = vector.broadcast %606 : vector<16x1xf32> to vector<16x64xf32>
    %608 = arith.subf %600, %607 : vector<16x64xf32>
    %609 = arith.mulf %608, %608 : vector<16x64xf32>
    %cst_325 = arith.constant dense<0.000000e+00> : vector<16xf32>
    %610 = vector.multi_reduction <add>, %609, %cst_325 [1] : vector<16x64xf32> to vector<16xf32>
    %611 = vector.shape_cast %610 : vector<16xf32> to vector<16x1xf32>
    %cst_326 = arith.constant 0.0158730168 : f32
    %612 = vector.broadcast %cst_326 : f32 to vector<16x1xf32>
    %613 = arith.mulf %611, %612 : vector<16x1xf32>
    %614 = math.sqrt %613 : vector<16x1xf32>
    %cst_327 = arith.constant 9.99999997E-7 : f32
    %615 = vector.broadcast %cst_327 : f32 to vector<16x1xf32>
    %616 = arith.addf %614, %615 : vector<16x1xf32>
    %617 = tpu.reciprocal %616 {approx = true} : vector<16x1xf32> -> vector<16x1xf32>
    %618 = vector.broadcast %617 : vector<16x1xf32> to vector<16x64xf32>
    %619 = arith.mulf %608, %618 : vector<16x64xf32>
    %620 = vector.broadcast %601 : vector<1x64xf32> to vector<16x64xf32>
    %621 = arith.mulf %620, %619 : vector<16x64xf32>
    %622 = vector.broadcast %602 : vector<1x64xf32> to vector<16x64xf32>
    %623 = arith.addf %621, %622 : vector<16x64xf32>
    %c0_328 = arith.constant 0 : index
    %c0_329 = arith.constant 0 : index
    %624 = vector.load %arg18[%c0_328, %c0_329] : memref<16x64xf32, #tpu.memory_space<vmem>>, vector<16x64xf32>
    tpu.vector_store %arg18[%c0_328, %c0_329], %623 {strides = array<i32>} : memref<16x64xf32, #tpu.memory_space<vmem>>, vector<16x64xf32>,
    return
  }
  func.func @transform_0(%arg0: i32) -> (i32, i32) {
    %c0_i32 = arith.constant 0 : i32
    %c0_i32_0 = arith.constant 0 : i32
    return %arg0, %c0_i32 : i32, i32
  }
  func.func @transform_1(%arg0: i32) -> (i32, i32, i32, i32, i32) {
    %c0_i32 = arith.constant 0 : i32
    %c0_i32_0 = arith.constant 0 : i32
    %c0_i32_1 = arith.constant 0 : i32
    %c0_i32_2 = arith.constant 0 : i32
    %c0_i32_3 = arith.constant 0 : i32
    return %c0_i32, %arg0, %c0_i32_0, %c0_i32_1, %c0_i32_2 : i32, i32, i32, i32, i32
  }
  func.func @transform_2(%arg0: i32) -> (i32, i32, i32) {
    %c0_i32 = arith.constant 0 : i32
    %c0_i32_0 = arith.constant 0 : i32
    %c0_i32_1 = arith.constant 0 : i32
    return %arg0, %c0_i32, %c0_i32_0 : i32, i32, i32
  }
  func.func @transform_3(%arg0: i32) -> (i32, i32, i32) {
    %c0_i32 = arith.constant 0 : i32
    %c0_i32_0 = arith.constant 0 : i32
    %c0_i32_1 = arith.constant 0 : i32
    %c0_i32_2 = arith.constant 0 : i32
    return %c0_i32, %c0_i32_0, %c0_i32_1 : i32, i32, i32
  }
  func.func @transform_4(%arg0: i32) -> (i32, i32, i32) {
    %c0_i32 = arith.constant 0 : i32
    %c0_i32_0 = arith.constant 0 : i32
    %c0_i32_1 = arith.constant 0 : i32
    %c0_i32_2 = arith.constant 0 : i32
    return %c0_i32, %c0_i32_0, %c0_i32_1 : i32, i32, i32
  }
  func.func @transform_5(%arg0: i32) -> (i32, i32, i32) {
    %c0_i32 = arith.constant 0 : i32
    %c0_i32_0 = arith.constant 0 : i32
    %c0_i32_1 = arith.constant 0 : i32
    %c0_i32_2 = arith.constant 0 : i32
    return %c0_i32, %c0_i32_0, %c0_i32_1 : i32, i32, i32
  }
  func.func @transform_6(%arg0: i32) -> (i32, i32, i32) {
    %c0_i32 = arith.constant 0 : i32
    %c0_i32_0 = arith.constant 0 : i32
    %c0_i32_1 = arith.constant 0 : i32
    %c0_i32_2 = arith.constant 0 : i32
    return %c0_i32, %c0_i32_0, %c0_i32_1 : i32, i32, i32
  }
  func.func @transform_7(%arg0: i32) -> (i32, i32, i32) {
    %c0_i32 = arith.constant 0 : i32
    %c0_i32_0 = arith.constant 0 : i32
    %c0_i32_1 = arith.constant 0 : i32
    %c0_i32_2 = arith.constant 0 : i32
    return %c0_i32, %c0_i32_0, %c0_i32_1 : i32, i32, i32
  }
  func.func @transform_8(%arg0: i32) -> (i32, i32, i32) {
    %c0_i32 = arith.constant 0 : i32
    %c0_i32_0 = arith.constant 0 : i32
    %c0_i32_1 = arith.constant 0 : i32
    %c0_i32_2 = arith.constant 0 : i32
    return %c0_i32, %c0_i32_0, %c0_i32_1 : i32, i32, i32
  }
  func.func @transform_9(%arg0: i32) -> (i32, i32, i32) {
    %c0_i32 = arith.constant 0 : i32
    %c0_i32_0 = arith.constant 0 : i32
    %c0_i32_1 = arith.constant 0 : i32
    %c0_i32_2 = arith.constant 0 : i32
    return %c0_i32, %c0_i32_0, %c0_i32_1 : i32, i32, i32
  }
  func.func @transform_10(%arg0: i32) -> (i32, i32, i32) {
    %c0_i32 = arith.constant 0 : i32
    %c0_i32_0 = arith.constant 0 : i32
    %c0_i32_1 = arith.constant 0 : i32
    %c0_i32_2 = arith.constant 0 : i32
    return %c0_i32, %c0_i32_0, %c0_i32_1 : i32, i32, i32
  }
  func.func @transform_11(%arg0: i32) -> (i32, i32, i32) {
    %c0_i32 = arith.constant 0 : i32
    %c0_i32_0 = arith.constant 0 : i32
    %c0_i32_1 = arith.constant 0 : i32
    %c0_i32_2 = arith.constant 0 : i32
    return %c0_i32, %c0_i32_0, %c0_i32_1 : i32, i32, i32
  }
  func.func @transform_12(%arg0: i32) -> (i32, i32, i32) {
    %c0_i32 = arith.constant 0 : i32
    %c0_i32_0 = arith.constant 0 : i32
    %c0_i32_1 = arith.constant 0 : i32
    %c0_i32_2 = arith.constant 0 : i32
    return %c0_i32, %c0_i32_0, %c0_i32_1 : i32, i32, i32
  }
  func.func @transform_13(%arg0: i32) -> (i32, i32, i32) {
    %c0_i32 = arith.constant 0 : i32
    %c0_i32_0 = arith.constant 0 : i32
    %c0_i32_1 = arith.constant 0 : i32
    %c0_i32_2 = arith.constant 0 : i32
    return %c0_i32, %c0_i32_0, %c0_i32_1 : i32, i32, i32
  }
  func.func @transform_14(%arg0: i32) -> (i32, i32, i32) {
    %c0_i32 = arith.constant 0 : i32
    %c0_i32_0 = arith.constant 0 : i32
    %c0_i32_1 = arith.constant 0 : i32
    %c0_i32_2 = arith.constant 0 : i32
    return %c0_i32, %c0_i32_0, %c0_i32_1 : i32, i32, i32
  }
  func.func @transform_15(%arg0: i32) -> (i32, i32) {
    %c0_i32 = arith.constant 0 : i32
    %c0_i32_0 = arith.constant 0 : i32
    %c0_i32_1 = arith.constant 0 : i32
    return %c0_i32, %c0_i32_0 : i32, i32
  }
  func.func @transform_16(%arg0: i32) -> (i32, i32) {
    %c0_i32 = arith.constant 0 : i32
    %c0_i32_0 = arith.constant 0 : i32
    %c0_i32_1 = arith.constant 0 : i32
    return %c0_i32, %c0_i32_0 : i32, i32
  }
  func.func @transform_17(%arg0: i32) -> (i32, i32) {
    %c0_i32 = arith.constant 0 : i32
    %c0_i32_0 = arith.constant 0 : i32
    return %arg0, %c0_i32 : i32, i32
  }
}

</mosaic_0001>

<bundles_post_ra>
// kernel: box_encoder_forward.2
= control target key start
LH: loop header
LB: loop body
LE: loop exit
PB: predicated region body
PF: predicated region fallthrough
CT: control target
= control target key end

     0   :  { %vm93_vm0 = vcmask 523264   ;;  %vm927_vm1 = vcmask 130048   ;;  %s2029_s1 = inlined_call_operand.vmem [shape: f32[64,16], index: 1, kind: input, shape index: {}]   ;;  %s2030_s0 = inlined_call_operand.vmem [shape: f32[512,64], index: 0, kind: input, shape index: {}]   ;;  %s2031_s2 = inlined_call_operand.vmem [shape: f32[1,16], index: 2, kind: input, shape index: {}]   ;;  %s2032_s3 = inlined_call_operand.vmem [shape: f32[512,16], index: 3, kind: output, shape index: {}]  }
   0x1   :  { %v85_v0 = vld [vmem:[%s2029_s1 + $0x38] sm:$0xff]  ;;  %v84_v1 = vld [vmem:[%s2029_s1 + $0x30] sm:$0xff]  ;;  %v83_v2 = vld [vmem:[%s2029_s1 + $0x28] sm:$0xff] }
   0x2   :  { %1133 = vmatprep.subr.mxu0 %v85_v0  ;;  %1245 = vmatprep.subr.mxu1 %v85_v0  ;;  %v82_v3 = vld [vmem:[%s2029_s1 + $0x20] sm:$0xff]  ;;  %v81_v4 = vld [vmem:[%s2029_s1 + $0x18] sm:$0xff]  ;;  %v80_v5 = vld [vmem:[%s2029_s1 + $0x10] sm:$0xff] }
   0x3   :  { %1134 = vmatpush3.msra.mxu0 %v85_v0  ;;  %1253 = vmatpush3.msra.mxu1 %v85_v0  ;;  %v79_v6 = vld [vmem:[%s2029_s1 + $0x8] sm:$0xff]  ;;  %v78_v7 = vld [vmem:[%s2029_s1] sm:$0xff]  ;;  %v16_v12 = vld [vmem:[%s2030_s0 + $0x10] sm:$0xff] }
   0x4   :  { %1135 = vmatprep.subr.mxu0 %v84_v1  ;;  %1246 = vmatprep.subr.mxu1 %v84_v1  ;;  %v14_v8 = vld [vmem:[%s2030_s0] sm:$0xff]  ;;  %v15_v10 = vld [vmem:[%s2030_s0 + $0x8] sm:$0xff]  ;;  %v48_v13 = vld [vmem:[%s2030_s0 + $0x110] sm:$0xff] }
   0x5   :  { %1136 = vmatpush3.msra.mxu0 %v84_v1  ;;  %1254 = vmatpush3.msra.mxu1 %v84_v1  ;;  %v46_v9 = vld [vmem:[%s2030_s0 + $0x100] sm:$0xff]  ;;  %v47_v11 = vld [vmem:[%s2030_s0 + $0x108] sm:$0xff]  ;;  %v17_v14 = vld [vmem:[%s2030_s0 + $0x18] sm:$0xff] }
   0x6   :  { %1137 = vmatprep.subr.mxu0 %v83_v2  ;;  %1247 = vmatprep.subr.mxu1 %v83_v2  ;;  %v49_v15 = vld [vmem:[%s2030_s0 + $0x118] sm:$0xff]  ;;  %v18_v16 = vld [vmem:[%s2030_s0 + $0x20] sm:$0xff]  ;;  %v19_v18 = vld [vmem:[%s2030_s0 + $0x28] sm:$0xff] }
   0x7   :  { %1138 = vmatpush3.msra.mxu0 %v83_v2  ;;  %1255 = vmatpush3.msra.mxu1 %v83_v2  ;;  %v50_v17 = vld [vmem:[%s2030_s0 + $0x120] sm:$0xff]  ;;  %v51_v19 = vld [vmem:[%s2030_s0 + $0x128] sm:$0xff]  ;;  %v20_v20 = vld [vmem:[%s2030_s0 + $0x30] sm:$0xff] }
   0x8   :  { %1139 = vmatprep.subr.mxu0 %v82_v3  ;;  %1248 = vmatprep.subr.mxu1 %v82_v3  ;;  %v52_v21 = vld [vmem:[%s2030_s0 + $0x130] sm:$0xff]  ;;  %v21_v22 = vld [vmem:[%s2030_s0 + $0x38] sm:$0xff]  ;;  %v22_v24 = vld [vmem:[%s2030_s0 + $0x40] sm:$0xff] }
   0x9   :  { %1140 = vmatpush3.msra.mxu0 %v82_v3  ;;  %1256 = vmatpush3.msra.mxu1 %v82_v3  ;;  %v53_v23 = vld [vmem:[%s2030_s0 + $0x138] sm:$0xff]  ;;  %v54_v25 = vld [vmem:[%s2030_s0 + $0x140] sm:$0xff]  ;;  %v23_v26 = vld [vmem:[%s2030_s0 + $0x48] sm:$0xff] }
   0xa   :  { %1141 = vmatprep.subr.mxu0 %v81_v4  ;;  %1249 = vmatprep.subr.mxu1 %v81_v4  ;;  %v55_v27 = vld [vmem:[%s2030_s0 + $0x148] sm:$0xff]  ;;  %v24_v28 = vld [vmem:[%s2030_s0 + $0x50] sm:$0xff]  ;;  %v25_v30 = vld [vmem:[%s2030_s0 + $0x58] sm:$0xff] }
   0xb   :  { %1142 = vmatpush3.msra.mxu0 %v81_v4  ;;  %1257 = vmatpush3.msra.mxu1 %v81_v4  ;;  %v56_v29 = vld [vmem:[%s2030_s0 + $0x150] sm:$0xff]  ;;  %v57_v31 = vld [vmem:[%s2030_s0 + $0x158] sm:$0xff]  ;;  %v26_v32 = vld [vmem:[%s2030_s0 + $0x60] sm:$0xff] }
   0xc   :  { %1143 = vmatprep.subr.mxu0 %v80_v5  ;;  %1250 = vmatprep.subr.mxu1 %v80_v5  ;;  %v58_v33 = vld [vmem:[%s2030_s0 + $0x160] sm:$0xff]  ;;  %v27_v34 = vld [vmem:[%s2030_s0 + $0x68] sm:$0xff]  ;;  %v28_v36 = vld [vmem:[%s2030_s0 + $0x70] sm:$0xff] }
   0xd   :  { %1144 = vmatpush3.msra.mxu0 %v80_v5  ;;  %1258 = vmatpush3.msra.mxu1 %v80_v5  ;;  %v59_v35 = vld [vmem:[%s2030_s0 + $0x168] sm:$0xff]  ;;  %v60_v37 = vld [vmem:[%s2030_s0 + $0x170] sm:$0xff]  ;;  %v29_v38 = vld [vmem:[%s2030_s0 + $0x78] sm:$0xff] }
   0xe   :  { %1145 = vmatprep.subr.mxu0 %v79_v6  ;;  %1251 = vmatprep.subr.mxu1 %v79_v6  ;;  %v61_v39 = vld [vmem:[%s2030_s0 + $0x178] sm:$0xff]  ;;  %v30_v40 = vld [vmem:[%s2030_s0 + $0x80] sm:$0xff]  ;;  %v31_v42 = vld [vmem:[%s2030_s0 + $0x88] sm:$0xff] }
   0xf   :  { %1146 = vmatpush3.msra.mxu0 %v79_v6  ;;  %1259 = vmatpush3.msra.mxu1 %v79_v6  ;;  %v62_v41 = vld [vmem:[%s2030_s0 + $0x180] sm:$0xff]  ;;  %v63_v43 = vld [vmem:[%s2030_s0 + $0x188] sm:$0xff]  ;;  %v32_v44 = vld [vmem:[%s2030_s0 + $0x90] sm:$0xff] }
  0x10   :  { %1147 = vmatprep.subr.mxu0 %v78_v7  ;;  %1252 = vmatprep.subr.mxu1 %v78_v7  ;;  %v64_v45 = vld [vmem:[%s2030_s0 + $0x190] sm:$0xff]  ;;  %v33_v46 = vld [vmem:[%s2030_s0 + $0x98] sm:$0xff]  ;;  %v34_v48 = vld [vmem:[%s2030_s0 + $0xa0] sm:$0xff] }
  0x11   :  { %1148 = vmatpush3.msra.mxu0 %v78_v7  ;;  %1260 = vmatpush3.msra.mxu1 %v78_v7  ;;  %v65_v47 = vld [vmem:[%s2030_s0 + $0x198] sm:$0xff]  ;;  %v66_v49 = vld [vmem:[%s2030_s0 + $0x1a0] sm:$0xff]  ;;  %v35_v50 = vld [vmem:[%s2030_s0 + $0xa8] sm:$0xff] }
  0x12   :  { %1149 = vmatprep.mubr.msk.f32.mxu0 %vm93_vm0, %v14_v8  ;;  %1197 = vmatprep.mubr.msk.f32.mxu1 %vm93_vm0, %v46_v9  ;;  %v67_v51 = vld [vmem:[%s2030_s0 + $0x1a8] sm:$0xff]  ;;  %v36_v52 = vld [vmem:[%s2030_s0 + $0xb0] sm:$0xff]  ;;  %v37_v54 = vld [vmem:[%s2030_s0 + $0xb8] sm:$0xff] }
  0x13   :  { %1150 = vmatmul.mubr.msk.f32.vlgmr.msra.gmra.mxu0 %vm93_vm0, %v15_v10  ;;  %1198 = vmatmul.mubr.msk.f32.vlgmr.msra.gmra.mxu1 %vm93_vm0, %v47_v11  ;;  %v68_v53 = vld [vmem:[%s2030_s0 + $0x1b0] sm:$0xff]  ;;  %v69_v55 = vld [vmem:[%s2030_s0 + $0x1b8] sm:$0xff]  ;;  %v38_v56 = vld [vmem:[%s2030_s0 + $0xc0] sm:$0xff] }
  0x14   :  { %1152 = vmatprep.mubr.msk.f32.mxu0 %vm93_vm0, %v16_v12  ;;  %1200 = vmatprep.mubr.msk.f32.mxu1 %vm93_vm0, %v48_v13  ;;  %v70_v57 = vld [vmem:[%s2030_s0 + $0x1c0] sm:$0xff]  ;;  %v39_v58 = vld [vmem:[%s2030_s0 + $0xc8] sm:$0xff]  ;;  %v40_v60 = vld [vmem:[%s2030_s0 + $0xd0] sm:$0xff] }
  0x15   :  { %v71_v59 = vld [vmem:[%s2030_s0 + $0x1c8] sm:$0xff]  ;;  %v72_v61 = vld [vmem:[%s2030_s0 + $0x1d0] sm:$0xff]  ;;  %v41_v62 = vld [vmem:[%s2030_s0 + $0xd8] sm:$0xff] }
  0x16   :  { %v73_v63 = vld [vmem:[%s2030_s0 + $0x1d8] sm:$0xff]  ;;  %v42_v0 = vld [vmem:[%s2030_s0 + $0xe0] sm:$0xff]  ;;  %v43_v2 = vld [vmem:[%s2030_s0 + $0xe8] sm:$0xff] }
  0x17   :  { %1153 = vmatmul.mubr.msk.f32.gmra.mxu0 %vm93_vm0, %v17_v14  ;;  %1201 = vmatmul.mubr.msk.f32.gmra.mxu1 %vm93_vm0, %v49_v15  ;;  %v74_v1 = vld [vmem:[%s2030_s0 + $0x1e0] sm:$0xff]  ;;  %v75_v3 = vld [vmem:[%s2030_s0 + $0x1e8] sm:$0xff]  ;;  %v44_v4 = vld [vmem:[%s2030_s0 + $0xf0] sm:$0xff] }
  0x18   :  { %1155 = vmatprep.mubr.msk.f32.mxu0 %vm93_vm0, %v18_v16  ;;  %1203 = vmatprep.mubr.msk.f32.mxu1 %vm93_vm0, %v50_v17  ;;  %v76_v5 = vld [vmem:[%s2030_s0 + $0x1f0] sm:$0xff]  ;;  %v45_v6 = vld [vmem:[%s2030_s0 + $0xf8] sm:$0xff]  ;;  %v1692_v8 = vld [vmem:[%s2031_s2] ss:$0 sm:$0xff] }
  0x19   :  { %v77_v7 = vld [vmem:[%s2030_s0 + $0x1f8] sm:$0xff] }
  0x1b   :  { %1156 = vmatmul.mubr.msk.f32.gmra.mxu0 %vm93_vm0, %v19_v18  ;;  %1204 = vmatmul.mubr.msk.f32.gmra.mxu1 %vm93_vm0, %v51_v19 }
  0x1c   :  { %1158 = vmatprep.mubr.msk.f32.mxu0 %vm93_vm0, %v20_v20  ;;  %1206 = vmatprep.mubr.msk.f32.mxu1 %vm93_vm0, %v52_v21 }
  0x1f   :  { %1159 = vmatmul.mubr.msk.f32.gmra.mxu0 %vm93_vm0, %v21_v22  ;;  %1207 = vmatmul.mubr.msk.f32.gmra.mxu1 %vm93_vm0, %v53_v23 }
  0x20   :  { %1161 = vmatprep.mubr.msk.f32.mxu0 %vm93_vm0, %v22_v24  ;;  %1209 = vmatprep.mubr.msk.f32.mxu1 %vm93_vm0, %v54_v25 }
  0x23   :  { %1162 = vmatmul.mubr.msk.f32.gmra.mxu0 %vm93_vm0, %v23_v26  ;;  %1210 = vmatmul.mubr.msk.f32.gmra.mxu1 %vm93_vm0, %v55_v27 }
  0x24   :  { %1164 = vmatprep.mubr.msk.f32.mxu0 %vm93_vm0, %v24_v28  ;;  %1212 = vmatprep.mubr.msk.f32.mxu1 %vm93_vm0, %v56_v29 }
  0x27   :  { %1165 = vmatmul.mubr.msk.f32.gmra.mxu0 %vm93_vm0, %v25_v30  ;;  %1213 = vmatmul.mubr.msk.f32.gmra.mxu1 %vm93_vm0, %v57_v31 }
  0x28   :  { %1167 = vmatprep.mubr.msk.f32.mxu0 %vm93_vm0, %v26_v32  ;;  %1215 = vmatprep.mubr.msk.f32.mxu1 %vm93_vm0, %v58_v33 }
  0x2b   :  { %1168 = vmatmul.mubr.msk.f32.gmra.mxu0 %vm93_vm0, %v27_v34  ;;  %1216 = vmatmul.mubr.msk.f32.gmra.mxu1 %vm93_vm0, %v59_v35 }
  0x2c   :  { %1170 = vmatprep.mubr.msk.f32.mxu0 %vm93_vm0, %v28_v36  ;;  %1218 = vmatprep.mubr.msk.f32.mxu1 %vm93_vm0, %v60_v37 }
  0x2f   :  { %1171 = vmatmul.mubr.msk.f32.gmra.mxu0 %vm93_vm0, %v29_v38  ;;  %1219 = vmatmul.mubr.msk.f32.gmra.mxu1 %vm93_vm0, %v61_v39 }
  0x30   :  { %1173 = vmatprep.mubr.msk.f32.mxu0 %vm93_vm0, %v30_v40  ;;  %1221 = vmatprep.mubr.msk.f32.mxu1 %vm93_vm0, %v62_v41 }
  0x33   :  { %1174 = vmatmul.mubr.msk.f32.gmra.mxu0 %vm93_vm0, %v31_v42  ;;  %1222 = vmatmul.mubr.msk.f32.gmra.mxu1 %vm93_vm0, %v63_v43 }
  0x34   :  { %1176 = vmatprep.mubr.msk.f32.mxu0 %vm93_vm0, %v32_v44  ;;  %1224 = vmatprep.mubr.msk.f32.mxu1 %vm93_vm0, %v64_v45 }
  0x37   :  { %1177 = vmatmul.mubr.msk.f32.gmra.mxu0 %vm93_vm0, %v33_v46  ;;  %1225 = vmatmul.mubr.msk.f32.gmra.mxu1 %vm93_vm0, %v65_v47 }
  0x38   :  { %1179 = vmatprep.mubr.msk.f32.mxu0 %vm93_vm0, %v34_v48  ;;  %1227 = vmatprep.mubr.msk.f32.mxu1 %vm93_vm0, %v66_v49 }
  0x3b   :  { %1180 = vmatmul.mubr.msk.f32.gmra.mxu0 %vm93_vm0, %v35_v50  ;;  %1228 = vmatmul.mubr.msk.f32.gmra.mxu1 %vm93_vm0, %v67_v51 }
  0x3c   :  { %1182 = vmatprep.mubr.msk.f32.mxu0 %vm93_vm0, %v36_v52  ;;  %1230 = vmatprep.mubr.msk.f32.mxu1 %vm93_vm0, %v68_v53 }
  0x3f   :  { %1183 = vmatmul.mubr.msk.f32.gmra.mxu0 %vm93_vm0, %v37_v54  ;;  %1231 = vmatmul.mubr.msk.f32.gmra.mxu1 %vm93_vm0, %v69_v55 }
  0x40   :  { %1185 = vmatprep.mubr.msk.f32.mxu0 %vm93_vm0, %v38_v56  ;;  %1233 = vmatprep.mubr.msk.f32.mxu1 %vm93_vm0, %v70_v57 }
  0x43   :  { %1186 = vmatmul.mubr.msk.f32.gmra.mxu0 %vm93_vm0, %v39_v58  ;;  %1234 = vmatmul.mubr.msk.f32.gmra.mxu1 %vm93_vm0, %v71_v59 }
  0x44   :  { %1188 = vmatprep.mubr.msk.f32.mxu0 %vm93_vm0, %v40_v60  ;;  %1236 = vmatprep.mubr.msk.f32.mxu1 %vm93_vm0, %v72_v61 }
  0x47   :  { %1189 = vmatmul.mubr.msk.f32.gmra.mxu0 %vm93_vm0, %v41_v62  ;;  %1237 = vmatmul.mubr.msk.f32.gmra.mxu1 %vm93_vm0, %v73_v63 }
  0x48   :  { %1191 = vmatprep.mubr.msk.f32.mxu0 %vm93_vm0, %v42_v0  ;;  %1239 = vmatprep.mubr.msk.f32.mxu1 %vm93_vm0, %v74_v1 }
  0x4b   :  { %1192 = vmatmul.mubr.msk.f32.gmra.mxu0 %vm93_vm0, %v43_v2  ;;  %1240 = vmatmul.mubr.msk.f32.gmra.mxu1 %vm93_vm0, %v75_v3 }
  0x4c   :  { %1194 = vmatprep.mubr.msk.f32.mxu0 %vm93_vm0, %v44_v4  ;;  %1242 = vmatprep.mubr.msk.f32.mxu1 %vm93_vm0, %v76_v5 }
  0x4f   :  { %1195 = vmatmul.mubr.msk.f32.gmra.mxu0 %vm93_vm0, %v45_v6  ;;  %1243 = vmatmul.mubr.msk.f32.gmra.mxu1 %vm93_vm0, %v77_v7 }
  0xd3   :  { %v1151_v9 = vpop.f32.mrf.mxu0  ;;  %v1199_v10 = vpop.f32.mrf.mxu1 }
  0xd4   :  { %v358_v11 = vadd.f32 %v1151_v9, %v1692_v8  ;;  %v518_v12 = vadd.f32 %v1199_v10, %v1692_v8 }
  0xd5   :  { %v352_v13 = vpop.f32.mrf.mxu0  ;;  %v512_v14 = vpop.f32.mrf.mxu1 }
  0xd6   :  { %v672_v15 = vmax.f32 %v358_v11, 0.0  ;;  %v704_v16 = vmax.f32 %v518_v12, 0.0  ;;  %v353_v17 = vadd.f32 %v1692_v8, %v352_v13  ;;  %v513_v18 = vadd.f32 %v1692_v8, %v512_v14 }
  0xd7   :  { %v1154_v19 = vpop.f32.mrf.mxu0  ;;  %v1202_v20 = vpop.f32.mrf.mxu1 }
  0xd8   :  { %v736_v21 = vmax.f32 %v672_v15, 1e-06  ;;  %v768_v22 = vmax.f32 %v704_v16, 1e-06  ;;  %v671_v23 = vmax.f32 %v353_v17, 0.0  ;;  %v703_v24 = vmax.f32 %v513_v18, 0.0 }
  0xd9   :  { %v368_v25 = vadd.f32 %v1154_v19, %v1692_v8  ;;  %v528_v26 = vadd.f32 %v1202_v20, %v1692_v8  ;;  %v362_v27 = vpop.f32.mrf.mxu0  ;;  %v522_v28 = vpop.f32.mrf.mxu1 }
  0xda   :  { %1261 = vlog2.f32 %v736_v21  ;;  %v735_v29 = vmax.f32 %v671_v23, 1e-06  ;;  %v767_v30 = vmax.f32 %v703_v24, 1e-06  ;;  %v363_v31 = vadd.f32 %v1692_v8, %v362_v27 }
  0xdb   :  { %1263 = vlog2.f32 %v768_v22  ;;  %v674_v32 = vmax.f32 %v368_v25, 0.0  ;;  %v706_v33 = vmax.f32 %v528_v26, 0.0  ;;  %v523_v34 = vadd.f32 %v1692_v8, %v522_v28  ;;  %v1157_v35 = vpop.f32.mrf.mxu0  ;;  %v1205_v36 = vpop.f32.mrf.mxu1 }
  0xdc   :  { %1265 = vlog2.f32 %v735_v29  ;;  %v673_v37 = vmax.f32 %v363_v31, 0.0  ;;  %v378_v38 = vadd.f32 %v1157_v35, %v1692_v8  ;;  %v538_v39 = vadd.f32 %v1205_v36, %v1692_v8 }
  0xdd   :  { %1267 = vlog2.f32 %v767_v30  ;;  %v738_v40 = vmax.f32 %v674_v32, 1e-06  ;;  %v770_v41 = vmax.f32 %v706_v33, 1e-06  ;;  %v705_v42 = vmax.f32 %v523_v34, 0.0  ;;  %v372_v43 = vpop.f32.mrf.mxu0  ;;  %v532_v44 = vpop.f32.mrf.mxu1 }
  0xde   :  { %v737_v45 = vmax.f32 %v673_v37, 1e-06  ;;  %v676_v46 = vmax.f32 %v378_v38, 0.0  ;;  %v708_v47 = vmax.f32 %v538_v39, 0.0  ;;  %v373_v48 = vadd.f32 %v1692_v8, %v372_v43 }
  0xdf   :  { %1269 = vlog2.f32 %v738_v40  ;;  %v769_v49 = vmax.f32 %v705_v42, 1e-06  ;;  %v533_v50 = vadd.f32 %v1692_v8, %v532_v44  ;;  %v1160_v51 = vpop.f32.mrf.mxu0  ;;  %v1208_v52 = vpop.f32.mrf.mxu1 }
  0xe0   :  { %1271 = vlog2.f32 %v770_v41  ;;  %v740_v53 = vmax.f32 %v676_v46, 1e-06  ;;  %v772_v54 = vmax.f32 %v708_v47, 1e-06  ;;  %v675_v55 = vmax.f32 %v373_v48, 0.0 }
  0xe1   :  { %1273 = vlog2.f32 %v737_v45  ;;  %v707_v56 = vmax.f32 %v533_v50, 0.0  ;;  %v388_v57 = vadd.f32 %v1160_v51, %v1692_v8  ;;  %v548_v58 = vadd.f32 %v1208_v52, %v1692_v8  ;;  %v382_v59 = vpop.f32.mrf.mxu0  ;;  %v542_v60 = vpop.f32.mrf.mxu1 }
  0xe2   :  { %1275 = vlog2.f32 %v769_v49  ;;  %v739_v61 = vmax.f32 %v675_v55, 1e-06  ;;  %v383_v62 = vadd.f32 %v1692_v8, %v382_v59  ;;  %v543_v63 = vadd.f32 %v1692_v8, %v542_v60 }
  0xe3   :  { %1277 = vlog2.f32 %v740_v53  ;;  %v771_v0 = vmax.f32 %v707_v56, 1e-06  ;;  %v678_v1 = vmax.f32 %v388_v57, 0.0  ;;  %v710_v2 = vmax.f32 %v548_v58, 0.0  ;;  %v1163_v3 = vpop.f32.mrf.mxu0  ;;  %v1211_v4 = vpop.f32.mrf.mxu1 }
  0xe4   :  { %1279 = vlog2.f32 %v772_v54  ;;  %v677_v5 = vmax.f32 %v383_v62, 0.0  ;;  %v709_v6 = vmax.f32 %v543_v63, 0.0  ;;  %v398_v7 = vadd.f32 %v1163_v3, %v1692_v8 }
  0xe5   :  { %1281 = vlog2.f32 %v739_v61  ;;  %v742_v9 = vmax.f32 %v678_v1, 1e-06  ;;  %v774_v10 = vmax.f32 %v710_v2, 1e-06  ;;  %v558_v11 = vadd.f32 %v1211_v4, %v1692_v8  ;;  %v392_v12 = vpop.f32.mrf.mxu0  ;;  %v552_v13 = vpop.f32.mrf.mxu1 }
  0xe6   :  { %1283 = vlog2.f32 %v771_v0  ;;  %v741_v14 = vmax.f32 %v677_v5, 1e-06  ;;  %v773_v15 = vmax.f32 %v709_v6, 1e-06  ;;  %v680_v16 = vmax.f32 %v398_v7, 0.0 }
  0xe7   :  { %v1262_v17 = vpop.eup %1261  ;;  %1285 = vlog2.f32 %v742_v9  ;;  %v712_v18 = vmax.f32 %v558_v11, 0.0  ;;  %v393_v19 = vadd.f32 %v1692_v8, %v392_v12  ;;  %v553_v20 = vadd.f32 %v1692_v8, %v552_v13  ;;  %v1166_v21 = vpop.f32.mrf.mxu0 }
  0xe8   :  { %v1214_v22 = vpop.f32.mrf.mxu1  ;;  %v1264_v23 = vpop.eup %1263  ;;  %v802_v24 = vmul.f32 0.6931472, %v1262_v17  ;;  %1287 = vlog2.f32 %v774_v10  ;;  %v744_v25 = vmax.f32 %v680_v16, 1e-06  ;;  %v408_v26 = vadd.f32 %v1166_v21, %v1692_v8 }
  0xe9   :  { %v1266_v27 = vpop.eup %1265  ;;  %v866_v28 = vmul.f32 0.6931472, %v1264_v23  ;;  %1289 = vlog2.f32 %v741_v14  ;;  %v776_v29 = vmax.f32 %v712_v18, 1e-06  ;;  %v679_v30 = vmax.f32 %v393_v19, 0.0  ;;  %v402_v31 = vpop.f32.mrf.mxu0 }
  0xea   :  { %v562_v32 = vpop.f32.mrf.mxu1  ;;  %v1268_v33 = vpop.eup %1267  ;;  %929 = vst.msk [vmem:[%s2032_s3 + $0x8] sm:$0xff] %vm927_vm1, %v802_v24  ;;  %v800_v34 = vmul.f32 0.6931472, %v1266_v27  ;;  %1291 = vlog2.f32 %v773_v15  ;;  %v711_v35 = vmax.f32 %v553_v20, 0.0  ;;  %v682_v36 = vmax.f32 %v408_v26, 0.0 }
  0xeb   :  { %961 = vst.msk [vmem:[%s2032_s3 + $0x108] sm:$0xff] %vm927_vm1, %v866_v28  ;;  %v864_v37 = vmul.f32 0.6931472, %v1268_v33  ;;  %1293 = vlog2.f32 %v744_v25  ;;  %v743_v38 = vmax.f32 %v679_v30, 1e-06  ;;  %v568_v39 = vadd.f32 %v1214_v22, %v1692_v8  ;;  %v1169_v40 = vpop.f32.mrf.mxu0 }
  0xec   :  { %v1217_v41 = vpop.f32.mrf.mxu1  ;;  %v1270_v42 = vpop.eup %1269  ;;  %928 = vst.msk [vmem:[%s2032_s3] sm:$0xff] %vm927_vm1, %v800_v34  ;;  %1295 = vlog2.f32 %v776_v29  ;;  %v775_v43 = vmax.f32 %v711_v35, 1e-06  ;;  %v746_v44 = vmax.f32 %v682_v36, 1e-06  ;;  %v403_v45 = vadd.f32 %v1692_v8, %v402_v31 }
  0xed   :  { %v1272_v46 = vpop.eup %1271  ;;  %960 = vst.msk [vmem:[%s2032_s3 + $0x100] sm:$0xff] %vm927_vm1, %v864_v37  ;;  %v806_v47 = vmul.f32 0.6931472, %v1270_v42  ;;  %1297 = vlog2.f32 %v743_v38  ;;  %v714_v48 = vmax.f32 %v568_v39, 0.0  ;;  %v563_v49 = vadd.f32 %v1692_v8, %v562_v32  ;;  %v412_v50 = vpop.f32.mrf.mxu0 }
  0xee   :  { %v572_v51 = vpop.f32.mrf.mxu1  ;;  %v1274_v52 = vpop.eup %1273  ;;  %v870_v53 = vmul.f32 0.6931472, %v1272_v46  ;;  %1299 = vlog2.f32 %v775_v43  ;;  %v681_v54 = vmax.f32 %v403_v45, 0.0  ;;  %v418_v55 = vadd.f32 %v1169_v40, %v1692_v8 }
  0xef   :  { %v1276_v56 = vpop.eup %1275  ;;  %931 = vst.msk [vmem:[%s2032_s3 + $0x18] sm:$0xff] %vm927_vm1, %v806_v47  ;;  %v804_v57 = vmul.f32 0.6931472, %v1274_v52  ;;  %1301 = vlog2.f32 %v746_v44  ;;  %v778_v58 = vmax.f32 %v714_v48, 1e-06  ;;  %v713_v59 = vmax.f32 %v563_v49, 0.0  ;;  %v1172_v60 = vpop.f32.mrf.mxu0 }
  0xf0   :  { %v1220_v61 = vpop.f32.mrf.mxu1  ;;  %v1278_v62 = vpop.eup %1277  ;;  %963 = vst.msk [vmem:[%s2032_s3 + $0x118] sm:$0xff] %vm927_vm1, %v870_v53  ;;  %v868_v63 = vmul.f32 0.6931472, %v1276_v56  ;;  %v745_v0 = vmax.f32 %v681_v54, 1e-06  ;;  %v684_v1 = vmax.f32 %v418_v55, 0.0  ;;  %v578_v2 = vadd.f32 %v1217_v41, %v1692_v8 }
  0xf1   :  { %v1280_v3 = vpop.eup %1279  ;;  %930 = vst.msk [vmem:[%s2032_s3 + $0x10] sm:$0xff] %vm927_vm1, %v804_v57  ;;  %v810_v4 = vmul.f32 0.6931472, %v1278_v62  ;;  %1303 = vlog2.f32 %v778_v58  ;;  %v777_v5 = vmax.f32 %v713_v59, 1e-06  ;;  %v413_v6 = vadd.f32 %v1692_v8, %v412_v50  ;;  %v422_v7 = vpop.f32.mrf.mxu0 }
  0xf2   :  { %v582_v9 = vpop.f32.mrf.mxu1  ;;  %v1282_v10 = vpop.eup %1281  ;;  %962 = vst.msk [vmem:[%s2032_s3 + $0x110] sm:$0xff] %vm927_vm1, %v868_v63  ;;  %v874_v11 = vmul.f32 0.6931472, %v1280_v3  ;;  %1305 = vlog2.f32 %v745_v0  ;;  %v748_v12 = vmax.f32 %v684_v1, 1e-06  ;;  %v716_v13 = vmax.f32 %v578_v2, 0.0 }
  0xf3   :  { %v1284_v14 = vpop.eup %1283  ;;  %933 = vst.msk [vmem:[%s2032_s3 + $0x28] sm:$0xff] %vm927_vm1, %v810_v4  ;;  %v808_v15 = vmul.f32 0.6931472, %v1282_v10  ;;  %1307 = vlog2.f32 %v777_v5  ;;  %v683_v16 = vmax.f32 %v413_v6, 0.0  ;;  %v573_v17 = vadd.f32 %v1692_v8, %v572_v51  ;;  %v1175_v18 = vpop.f32.mrf.mxu0 }
  0xf4   :  { %v1223_v19 = vpop.f32.mrf.mxu1  ;;  %v1286_v20 = vpop.eup %1285  ;;  %965 = vst.msk [vmem:[%s2032_s3 + $0x128] sm:$0xff] %vm927_vm1, %v874_v11  ;;  %v872_v21 = vmul.f32 0.6931472, %v1284_v14  ;;  %1309 = vlog2.f32 %v748_v12  ;;  %v780_v22 = vmax.f32 %v716_v13, 1e-06  ;;  %v428_v23 = vadd.f32 %v1172_v60, %v1692_v8 }
  0xf5   :  { %v1288_v24 = vpop.eup %1287  ;;  %932 = vst.msk [vmem:[%s2032_s3 + $0x20] sm:$0xff] %vm927_vm1, %v808_v15  ;;  %v814_v25 = vmul.f32 0.6931472, %v1286_v20  ;;  %v747_v26 = vmax.f32 %v683_v16, 1e-06  ;;  %v715_v27 = vmax.f32 %v573_v17, 0.0  ;;  %v588_v28 = vadd.f32 %v1220_v61, %v1692_v8  ;;  %v432_v29 = vpop.f32.mrf.mxu0 }
  0xf6   :  { %v592_v30 = vpop.f32.mrf.mxu1  ;;  %v1290_v31 = vpop.eup %1289  ;;  %964 = vst.msk [vmem:[%s2032_s3 + $0x120] sm:$0xff] %vm927_vm1, %v872_v21  ;;  %v878_v32 = vmul.f32 0.6931472, %v1288_v24  ;;  %1311 = vlog2.f32 %v780_v22  ;;  %v686_v33 = vmax.f32 %v428_v23, 0.0  ;;  %v423_v34 = vadd.f32 %v1692_v8, %v422_v7 }
  0xf7   :  { %v1292_v35 = vpop.eup %1291  ;;  %935 = vst.msk [vmem:[%s2032_s3 + $0x38] sm:$0xff] %vm927_vm1, %v814_v25  ;;  %v812_v36 = vmul.f32 0.6931472, %v1290_v31  ;;  %1313 = vlog2.f32 %v747_v26  ;;  %v779_v37 = vmax.f32 %v715_v27, 1e-06  ;;  %v718_v38 = vmax.f32 %v588_v28, 0.0  ;;  %v1178_v39 = vpop.f32.mrf.mxu0 }
  0xf8   :  { %v1226_v40 = vpop.f32.mrf.mxu1  ;;  %v1294_v41 = vpop.eup %1293  ;;  %967 = vst.msk [vmem:[%s2032_s3 + $0x138] sm:$0xff] %vm927_vm1, %v878_v32  ;;  %v876_v42 = vmul.f32 0.6931472, %v1292_v35  ;;  %v750_v43 = vmax.f32 %v686_v33, 1e-06  ;;  %v685_v44 = vmax.f32 %v423_v34, 0.0  ;;  %v583_v45 = vadd.f32 %v1692_v8, %v582_v9 }
  0xf9   :  { %v1296_v46 = vpop.eup %1295  ;;  %934 = vst.msk [vmem:[%s2032_s3 + $0x30] sm:$0xff] %vm927_vm1, %v812_v36  ;;  %v818_v47 = vmul.f32 0.6931472, %v1294_v41  ;;  %1315 = vlog2.f32 %v779_v37  ;;  %v782_v48 = vmax.f32 %v718_v38, 1e-06  ;;  %v438_v49 = vadd.f32 %v1175_v18, %v1692_v8  ;;  %v442_v50 = vpop.f32.mrf.mxu0 }
  0xfa   :  { %v1787_v51 = vpop.f32.mrf.mxu1  ;;  %v1298_v52 = vpop.eup %1297  ;;  %966 = vst.msk [vmem:[%s2032_s3 + $0x130] sm:$0xff] %vm927_vm1, %v876_v42  ;;  %v882_v53 = vmul.f32 0.6931472, %v1296_v46  ;;  %1317 = vlog2.f32 %v750_v43  ;;  %v749_v54 = vmax.f32 %v685_v44, 1e-06  ;;  %v717_v55 = vmax.f32 %v583_v45, 0.0 }
  0xfb   :  { %v1300_v56 = vpop.eup %1299  ;;  %937 = vst.msk [vmem:[%s2032_s3 + $0x48] sm:$0xff] %vm927_vm1, %v818_v47  ;;  %v816_v57 = vmul.f32 0.6931472, %v1298_v52  ;;  %1319 = vlog2.f32 %v782_v48  ;;  %v688_v58 = vmax.f32 %v438_v49, 0.0  ;;  %v598_v59 = vadd.f32 %v1223_v19, %v1692_v8  ;;  %v1181_v60 = vpop.f32.mrf.mxu0 }
  0xfc   :  { %v1229_v61 = vpop.f32.mrf.mxu1  ;;  %v1302_v62 = vpop.eup %1301  ;;  %969 = vst.msk [vmem:[%s2032_s3 + $0x148] sm:$0xff] %vm927_vm1, %v882_v53  ;;  %v880_v63 = vmul.f32 0.6931472, %v1300_v56  ;;  %1321 = vlog2.f32 %v749_v54  ;;  %v781_v0 = vmax.f32 %v717_v55, 1e-06  ;;  %v433_v1 = vadd.f32 %v1692_v8, %v432_v29 }
  0xfd   :  { %936 = vst.msk [vmem:[%s2032_s3 + $0x40] sm:$0xff] %vm927_vm1, %v816_v57  ;;  %v822_v2 = vmul.f32 0.6931472, %v1302_v62  ;;  %v752_v3 = vmax.f32 %v688_v58, 1e-06  ;;  %v720_v4 = vmax.f32 %v598_v59, 0.0  ;;  %v593_v5 = vadd.f32 %v1692_v8, %v592_v30  ;;  %v452_v6 = vpop.f32.mrf.mxu0 }
  0xfe   :  { %v612_v7 = vpop.f32.mrf.mxu1  ;;  %v1304_v9 = vpop.eup %1303  ;;  %968 = vst.msk [vmem:[%s2032_s3 + $0x140] sm:$0xff] %vm927_vm1, %v880_v63  ;;  %1323 = vlog2.f32 %v781_v0  ;;  %v687_v10 = vmax.f32 %v433_v1, 0.0  ;;  %v448_v11 = vadd.f32 %v1178_v39, %v1692_v8  ;;  %v608_v12 = vadd.f32 %v1226_v40, %v1692_v8 }
  0xff   :  { %v1306_v13 = vpop.eup %1305  ;;  %939 = vst.msk [vmem:[%s2032_s3 + $0x58] sm:$0xff] %vm927_vm1, %v822_v2  ;;  %v886_v14 = vmul.f32 0.6931472, %v1304_v9  ;;  %1325 = vlog2.f32 %v752_v3  ;;  %v784_v15 = vmax.f32 %v720_v4, 1e-06  ;;  %v719_v16 = vmax.f32 %v593_v5, 0.0  ;;  %v1184_v17 = vpop.f32.mrf.mxu0 }
 0x100   :  { %v1232_v18 = vpop.f32.mrf.mxu1  ;;  %v1308_v19 = vpop.eup %1307  ;;  %v820_v20 = vmul.f32 0.6931472, %v1306_v13  ;;  %v751_v21 = vmax.f32 %v687_v10, 1e-06  ;;  %v690_v22 = vmax.f32 %v448_v11, 0.0  ;;  %v722_v23 = vmax.f32 %v608_v12, 0.0 }
 0x101   :  { %v1310_v24 = vpop.eup %1309  ;;  %971 = vst.msk [vmem:[%s2032_s3 + $0x158] sm:$0xff] %vm927_vm1, %v886_v14  ;;  %v884_v25 = vmul.f32 0.6931472, %v1308_v19  ;;  %1327 = vlog2.f32 %v784_v15  ;;  %v783_v26 = vmax.f32 %v719_v16, 1e-06  ;;  %v443_v27 = vadd.f32 %v1692_v8, %v442_v50  ;;  %v462_v28 = vpop.f32.mrf.mxu0 }
 0x102   :  { %v622_v29 = vpop.f32.mrf.mxu1  ;;  %938 = vst.msk [vmem:[%s2032_s3 + $0x50] sm:$0xff] %vm927_vm1, %v820_v20  ;;  %v826_v30 = vmul.f32 0.6931472, %v1310_v24  ;;  %1329 = vlog2.f32 %v751_v21  ;;  %v754_v31 = vmax.f32 %v690_v22, 1e-06  ;;  %v603_v35 = vadd.f32 %v1692_v8, %v1787_v51 }
 0x103   :  { %v786_v32 = vmax.f32 %v722_v23, 1e-06  ;;  %v1312_v33 = vpop.eup %1311  ;;  %970 = vst.msk [vmem:[%s2032_s3 + $0x150] sm:$0xff] %vm927_vm1, %v884_v25  ;;  %1331 = vlog2.f32 %v783_v26  ;;  %v689_v34 = vmax.f32 %v443_v27, 0.0  ;;  %v458_v36 = vadd.f32 %v1181_v60, %v1692_v8  ;;  %v1834_v37 = vpop.f32.mrf.mxu0 }
 0x104   :  { %v1836_v38 = vpop.f32.mrf.mxu1  ;;  %v1314_v39 = vpop.eup %1313  ;;  %941 = vst.msk [vmem:[%s2032_s3 + $0x68] sm:$0xff] %vm927_vm1, %v826_v30  ;;  %v890_v40 = vmul.f32 0.6931472, %v1312_v33  ;;  %1333 = vlog2.f32 %v754_v31  ;;  %v618_v41 = vadd.f32 %v1229_v61, %v1692_v8  ;;  %v453_v42 = vadd.f32 %v1692_v8, %v452_v6 }
 0x105   :  { %v824_v43 = vmul.f32 0.6931472, %v1314_v39  ;;  %1335 = vlog2.f32 %v786_v32  ;;  %v753_v44 = vmax.f32 %v689_v34, 1e-06  ;;  %v721_v45 = vmax.f32 %v603_v35, 0.0  ;;  %v472_v46 = vpop.f32.mrf.mxu0 }
 0x106   :  { %v1844_v47 = vpop.f32.mrf.mxu1  ;;  %v1316_v48 = vpop.eup %1315  ;;  %973 = vst.msk [vmem:[%s2032_s3 + $0x168] sm:$0xff] %vm927_vm1, %v890_v40  ;;  %v692_v49 = vmax.f32 %v458_v36, 0.0  ;;  %v724_v50 = vmax.f32 %v618_v41, 0.0  ;;  %v691_v51 = vmax.f32 %v453_v42, 0.0  ;;  %v613_v52 = vadd.f32 %v1692_v8, %v612_v7 }
 0x107   :  { %v1318_v53 = vpop.eup %1317  ;;  %940 = vst.msk [vmem:[%s2032_s3 + $0x60] sm:$0xff] %vm927_vm1, %v824_v43  ;;  %v888_v54 = vmul.f32 0.6931472, %v1316_v48  ;;  %1337 = vlog2.f32 %v753_v44  ;;  %v785_v55 = vmax.f32 %v721_v45, 1e-06  ;;  %v468_v56 = vadd.f32 %v1184_v17, %v1692_v8  ;;  %v1190_v57 = vpop.f32.mrf.mxu0 }
 0x108   :  { %v1320_v58 = vpop.eup %1319  ;;  %v830_v59 = vmul.f32 0.6931472, %v1318_v53  ;;  %v756_v60 = vmax.f32 %v692_v49, 1e-06  ;;  %v788_v61 = vmax.f32 %v724_v50, 1e-06  ;;  %v628_v62 = vadd.f32 %v1232_v18, %v1692_v8  ;;  %v1857_v63 = vpop.f32.mrf.mxu1 }
 0x109   :  { %v1322_v0 = vpop.eup %1321  ;;  %972 = vst.msk [vmem:[%s2032_s3 + $0x160] sm:$0xff] %vm927_vm1, %v888_v54  ;;  %v894_v1 = vmul.f32 0.6931472, %v1320_v58  ;;  %1339 = vlog2.f32 %v785_v55  ;;  %v755_v2 = vmax.f32 %v691_v51, 1e-06  ;;  %v723_v3 = vmax.f32 %v613_v52, 0.0  ;;  %v482_v12 = vpop.f32.mrf.mxu0 }
 0x10a   :  { %943 = vst.msk [vmem:[%s2032_s3 + $0x78] sm:$0xff] %vm927_vm1, %v830_v59  ;;  %v828_v4 = vmul.f32 0.6931472, %v1322_v0  ;;  %1341 = vlog2.f32 %v756_v60  ;;  %v694_v5 = vmax.f32 %v468_v56, 0.0  ;;  %v726_v6 = vmax.f32 %v628_v62, 0.0  ;;  %v642_v17 = vpop.f32.mrf.mxu1 }
 0x10b   :  { %v1324_v7 = vpop.eup %1323  ;;  %975 = vst.msk [vmem:[%s2032_s3 + $0x178] sm:$0xff] %vm927_vm1, %v894_v1  ;;  %1343 = vlog2.f32 %v788_v61  ;;  %v787_v9 = vmax.f32 %v723_v3, 1e-06  ;;  %v463_v10 = vadd.f32 %v1692_v8, %v462_v28  ;;  %v623_v11 = vadd.f32 %v1692_v8, %v622_v29  ;;  %v1193_v29 = vpop.f32.mrf.mxu0 }
 0x10c   :  { %v1326_v13 = vpop.eup %1325  ;;  %942 = vst.msk [vmem:[%s2032_s3 + $0x70] sm:$0xff] %vm927_vm1, %v828_v4  ;;  %v892_v14 = vmul.f32 0.6931472, %v1324_v7  ;;  %1345 = vlog2.f32 %v755_v2  ;;  %v758_v15 = vmax.f32 %v694_v5, 1e-06  ;;  %v478_v22 = vadd.f32 %v1834_v37, %v1692_v8  ;;  %v1241_v35 = vpop.f32.mrf.mxu1 }
 0x10d   :  { %v790_v16 = vmax.f32 %v726_v6, 1e-06  ;;  %v834_v18 = vmul.f32 0.6931472, %v1326_v13  ;;  %1347 = vlog2.f32 %v787_v9  ;;  %v693_v19 = vmax.f32 %v463_v10, 0.0  ;;  %v492_v48 = vpop.f32.mrf.mxu0 }
 0x10e   :  { %v725_v20 = vmax.f32 %v623_v11, 0.0  ;;  %v1328_v21 = vpop.eup %1327  ;;  %974 = vst.msk [vmem:[%s2032_s3 + $0x170] sm:$0xff] %vm927_vm1, %v892_v14  ;;  %1349 = vlog2.f32 %v758_v15  ;;  %v638_v23 = vadd.f32 %v1836_v38, %v1692_v8  ;;  %v473_v24 = vadd.f32 %v1692_v8, %v472_v46  ;;  %v652_v53 = vpop.f32.mrf.mxu1 }
 0x10f   :  { %v1330_v25 = vpop.eup %1329  ;;  %945 = vst.msk [vmem:[%s2032_s3 + $0x88] sm:$0xff] %vm927_vm1, %v834_v18  ;;  %v898_v26 = vmul.f32 0.6931472, %v1328_v21  ;;  %1351 = vlog2.f32 %v790_v16  ;;  %v757_v27 = vmax.f32 %v693_v19, 1e-06  ;;  %v696_v32 = vmax.f32 %v478_v22, 0.0  ;;  %v1196_v1 = vpop.f32.mrf.mxu0 }
 0x110   :  { %v789_v28 = vmax.f32 %v725_v20, 1e-06  ;;  %v1332_v30 = vpop.eup %1331  ;;  %v832_v31 = vmul.f32 0.6931472, %v1330_v25  ;;  %v728_v33 = vmax.f32 %v638_v23, 0.0  ;;  %v695_v34 = vmax.f32 %v473_v24, 0.0  ;;  %v1244_v6 = vpop.f32.mrf.mxu1 }
 0x111   :  { %v1334_v36 = vpop.eup %1333  ;;  %977 = vst.msk [vmem:[%s2032_s3 + $0x188] sm:$0xff] %vm927_vm1, %v898_v26  ;;  %v896_v37 = vmul.f32 0.6931472, %v1332_v30  ;;  %1353 = vlog2.f32 %v757_v27  ;;  %v633_v38 = vadd.f32 %v1692_v8, %v1844_v47  ;;  %v488_v39 = vadd.f32 %v1190_v57, %v1692_v8  ;;  %v502_v21 = vpop.f32.mrf.mxu0 }
 0x112   :  { %v1336_v40 = vpop.eup %1335  ;;  %944 = vst.msk [vmem:[%s2032_s3 + $0x80] sm:$0xff] %vm927_vm1, %v832_v31  ;;  %v838_v41 = vmul.f32 0.6931472, %v1334_v36  ;;  %1355 = vlog2.f32 %v789_v28  ;;  %v760_v42 = vmax.f32 %v696_v32, 1e-06  ;;  %v648_v50 = vadd.f32 %v1857_v63, %v1692_v8  ;;  %v662_v26 = vpop.f32.mrf.mxu1 }
 0x113   :  { %v792_v43 = vmax.f32 %v728_v33, 1e-06  ;;  %976 = vst.msk [vmem:[%s2032_s3 + $0x180] sm:$0xff] %vm927_vm1, %v896_v37  ;;  %v902_v44 = vmul.f32 0.6931472, %v1336_v40  ;;  %v727_v46 = vmax.f32 %v633_v38, 0.0  ;;  %v483_v51 = vadd.f32 %v1692_v8, %v482_v12 }
 0x114   :  { %v759_v45 = vmax.f32 %v695_v34, 1e-06  ;;  %v698_v47 = vmax.f32 %v488_v39, 0.0  ;;  %v1338_v49 = vpop.eup %1337  ;;  %947 = vst.msk [vmem:[%s2032_s3 + $0x98] sm:$0xff] %vm927_vm1, %v838_v41  ;;  %1357 = vlog2.f32 %v760_v42  ;;  %v643_v52 = vadd.f32 %v1692_v8, %v642_v17 }
 0x115   :  { %979 = vst.msk [vmem:[%s2032_s3 + $0x198] sm:$0xff] %vm927_vm1, %v902_v44  ;;  %v836_v54 = vmul.f32 0.6931472, %v1338_v49  ;;  %1359 = vlog2.f32 %v792_v43  ;;  %v791_v55 = vmax.f32 %v727_v46, 1e-06  ;;  %v730_v58 = vmax.f32 %v648_v50, 0.0 }
 0x116   :  { %v762_v56 = vmax.f32 %v698_v47, 1e-06  ;;  %v1340_v57 = vpop.eup %1339  ;;  %1361 = vlog2.f32 %v759_v45  ;;  %v697_v59 = vmax.f32 %v483_v51, 0.0  ;;  %v729_v60 = vmax.f32 %v643_v52, 0.0 }
 0x117   :  { %v1342_v61 = vpop.eup %1341  ;;  %946 = vst.msk [vmem:[%s2032_s3 + $0x90] sm:$0xff] %vm927_vm1, %v836_v54  ;;  %v900_v62 = vmul.f32 0.6931472, %v1340_v57  ;;  %1363 = vlog2.f32 %v791_v55  ;;  %v498_v63 = vadd.f32 %v1193_v29, %v1692_v8  ;;  %v658_v0 = vadd.f32 %v1241_v35, %v1692_v8 }
 0x118   :  { %v1344_v2 = vpop.eup %1343  ;;  %v842_v3 = vmul.f32 0.6931472, %v1342_v61  ;;  %1365 = vlog2.f32 %v762_v56  ;;  %v794_v4 = vmax.f32 %v730_v58, 1e-06  ;;  %v761_v5 = vmax.f32 %v697_v59, 1e-06 }
 0x119   :  { %v1346_v7 = vpop.eup %1345  ;;  %978 = vst.msk [vmem:[%s2032_s3 + $0x190] sm:$0xff] %vm927_vm1, %v900_v62  ;;  %v906_v9 = vmul.f32 0.6931472, %v1344_v2  ;;  %v793_v10 = vmax.f32 %v729_v60, 1e-06  ;;  %v700_v11 = vmax.f32 %v498_v63, 0.0  ;;  %v493_v15 = vadd.f32 %v1692_v8, %v492_v48 }
 0x11a   :  { %v732_v12 = vmax.f32 %v658_v0, 0.0  ;;  %v1348_v13 = vpop.eup %1347  ;;  %949 = vst.msk [vmem:[%s2032_s3 + $0xa8] sm:$0xff] %vm927_vm1, %v842_v3  ;;  %v840_v14 = vmul.f32 0.6931472, %v1346_v7  ;;  %1367 = vlog2.f32 %v794_v4  ;;  %v653_v16 = vadd.f32 %v1692_v8, %v652_v53 }
 0x11b   :  { %v1350_v17 = vpop.eup %1349  ;;  %981 = vst.msk [vmem:[%s2032_s3 + $0x1a8] sm:$0xff] %vm927_vm1, %v906_v9  ;;  %v904_v18 = vmul.f32 0.6931472, %v1348_v13  ;;  %1369 = vlog2.f32 %v761_v5  ;;  %v764_v19 = vmax.f32 %v700_v11, 1e-06  ;;  %v699_v24 = vmax.f32 %v493_v15, 0.0 }
 0x11c   :  { %v796_v20 = vmax.f32 %v732_v12, 1e-06  ;;  %v1352_v22 = vpop.eup %1351  ;;  %948 = vst.msk [vmem:[%s2032_s3 + $0xa0] sm:$0xff] %vm927_vm1, %v840_v14  ;;  %v846_v23 = vmul.f32 0.6931472, %v1350_v17  ;;  %1371 = vlog2.f32 %v793_v10  ;;  %v731_v25 = vmax.f32 %v653_v16, 0.0 }
 0x11d   :  { %980 = vst.msk [vmem:[%s2032_s3 + $0x1a0] sm:$0xff] %vm927_vm1, %v904_v18  ;;  %v910_v27 = vmul.f32 0.6931472, %v1352_v22  ;;  %1373 = vlog2.f32 %v764_v19  ;;  %v508_v28 = vadd.f32 %v1196_v1, %v1692_v8  ;;  %v668_v29 = vadd.f32 %v1244_v6, %v1692_v8 }
 0x11e   :  { %v1354_v30 = vpop.eup %1353  ;;  %951 = vst.msk [vmem:[%s2032_s3 + $0xb8] sm:$0xff] %vm927_vm1, %v846_v23  ;;  %1375 = vlog2.f32 %v796_v20  ;;  %v763_v31 = vmax.f32 %v699_v24, 1e-06  ;;  %v795_v32 = vmax.f32 %v731_v25, 1e-06  ;;  %v503_v33 = vadd.f32 %v1692_v8, %v502_v21 }
 0x11f   :  { %v1356_v34 = vpop.eup %1355  ;;  %983 = vst.msk [vmem:[%s2032_s3 + $0x1b8] sm:$0xff] %vm927_vm1, %v910_v27  ;;  %v844_v35 = vmul.f32 0.6931472, %v1354_v30  ;;  %v702_v36 = vmax.f32 %v508_v28, 0.0  ;;  %v734_v37 = vmax.f32 %v668_v29, 0.0  ;;  %v663_v38 = vadd.f32 %v1692_v8, %v662_v26 }
 0x120   :  { %v908_v39 = vmul.f32 0.6931472, %v1356_v34  ;;  %1377 = vlog2.f32 %v763_v31  ;;  %v701_v40 = vmax.f32 %v503_v33, 0.0 }
 0x121   :  { %v1358_v41 = vpop.eup %1357  ;;  %950 = vst.msk [vmem:[%s2032_s3 + $0xb0] sm:$0xff] %vm927_vm1, %v844_v35  ;;  %1379 = vlog2.f32 %v795_v32  ;;  %v766_v42 = vmax.f32 %v702_v36, 1e-06  ;;  %v798_v43 = vmax.f32 %v734_v37, 1e-06  ;;  %v733_v44 = vmax.f32 %v663_v38, 0.0 }
 0x122   :  { %v1360_v45 = vpop.eup %1359  ;;  %982 = vst.msk [vmem:[%s2032_s3 + $0x1b0] sm:$0xff] %vm927_vm1, %v908_v39  ;;  %v850_v8 = vmul.f32 0.6931472, %v1358_v41  ;;  %v765_v46 = vmax.f32 %v701_v40, 1e-06 }
 0x123   :  { %v1362_v47 = vpop.eup %1361  ;;  %v914_v48 = vmul.f32 0.6931472, %v1360_v45  ;;  %1381 = vlog2.f32 %v766_v42  ;;  %v797_v49 = vmax.f32 %v733_v44, 1e-06 }
 0x124   :  { %v1364_v50 = vpop.eup %1363  ;;  %953 = vst.msk [vmem:[%s2032_s3 + $0xc8] sm:$0xff] %vm927_vm1, %v850_v8  ;;  %v848_v51 = vmul.f32 0.6931472, %v1362_v47  ;;  %1383 = vlog2.f32 %v798_v43 }
 0x125   :  { %v1366_v52 = vpop.eup %1365  ;;  %985 = vst.msk [vmem:[%s2032_s3 + $0x1c8] sm:$0xff] %vm927_vm1, %v914_v48  ;;  %v912_v53 = vmul.f32 0.6931472, %v1364_v50  ;;  %1385 = vlog2.f32 %v765_v46 }
 0x126   :  { %952 = vst.msk [vmem:[%s2032_s3 + $0xc0] sm:$0xff] %vm927_vm1, %v848_v51  ;;  %v854_v54 = vmul.f32 0.6931472, %v1366_v52  ;;  %1387 = vlog2.f32 %v797_v49 }
 0x127   :  { %v1368_v55 = vpop.eup %1367  ;;  %984 = vst.msk [vmem:[%s2032_s3 + $0x1c0] sm:$0xff] %vm927_vm1, %v912_v53 }
 0x128   :  { %v1370_v56 = vpop.eup %1369  ;;  %955 = vst.msk [vmem:[%s2032_s3 + $0xd8] sm:$0xff] %vm927_vm1, %v854_v54  ;;  %v918_v57 = vmul.f32 0.6931472, %v1368_v55 }
 0x129   :  { %v1372_v58 = vpop.eup %1371  ;;  %v852_v59 = vmul.f32 0.6931472, %v1370_v56 }
 0x12a   :  { %v1374_v60 = vpop.eup %1373  ;;  %987 = vst.msk [vmem:[%s2032_s3 + $0x1d8] sm:$0xff] %vm927_vm1, %v918_v57  ;;  %v916_v61 = vmul.f32 0.6931472, %v1372_v58 }
 0x12b   :  { %v1376_v62 = vpop.eup %1375  ;;  %954 = vst.msk [vmem:[%s2032_s3 + $0xd0] sm:$0xff] %vm927_vm1, %v852_v59  ;;  %v858_v63 = vmul.f32 0.6931472, %v1374_v60 }
 0x12c   :  { %986 = vst.msk [vmem:[%s2032_s3 + $0x1d0] sm:$0xff] %vm927_vm1, %v916_v61  ;;  %v922_v0 = vmul.f32 0.6931472, %v1376_v62 }
 0x12d   :  { %v1378_v1 = vpop.eup %1377  ;;  %957 = vst.msk [vmem:[%s2032_s3 + $0xe8] sm:$0xff] %vm927_vm1, %v858_v63 }
 0x12e   :  { %v1380_v2 = vpop.eup %1379  ;;  %989 = vst.msk [vmem:[%s2032_s3 + $0x1e8] sm:$0xff] %vm927_vm1, %v922_v0  ;;  %v856_v3 = vmul.f32 0.6931472, %v1378_v1 }
 0x12f   :  { %v920_v4 = vmul.f32 0.6931472, %v1380_v2 }
 0x130   :  { %v1382_v5 = vpop.eup %1381  ;;  %956 = vst.msk [vmem:[%s2032_s3 + $0xe0] sm:$0xff] %vm927_vm1, %v856_v3 }
 0x131   :  { %v1384_v6 = vpop.eup %1383  ;;  %988 = vst.msk [vmem:[%s2032_s3 + $0x1e0] sm:$0xff] %vm927_vm1, %v920_v4  ;;  %v862_v7 = vmul.f32 0.6931472, %v1382_v5 }
 0x132   :  { %v1386_v9 = vpop.eup %1385  ;;  %v926_v10 = vmul.f32 0.6931472, %v1384_v6 }
 0x133   :  { %v1388_v11 = vpop.eup %1387  ;;  %959 = vst.msk [vmem:[%s2032_s3 + $0xf8] sm:$0xff] %vm927_vm1, %v862_v7  ;;  %v860_v12 = vmul.f32 0.6931472, %v1386_v9 }
 0x134   :  { %991 = vst.msk [vmem:[%s2032_s3 + $0x1f8] sm:$0xff] %vm927_vm1, %v926_v10  ;;  %v924_v13 = vmul.f32 0.6931472, %v1388_v11 }
 0x135   :  { %958 = vst.msk [vmem:[%s2032_s3 + $0xf0] sm:$0xff] %vm927_vm1, %v860_v12 }
 0x136   :  { %990 = vst.msk [vmem:[%s2032_s3 + $0x1f0] sm:$0xff] %vm927_vm1, %v924_v13 }

// kernel: box_encoder_forward.3
= control target key start
LH: loop header
LB: loop body
LE: loop exit
PB: predicated region body
PF: predicated region fallthrough
CT: control target
= control target key end

     0   :  { %s7949_s0 = inlined_call_operand.vmem [shape: f32[32,64], index: 0, kind: input, shape index: {}]   ;;  %s7950_s1 = inlined_call_operand.vmem [shape: f32[2,2,8,16,16], index: 1, kind: input, shape index: {}]   ;;  %s7951_s2 = inlined_call_operand.vmem [shape: f32[2,1,16], index: 2, kind: input, shape index: {}]   ;;  %s7952_s3 = inlined_call_operand.vmem [shape: f32[2,64,192], index: 3, kind: input, shape index: {}]   ;;  %s7953_s4 = inlined_call_operand.vmem [shape: f32[2,1,192], index: 4, kind: input, shape index: {}]   ;;  %s7954_s5 = inlined_call_operand.vmem [shape: f32[2,64,64], index: 5, kind: input, shape index: {}]   ;;  %s7955_s6 = inlined_call_operand.vmem [shape: f32[2,1,64], index: 6, kind: input, shape index: {}]   ;;  %s7956_s7 = inlined_call_operand.vmem [shape: f32[2,64,128], index: 7, kind: input, shape index: {}]   ;;  %s7957_s8 = inlined_call_operand.vmem [shape: f32[2,1,128], index: 8, kind: input, shape index: {}]   ;;  %s7958_s9 = inlined_call_operand.vmem [shape: f32[2,128,64], index: 9, kind: input, shape index: {}]   ;;  %s7959_s10 = inlined_call_operand.vmem [shape: f32[2,1,64], index: 10, kind: input, shape index: {}]   ;;  %s7960_s11 = inlined_call_operand.vmem [shape: f32[2,1,64], index: 11, kind: input, shape index: {}]   ;;  %s7961_s12 = inlined_call_operand.vmem [shape: f32[2,1,64], index: 12, kind: input, shape index: {}]   ;;  %s7962_s13 = inlined_call_operand.vmem [shape: f32[2,1,64], index: 13, kind: input, shape index: {}]   ;;  %s7963_s14 = inlined_call_operand.vmem [shape: f32[2,1,64], index: 14, kind: input, shape index: {}]   ;;  %s7964_s15 = inlined_call_operand.vmem [shape: f32[1,64], index: 15, kind: input, shape index: {}]   ;;  %s7965_s16 = inlined_call_operand.vmem [shape: f32[1,64], index: 16, kind: input, shape index: {}]   ;;  %s7966_s17 = inlined_call_operand.hbm [shape: f32[32,64], index: 17, kind: output, shape index: {}]  }
   0x1   :  { %8003 = sst [smem:[#allocation13_spill]] %s7949_s0 }
   0x2   :  { %8004 = sst [smem:[#allocation14_spill]] %s7950_s1 }
   0x3   :  { %8005 = sst [smem:[#allocation15_spill]] %s7951_s2 }
   0x4   :  { %22 = vsyncpa [#allocation5], 0 }
   0x5   :  { %24 = vsyncpa [#allocation5 + $0x1], 0  ;;  %s6673_s24 = smov 0   ;;  %s6675_s25 = smov 0  }
   0x6   :  { %s6677_s26 = smov 0   ;;  %s6679_s27 = smov 0  }
   0x7 LB: > { %8006 = sst [smem:[#allocation7_spill]] %s6554_s25  ;;  %s6694_s28 = sadd.s32 4294967295, %s6562_s27   ;;  %s6562_s27 = sphi %s6679_s27, %s8036_s27   ;;  %s6558_s26 = sphi %s6677_s26, %s8039_s26   ;;  %s6554_s25 = sphi %s6675_s25, %s8038_s25   ;;  %s6550_s24 = sphi %s6673_s24, %s8037_s24  }
   0x8   : > { %8007 = sst [smem:[#allocation8_spill]] %s6558_s26  ;;  %s5473_s29 = sadd.s32 4294967294, %s6562_s27  }
   0x9   : > { %8008 = sst [smem:[#allocation9_spill]] %s6562_s27  ;;  %s6698_s0 = sadd.s32 1, %s6562_s27  }
   0xa   : > { %8009 = sst [smem:[#allocation10_spill]] %s6698_s0  ;;  %s63_s30 = sadd.s32 1, %s6558_s26 }
   0xb   : > { %s60_s18 = ssub.s32 %s6562_s27, %s6698_s0  ;;  %p70_p0 = scmp.ne.s32.totalorder %s6558_s26, %s6554_s25 }
   0xc   : > { %p61_p1 = scmp.eq.s32.totalorder %s60_s18, 0  ;;  %p71_p2 = scmp.eq.s32.totalorder %s6562_s27, 0 }
   0xd   : > { %p420_p3 = scmp.eq.s32.totalorder %s6694_s28, 1  ;;  %p425_p4 = scmp.ne.s32.totalorder %s6554_s25, %s6550_s24 }
   0xe   : > { %s6710_s19 = scalar_select %p61_p1, %s6558_s26, %s63_s30  }
   0xf   : > { %p72_p5 = por %p71_p2, %p70_p0  ;;  %p6712_p6 = por %p420_p3, %p70_p0 }
  0x10   : > { %8010 = sst [smem:[#allocation11_spill]] %s6710_s19  ;;  %p426_p7 = scmp.eq.s32.totalorder %s5473_s29, 1 }
  0x11   : > { %p5475_p9 = scmp.ge.s32.totalorder %s6562_s27, 2 }
  0x12   : > { %p6716_p8 = por %p426_p7, %p425_p4 }
  0x13   : > { %484 = sbr.rel (%p5475_p9) target bundleno = 50 (0x32), region = 72 }
  0x14   : > { %s8012_s20 = scalar_select %p6716_p8, 1, 0 }
  0x16   : > { %8013 = sst [smem:[#allocation12_spill]] %s8012_s20 }
  0x18   : > { %496 = sbr.rel (!%p72_p5) target bundleno = 50 (0x32), region = 80  ;;  %s498_s21 = sand.u32 (%p72_p5), 1, %s6558_s26  }
  0x19   : > { %s5699_s22 = sshll.u32 (%p72_p5), %s6562_s27, 7  ;;  %s5476_s23 = sshll.u32 (%p72_p5), %s498_s21, 8 }
  0x1a   : > { %s8014_s19 = sld [smem:[#allocation14_spill]] (%p72_p5)  ;;  %s6733_s29 = scalar_lea.vmem (%p72_p5), [#allocation3], %s5476_s23 }
  0x20   : > { %s6728_s0 = scalar_lea.vmem %s8014_s19, %s5699_s22 }
  0x21   : > { %v594_v0 = vld [vmem:[%s6728_s0] sm:$0xff]  ;;  %v596_v1 = vld [vmem:[%s6728_s0 + $0x8] sm:$0xff]  ;;  %v598_v2 = vld [vmem:[%s6728_s0 + $0x10] sm:$0xff] }
  0x22   : > { %595 = vst [vmem:[%s6733_s29] sm:$0xff] %v594_v0  ;;  %597 = vst [vmem:[%s6733_s29 + $0x8] sm:$0xff] %v596_v1  ;;  %v600_v3 = vld [vmem:[%s6728_s0 + $0x18] sm:$0xff]  ;;  %v602_v4 = vld [vmem:[%s6728_s0 + $0x20] sm:$0xff] }
  0x23   : > { %599 = vst [vmem:[%s6733_s29 + $0x10] sm:$0xff] %v598_v2  ;;  %v604_v5 = vld [vmem:[%s6728_s0 + $0x28] sm:$0xff]  ;;  %601 = vst [vmem:[%s6733_s29 + $0x18] sm:$0xff] %v600_v3  ;;  %v606_v6 = vld [vmem:[%s6728_s0 + $0x30] sm:$0xff] }
  0x24   : > { %603 = vst [vmem:[%s6733_s29 + $0x20] sm:$0xff] %v602_v4  ;;  %605 = vst [vmem:[%s6733_s29 + $0x28] sm:$0xff] %v604_v5  ;;  %v608_v7 = vld [vmem:[%s6728_s0 + $0x38] sm:$0xff]  ;;  %v610_v8 = vld [vmem:[%s6728_s0 + $0x40] sm:$0xff] }
  0x25   : > { %607 = vst [vmem:[%s6733_s29 + $0x30] sm:$0xff] %v606_v6  ;;  %609 = vst [vmem:[%s6733_s29 + $0x38] sm:$0xff] %v608_v7  ;;  %v612_v9 = vld [vmem:[%s6728_s0 + $0x48] sm:$0xff]  ;;  %v614_v10 = vld [vmem:[%s6728_s0 + $0x50] sm:$0xff] }
  0x26   : > { %611 = vst [vmem:[%s6733_s29 + $0x40] sm:$0xff] %v610_v8  ;;  %v616_v11 = vld [vmem:[%s6728_s0 + $0x58] sm:$0xff]  ;;  %613 = vst [vmem:[%s6733_s29 + $0x48] sm:$0xff] %v612_v9  ;;  %v618_v12 = vld [vmem:[%s6728_s0 + $0x60] sm:$0xff] }
  0x27   : > { %615 = vst [vmem:[%s6733_s29 + $0x50] sm:$0xff] %v614_v10  ;;  %617 = vst [vmem:[%s6733_s29 + $0x58] sm:$0xff] %v616_v11  ;;  %v620_v13 = vld [vmem:[%s6728_s0 + $0x68] sm:$0xff]  ;;  %v622_v14 = vld [vmem:[%s6728_s0 + $0x70] sm:$0xff] }
  0x28   : > { %619 = vst [vmem:[%s6733_s29 + $0x60] sm:$0xff] %v618_v12  ;;  %621 = vst [vmem:[%s6733_s29 + $0x68] sm:$0xff] %v620_v13  ;;  %v624_v15 = vld [vmem:[%s6728_s0 + $0x78] sm:$0xff]  ;;  %v626_v16 = vld [vmem:[%s6728_s0 + $0x100] sm:$0xff] }
  0x29   : > { %623 = vst [vmem:[%s6733_s29 + $0x70] sm:$0xff] %v622_v14  ;;  %v628_v17 = vld [vmem:[%s6728_s0 + $0x108] sm:$0xff]  ;;  %625 = vst [vmem:[%s6733_s29 + $0x78] sm:$0xff] %v624_v15  ;;  %v630_v18 = vld [vmem:[%s6728_s0 + $0x110] sm:$0xff] }
  0x2a   : > { %627 = vst [vmem:[%s6733_s29 + $0x80] sm:$0xff] %v626_v16  ;;  %629 = vst [vmem:[%s6733_s29 + $0x88] sm:$0xff] %v628_v17  ;;  %v632_v19 = vld [vmem:[%s6728_s0 + $0x118] sm:$0xff]  ;;  %v634_v20 = vld [vmem:[%s6728_s0 + $0x120] sm:$0xff] }
  0x2b   : > { %631 = vst [vmem:[%s6733_s29 + $0x90] sm:$0xff] %v630_v18  ;;  %633 = vst [vmem:[%s6733_s29 + $0x98] sm:$0xff] %v632_v19  ;;  %v636_v21 = vld [vmem:[%s6728_s0 + $0x128] sm:$0xff]  ;;  %v638_v22 = vld [vmem:[%s6728_s0 + $0x130] sm:$0xff] }
  0x2c   : > { %635 = vst [vmem:[%s6733_s29 + $0xa0] sm:$0xff] %v634_v20  ;;  %v640_v23 = vld [vmem:[%s6728_s0 + $0x138] sm:$0xff]  ;;  %637 = vst [vmem:[%s6733_s29 + $0xa8] sm:$0xff] %v636_v21  ;;  %v642_v24 = vld [vmem:[%s6728_s0 + $0x140] sm:$0xff] }
  0x2d   : > { %639 = vst [vmem:[%s6733_s29 + $0xb0] sm:$0xff] %v638_v22  ;;  %641 = vst [vmem:[%s6733_s29 + $0xb8] sm:$0xff] %v640_v23  ;;  %v644_v25 = vld [vmem:[%s6728_s0 + $0x148] sm:$0xff]  ;;  %v646_v26 = vld [vmem:[%s6728_s0 + $0x150] sm:$0xff] }
  0x2e   : > { %643 = vst [vmem:[%s6733_s29 + $0xc0] sm:$0xff] %v642_v24  ;;  %645 = vst [vmem:[%s6733_s29 + $0xc8] sm:$0xff] %v644_v25  ;;  %v648_v27 = vld [vmem:[%s6728_s0 + $0x158] sm:$0xff]  ;;  %v650_v28 = vld [vmem:[%s6728_s0 + $0x160] sm:$0xff] }
  0x2f   : > { %647 = vst [vmem:[%s6733_s29 + $0xd0] sm:$0xff] %v646_v26  ;;  %v652_v29 = vld [vmem:[%s6728_s0 + $0x168] sm:$0xff]  ;;  %649 = vst [vmem:[%s6733_s29 + $0xd8] sm:$0xff] %v648_v27  ;;  %v654_v30 = vld [vmem:[%s6728_s0 + $0x170] sm:$0xff] }
  0x30   : > { %651 = vst [vmem:[%s6733_s29 + $0xe0] sm:$0xff] %v650_v28  ;;  %653 = vst [vmem:[%s6733_s29 + $0xe8] sm:$0xff] %v652_v29  ;;  %v656_v31 = vld [vmem:[%s6728_s0 + $0x178] sm:$0xff] }
  0x31   : > { %655 = vst [vmem:[%s6733_s29 + $0xf0] sm:$0xff] %v654_v30  ;;  %657 = vst [vmem:[%s6733_s29 + $0xf8] sm:$0xff] %v656_v31 }
  0x32 PF: > { %p5479_p10 = scmp.ge.s32.totalorder %s6562_s27, 1  ;;  %p668_p11 = scmp.lt.s32.totalorder %s6562_s27, 3 }
  0x34   : > { %p669_p12 = pnand %p5479_p10, %p668_p11 }
  0x35   : > { %s5482_s19 = sshll.u32 (!%p669_p12), %s6694_s28, 1  ;;  %s8015_s30 = sld [smem:[#allocation13_spill]] (!%p669_p12) }
  0x36   : > { %672 = sbr.rel (%p669_p12) target bundleno = 12027 (0x2efb), region = 122  ;;  %p735_p13 = scmp.lt.s32.totalorder (!%p669_p12), %s5482_s19, 3 }
  0x37   : > { %s7980_s23 = smov (!%p669_p12), 64   ;;  %p740_p0 = scmp.lt.s32.totalorder (!%p669_p12), %s6694_s28, 1 }
  0x38   : > { %s8016_s2 = sld [smem:[#allocation15_spill]] (!%p669_p12)  ;;  %s7984_s27 = smov (!%p669_p12), 56  }
  0x39   : > { %s7976_s20 = smov (!%p669_p12), 120   ;;  %s7972_s18 = smov (!%p669_p12), 112  }
  0x3a   : > { %s7998_s29 = smov (!%p669_p12), 40  }
  0x3b   : > { %s8041_s19 = smov (!%p735_p13, %s5482_s19), 3  ;;  %vm749_vm0 = vcmask 523264   ;;  %v822_v46 = vld [vmem:[%s7952_s3 + $0x78] sm:$0xff]  ;;  %v821_v47 = vld [vmem:[%s7952_s3 + $0x70] sm:$0xff]  ;;  %v820_v48 = vld [vmem:[%s7952_s3 + $0x68] sm:$0xff]  ;;  %v6564_v51 = vmov 0.0   ;;  %v825_v25 = vlaneseq }
  0x3c   : > { %s5483_s21 = sshll.u32 %s8041_s19, 3  ;;  %857 = vmatprep.subr.mxu0 %v822_v46  ;;  %v819_v49 = vld [vmem:[%s7952_s3 + $0x60] sm:$0xff]  ;;  %v818_v50 = vld [vmem:[%s7952_s3 + $0x58] sm:$0xff]  ;;  %905 = vmatprep.mubr.f32.mxu0 %v6564_v51  ;;  %v817_v52 = vld [vmem:[%s7952_s3 + $0x50] sm:$0xff]  ;;  %vm924_vm5 = vcmask 64512   ;;  %vm1023_vm8 = vcmask 130048  }
  0x3d   : > { %s6802_s0 = scalar_lea.vmem %s8015_s30, %s5483_s21  ;;  %858 = vmatpush1.msra.mxu0 %v821_v47  ;;  %v816_v53 = vld [vmem:[%s7952_s3 + $0x48] sm:$0xff]  ;;  %v815_v54 = vld [vmem:[%s7952_s3 + $0x40] sm:$0xff]  ;;  %v814_v55 = vld [vmem:[%s7952_s3 + $0x38] sm:$0xff]  ;;  %v6878_v26 = vshrl.u32 %v825_v25, 7  ;;  %s6920_s21 = sand.u32 1, %s6554_s25   ;;  %vm1348_vm9 = vcmask 130112  }
  0x3e   : > { %v744_v32 = vld [vmem:[%s6802_s0] sm:$0xff]  ;;  %v745_v33 = vld [vmem:[%s6802_s0 + $0x8] sm:$0xff]  ;;  %859 = vmatprep.subr.mxu0 %v820_v48  ;;  %v813_v56 = vld [vmem:[%s7952_s3 + $0x30] sm:$0xff]  ;;  %s741_s30 = scalar_select %p740_p0, %s6694_s28, 1  ;;  %vm1568_vm10 = vcmask 195712   ;;  %vm1788_vm11 = vcmask 261312  }
  0x3f   : > { %v750_v34 = vsel %vm749_vm0, %v744_v32, 0.0  ;;  %v753_v35 = vsel %vm749_vm0, %v745_v33, 0.0  ;;  %860 = vmatpush1.msra.mxu0 %v819_v49  ;;  %v812_v57 = vld [vmem:[%s7952_s3 + $0x28] sm:$0xff]  ;;  %v811_v58 = vld [vmem:[%s7952_s3 + $0x20] sm:$0xff]  ;;  %v810_v59 = vld [vmem:[%s7952_s3 + $0x18] sm:$0xff]  ;;  %v6881_v27 = vsub.s32 0, %v6878_v26 }
  0x40   : > { %751 = vadd.xlane.f32.xlu0 %v750_v34  ;;  %861 = vmatprep.subr.mxu0 %v818_v50  ;;  %v809_v60 = vld [vmem:[%s7952_s3 + $0x10] sm:$0xff]  ;;  %v808_v61 = vld [vmem:[%s7952_s3 + $0x8] sm:$0xff]  ;;  %v807_v62 = vld [vmem:[%s7952_s3] sm:$0xff]  ;;  %s742_s19 = scalar_lea.vmem %s8016_s2, %s741_s30  ;;  %s5480_s26 = sshll.u32 %s6920_s21, 8  ;;  %vm2008_vm12 = vcmask 326912   ;;  %vm2228_vm13 = vcmask 392512  }
  0x41   : > { %862 = vmatpush1.msra.mxu0 %v817_v52  ;;  %v5484_v16 = vld [vmem:[%s7960_s11] ss:$0 sm:$0xff]  ;;  %s6924_s22 = scalar_lea.vmem [#allocation3], %s5480_s26  ;;  %s8000_s30 = smov 48   ;;  %vm2448_vm14 = vcmask 458112   ;;  %vm2668_vm15 = vcmask 523712  }
  0x42   : > { %863 = vmatprep.subr.mxu0 %v816_v53  ;;  %v5485_v18 = vld [vmem:[%s7961_s12] ss:$0 sm:$0xff]  ;;  %v1011_v47 = vld [vmem:[%s6924_s22 + $0x8] sm:$0xff]  ;;  %v1010_v52 = vld [vmem:[%s6924_s22] sm:$0xff]  ;;  %s7996_s26 = smov 32   ;;  %s8020_s2 = smov 64  }
  0x43   : > { %864 = vmatpush1.msra.mxu0 %v815_v54  ;;  %v823_v28 = vld [vmem:[%s7953_s4] sm:$0x3]  ;;  %s8021_s25 = smov 120  }
  0x44   : > { %754 = vadd.xlane.f32.xlu0 %v753_v35  ;;  %865 = vmatprep.subr.mxu0 %v814_v55  ;;  %v828_v29 = vrot.slane %v823_v28, %v6881_v27  ;;  %v831_v35 = vsub.s32 1, %v6878_v26 }
  0x45   : > { %866 = vmatpush1.msra.mxu0 %v813_v56 }
  0x46   : > { %867 = vmatprep.subr.mxu0 %v812_v57 }
  0x47   : > { %868 = vmatpush1.msra.mxu0 %v811_v58 }
  0x48   : > { %869 = vmatprep.subr.mxu0 %v810_v59 }
  0x49   : > { %870 = vmatpush1.msra.mxu0 %v809_v60 }
  0x4a   : > { %871 = vmatprep.subr.mxu0 %v808_v61 }
  0x4b   : > { %872 = vmatpush1.msra.mxu0 %v807_v62 }
  0xc9   : > { %v752_v36 = vpop.xlane.xlu0 %751 }
  0xca   : > { %v757_v37 = vmul.f32 0.015625, %v752_v36 }
  0xcc   : > { %v6808_v38 = vsub.f32 %v744_v32, %v757_v37 }
  0xcd   : > { %v755_v39 = vpop.xlane.xlu0 %754 }
  0xce   : > { %v758_v40 = vmul.f32 0.015625, %v755_v39  ;;  %v761_v41 = vmul.f32 %v6808_v38, %v6808_v38  ;;  %v832_v39 = vrot.slane %v823_v28, %v831_v35  ;;  %v5498_v28 = vld [vmem:[%s6924_s22 + $0x10] sm:$0xff] }
  0xd0   : > { %v6812_v42 = vsub.f32 %v745_v33, %v758_v40  ;;  %v763_v43 = vsel %vm749_vm0, %v761_v41, 0.0 }
  0xd1   : > { %764 = vadd.xlane.f32.xlu1 %v763_v43  ;;  %v6566_v43 = vmov 0  }
  0xd2   : > { %v762_v44 = vmul.f32 %v6812_v42, %v6812_v42 }
  0xd4   : > { %v766_v45 = vsel %vm749_vm0, %v762_v44, 0.0 }
  0xd5   : > { %767 = vadd.xlane.f32.xlu1 %v766_v45 }
 0x15a   : > { %v765_v63 = vpop.xlane.xlu1 %764 }
 0x15b   : > { %v769_v0 = vmul.f32 0.015873017, %v765_v63 }
 0x15d   : > { %6332 = vrsqrt.f32 %v769_v0  ;;  %vm773_vm1 = vcmp.eq.f32.partialorder %v769_v0, inf  ;;  %v776_v5 = vand.u32 2147483648, %v769_v0  ;;  %vm775_vm2 = vcmp.eq.f32.partialorder %v769_v0, 0.0 }
 0x15e   : > { %v768_v1 = vpop.xlane.xlu1 %767 }
 0x15f   : > { %v770_v2 = vmul.f32 0.015873017, %v768_v1 }
 0x161   : > { %6334 = vrsqrt.f32 %v770_v2  ;;  %vm780_vm3 = vcmp.eq.f32.partialorder %v770_v2, inf  ;;  %v783_v11 = vand.u32 2147483648, %v770_v2  ;;  %vm782_vm4 = vcmp.eq.f32.partialorder %v770_v2, 0.0 }
 0x16a   : > { %v6333_v3 = vpop.eup %6332 }
 0x16b   : > { %v772_v4 = vmul.f32 %v6333_v3, %v769_v0 }
 0x16d   : > { %v774_v6 = vsel %vm773_vm1, %v769_v0, %v772_v4 }
 0x16e   : > { %v6335_v7 = vpop.eup %6334  ;;  %v777_v8 = vsel %vm775_vm2, %v776_v5, %v774_v6 }
 0x16f   : > { %v785_v9 = vadd.f32 1e-06, %v777_v8  ;;  %v779_v10 = vmul.f32 %v6335_v7, %v770_v2 }
 0x171   : > { %6336 = vrcp.f32 %v785_v9  ;;  %v781_v12 = vsel %vm780_vm3, %v770_v2, %v779_v10 }
 0x172   : > { %v784_v13 = vsel %vm782_vm4, %v783_v11, %v781_v12 }
 0x173   : > { %v786_v14 = vadd.f32 1e-06, %v784_v13 }
 0x175   : > { %6338 = vrcp.f32 %v786_v14 }
 0x17e   : > { %v6337_v15 = vpop.eup %6336 }
 0x17f   : > { %v789_v17 = vmul.f32 %v6337_v15, %v6808_v38 }
 0x181   : > { %v797_v19 = vmul.f32 %v5484_v16, %v789_v17 }
 0x182   : > { %v6339_v20 = vpop.eup %6338 }
 0x183   : > { %v805_v21 = vadd.f32 %v5485_v18, %v797_v19  ;;  %v790_v22 = vmul.f32 %v6339_v20, %v6812_v42  ;;  %v746_v42 = vld [vmem:[%s742_s19] sm:$0x1]  ;;  %s7974_s19 = smov 104  }
 0x184   : > { %vm1014_vm6 = vcmp.eq.f32.partialorder %v746_v42, 0.0 }
 0x185   : > { %5486 = vmatmul.mubr.msk.f32.vlgmr.msra.gmra.mxu0 %vm749_vm0, %v805_v21  ;;  %v798_v23 = vmul.f32 %v5484_v16, %v790_v22  ;;  %v1015_v44 = vsel %vm1014_vm6, 1, %v6566_v43  ;;  %v5507_v43 = vld [vmem:[%s6924_s22 + $0x28] sm:$0xff] }
 0x186   : > { %911 = vmatprep.mubr.f32.mxu0 %v6564_v51  ;;  %v1019_v45 = vrot.slane %v1015_v44, %v6881_v27 }
 0x187   : > { %v806_v24 = vadd.f32 %v5485_v18, %v798_v23  ;;  %v5499_v23 = vld [vmem:[%s6924_s22 + $0x18] sm:$0xff] }
 0x188   : > { %vm6927_vm7 = vcmp.eq.s32.totalorder %v1019_v45, 1  ;;  %v5506_v45 = vld [vmem:[%s6924_s22 + $0x20] sm:$0xff] }
 0x189   : > { %5487 = vmatmul.mubr.msk.f32.gmra.mxu0 %vm749_vm0, %v806_v24 }
 0x245   : > { %v907_v30 = vpop.f32.mrf.mxu0 }
 0x246   : > { %v6887_v31 = vadd.f32 %v907_v30, %v828_v29 }
 0x247   : > { %v909_v32 = vpop.f32.mrf.mxu0 }
 0x248   : > { %5909 = vmatprep.mubr.msk.f32.mxu1 %vm924_vm5, %v6887_v31  ;;  %920 = vrot.lane.b32.xlu1 %v6887_v31, %s7980_s23  ;;  %v6907_v41 = vadd.f32 %v909_v32, %v832_v39 }
 0x249   : > { %v913_v33 = vpop.f32.mrf.mxu0 }
 0x24a   : > { %v6893_v34 = vadd.f32 %v913_v33, %v828_v29 }
 0x24b   : > { %v915_v37 = vpop.f32.mrf.mxu0 }
 0x24c   : > { %922 = vrot.lane.b32.xlu0 %v6893_v34, %s7980_s23  ;;  %v6903_v40 = vadd.f32 %v915_v37, %v832_v39  ;;  %s7990_s23 = smov 80  }
 0x2ba   : > { %v921_v38 = vpop.permute.xlu1 %920 }
 0x2be   : > { %v923_v36 = vpop.permute.xlu0 %922 }
 0x2bf   : > { %5905 = vmatprep.subr.msk.mxu1 %vm924_vm5, %v923_v36 }
 0x2c0   : > { %5906 = vmatpush3.xpose.msk.msra.mxu1 %vm924_vm5, %v923_v36 }
 0x2c1   : > { %5907 = vmatprep.subr.msk.mxu1 %vm924_vm5, %v921_v38 }
 0x2c4   : > { %5908 = vmatpush3.xpose.msk.msra.mxu1 %vm924_vm5, %v921_v38 }
 0x2c5   : > { %5912 = vmatprep.subr.mxu1 %v6903_v40 }
 0x2c7   : > { %5910 = vmatmul.mubr.msk.f32.vlgmr.msra.gmra.mxu1 %vm924_vm5, %v6893_v34 }
 0x2c8   : > { %5913 = vmatpush3.msra.mxu1 %v6903_v40 }
 0x2c9   : > { %5914 = vmatprep.subr.mxu1 %v6907_v41 }
 0x2ca   : > { %5915 = vmatpush3.msra.mxu1 %v6907_v41 }
 0x387   : > { %v5911_v46 = vpop.f32.mrf.mxu1 }
 0x388   : > { %v1009_v48 = vmul.f32 0.35355338, %v5911_v46 }
 0x389   : > { %v999_v50 = vpop.f32.mrf.mxu1 }
 0x38a   : > { %v1013_v53 = vadd.f32 %v1011_v47, %v1009_v48  ;;  %v1008_v54 = vmul.f32 0.35355338, %v999_v50 }
 0x38c   : > { %v1012_v55 = vadd.f32 %v1010_v52, %v1008_v54  ;;  %v1022_v56 = vsel %vm6927_vm7, -1e+09, %v1013_v53 }
 0x38d   : > { %v1027_v57 = vsel %vm1023_vm8, %v1022_v56, -inf }
 0x38e   : > { %1028 = vmax.xlane.f32.xlu0 %v1027_v57  ;;  %v1021_v58 = vsel %vm6927_vm7, -1e+09, %v1012_v55 }
 0x38f   : > { %v1024_v59 = vsel %vm1023_vm8, %v1021_v58, -inf }
 0x390   : > { %1025 = vmax.xlane.f32.xlu1 %v1024_v59 }
 0x417   : > { %v1029_v60 = vpop.xlane.xlu0 %1028 }
 0x418   : > { %v1031_v61 = vsub.f32 %v1022_v56, %v1029_v60 }
 0x419   : > { %v1026_v62 = vpop.xlane.xlu1 %1025 }
 0x41a   : > { %v1034_v63 = vmul.f32 1.442695, %v1031_v61  ;;  %v1030_v0 = vsub.f32 %v1021_v58, %v1026_v62 }
 0x41c   : > { %6340 = vpow2.f32 %v1034_v63  ;;  %v1032_v1 = vmul.f32 1.442695, %v1030_v0 }
 0x41e   : > { %6342 = vpow2.f32 %v1032_v1 }
 0x429   : > { %v6341_v2 = vpop.eup %6340 }
 0x42a   : > { %v1039_v3 = vsel %vm1023_vm8, %v6341_v2, 0.0 }
 0x42b   : > { %v6343_v4 = vpop.eup %6342  ;;  %1040 = vadd.xlane.f32.xlu1 %v1039_v3 }
 0x42c   : > { %v1036_v5 = vsel %vm1023_vm8, %v6343_v4, 0.0 }
 0x42d   : > { %1037 = vadd.xlane.f32.xlu0 %v1036_v5 }
 0x43c   : > { %1133 = vrot.lane.b32.xlu1 %v6887_v31, %s7984_s27 }
 0x440   : > { %1129 = vrot.lane.b32.xlu1 %v6887_v31, %s7976_s20 }
 0x443   : > { %1135 = vrot.lane.b32.xlu0 %v6893_v34, %s7984_s27  ;;  %s7986_s27 = smov 72  }
 0x444   : > { %1357 = vrot.lane.b32.xlu1 %v6893_v34, %s8000_s30 }
 0x447   : > { %1131 = vrot.lane.b32.xlu0 %v6893_v34, %s7976_s20 }
 0x448   : > { %1355 = vrot.lane.b32.xlu1 %v6887_v31, %s8000_s30 }
 0x44b   : > { %1351 = vrot.lane.b32.xlu0 %v6887_v31, %s7972_s18 }
 0x44c   : > { %1353 = vrot.lane.b32.xlu1 %v6893_v34, %s7972_s18 }
 0x4b4   : > { %v1041_v6 = vpop.xlane.xlu1 %1040 }
 0x4b5   : > { %6344 = vrcp.f32 %v1041_v6 }
 0x4b6   : > { %v1038_v7 = vpop.xlane.xlu0 %1037 }
 0x4b7   : > { %6346 = vrcp.f32 %v1038_v7 }
 0x4b8   : > { %v1134_v9 = vpop.permute.xlu1 %1133 }
 0x4ba   : > { %v1136_v8 = vpop.permute.xlu0 %1135 }
 0x4bb   : > { %5919 = vmatprep.subr.msk.mxu1 %vm924_vm5, %v1136_v8 }
 0x4bc   : > { %v1130_v12 = vpop.permute.xlu1 %1129 }
 0x4be   : > { %v1132_v15 = vpop.permute.xlu0 %1131 }
 0x4c0   : > { %v1358_v16 = vpop.permute.xlu1 %1357 }
 0x4c2   : > { %v6345_v10 = vpop.eup %6344  ;;  %v1352_v17 = vpop.permute.xlu0 %1351 }
 0x4c3   : > { %v1045_v14 = vmul.f32 %v6345_v10, %v6341_v2 }
 0x4c4   : > { %v6347_v11 = vpop.eup %6346  ;;  %v1356_v18 = vpop.permute.xlu1 %1355 }
 0x4c5   : > { %v1044_v13 = vmul.f32 %v6347_v11, %v6343_v4 }
 0x4c7   : > { %5916 = vmatprep.mubr.msk.f32.mxu1 %vm1023_vm8, %v1044_v13 }
 0x4c8   : > { %5917 = vmatmul.mubr.msk.f32.vlgmr.msra.gmra.mxu1 %vm1023_vm8, %v1045_v14  ;;  %v1354_v19 = vpop.permute.xlu1 %1353 }
 0x4c9   : > { %5920 = vmatpush3.xpose.msk.msra.mxu1 %vm924_vm5, %v1136_v8  ;;  %5923 = vmatprep.mubr.msk.f32.mxu1 %vm924_vm5, %v1130_v12 }
 0x4ca   : > { %5921 = vmatprep.subr.msk.mxu1 %vm924_vm5, %v1134_v9 }
 0x4cd   : > { %5922 = vmatpush3.xpose.msk.msra.mxu1 %vm924_vm5, %v1134_v9 }
 0x4ce   : > { %5933 = vmatprep.subr.msk.mxu1 %vm924_vm5, %v1358_v16 }
 0x4d0   : > { %5924 = vmatmul.mubr.msk.f32.vlgmr.msra.gmra.mxu1 %vm924_vm5, %v1132_v15 }
 0x4d1   : > { %5934 = vmatpush3.xpose.msk.msra.mxu1 %vm924_vm5, %v1358_v16  ;;  %5937 = vmatprep.mubr.msk.f32.mxu1 %vm924_vm5, %v1352_v17 }
 0x4d2   : > { %5935 = vmatprep.subr.msk.mxu1 %vm924_vm5, %v1356_v18 }
 0x4d5   : > { %5936 = vmatpush3.xpose.msk.msra.mxu1 %vm924_vm5, %v1356_v18 }
 0x4d8   : > { %5938 = vmatmul.mubr.msk.f32.vlgmr.msra.gmra.mxu1 %vm924_vm5, %v1354_v19 }
 0x588   : > { %v5918_v20 = vpop.f32.mrf.mxu1 }
 0x589   : > { %1128 = vst.msk [vmem:[#allocation2 + $0x8] sm:$0xff] %vm924_vm5, %v5918_v20 }
 0x58a   : > { %v1118_v21 = vpop.f32.mrf.mxu1 }
 0x58b   : > { %1127 = vst.msk [vmem:[#allocation2] sm:$0xff] %vm924_vm5, %v1118_v21 }
 0x590   : > { %v5925_v22 = vpop.f32.mrf.mxu1 }
 0x591   : > { %v1221_v24 = vmul.f32 0.35355338, %v5925_v22 }
 0x592   : > { %v1211_v25 = vpop.f32.mrf.mxu1 }
 0x593   : > { %v1226_v29 = vadd.f32 %v5499_v23, %v1221_v24  ;;  %v1220_v30 = vmul.f32 0.35355338, %v1211_v25 }
 0x595   : > { %v1225_v32 = vadd.f32 %v5498_v28, %v1220_v30  ;;  %v1228_v33 = vsel %vm6927_vm7, -1e+09, %v1226_v29 }
 0x596   : > { %v1232_v36 = vsel %vm1023_vm8, %v1228_v33, -inf }
 0x597   : > { %1233 = vmax.xlane.f32.xlu1 %v1232_v36  ;;  %v1227_v37 = vsel %vm6927_vm7, -1e+09, %v1225_v32 }
 0x598   : > { %v5939_v38 = vpop.f32.mrf.mxu1  ;;  %v1229_v39 = vsel %vm1023_vm8, %v1227_v37, -inf }
 0x599   : > { %v1443_v42 = vmul.f32 0.35355338, %v5939_v38  ;;  %1230 = vmax.xlane.f32.xlu0 %v1229_v39 }
 0x59a   : > { %v1433_v44 = vpop.f32.mrf.mxu1 }
 0x59b   : > { %v1442_v46 = vmul.f32 0.35355338, %v1433_v44  ;;  %v1448_v47 = vadd.f32 %v5507_v43, %v1443_v42  ;;  %v5515_v43 = vld [vmem:[%s6924_s22 + $0x38] sm:$0xff] }
 0x59d   : > { %v1447_v48 = vadd.f32 %v5506_v45, %v1442_v46  ;;  %v1450_v53 = vsel %vm6927_vm7, -1e+09, %v1448_v47  ;;  %v5514_v46 = vld [vmem:[%s6924_s22 + $0x30] sm:$0xff] }
 0x59e   : > { %v1454_v54 = vsel %vm1023_vm8, %v1450_v53, -inf }
 0x59f   : > { %v1449_v50 = vsel %vm6927_vm7, -1e+09, %v1447_v48 }
 0x5a0   : > { %v1451_v52 = vsel %vm1023_vm8, %v1449_v50, -inf }
 0x5a1   : > { %1452 = vmax.xlane.f32.xlu0 %v1451_v52 }
 0x5a5   : > { %1455 = vmax.xlane.f32.xlu0 %v1454_v54 }
 0x5a8   : > { %1253 = vrot.lane.b32.xlu1 %v6907_v41, %s7976_s20 }
 0x5ac   : > { %1475 = vrot.lane.b32.xlu1 %v6903_v40, %s7972_s18 }
 0x5b0   : > { %1473 = vrot.lane.b32.xlu1 %v6907_v41, %s7972_s18  ;;  %s7978_s18 = smov 96  }
 0x5bb   : > { %1255 = vrot.lane.b32.xlu0 %v6903_v40, %s7976_s20  ;;  %s7982_s20 = smov 88  }
 0x620   : > { %v1234_v55 = vpop.xlane.xlu1 %1233 }
 0x621   : > { %v1236_v56 = vsub.f32 %v1228_v33, %v1234_v55 }
 0x622   : > { %v1231_v57 = vpop.xlane.xlu0 %1230 }
 0x623   : > { %v1239_v58 = vmul.f32 1.442695, %v1236_v56  ;;  %v1235_v59 = vsub.f32 %v1227_v37, %v1231_v57 }
 0x624   : > { %v1254_v2 = vpop.permute.xlu1 %1253 }
 0x625   : > { %6348 = vpow2.f32 %v1239_v58  ;;  %v1237_v60 = vmul.f32 1.442695, %v1235_v59 }
 0x627   : > { %6350 = vpow2.f32 %v1237_v60 }
 0x628   : > { %v1476_v9 = vpop.permute.xlu1 %1475 }
 0x62a   : > { %v1453_v61 = vpop.xlane.xlu0 %1452 }
 0x62b   : > { %v1457_v62 = vsub.f32 %v1449_v50, %v1453_v61 }
 0x62c   : > { %v1474_v14 = vpop.permute.xlu1 %1473 }
 0x62d   : > { %v1459_v63 = vmul.f32 1.442695, %v1457_v62 }
 0x62e   : > { %v1456_v0 = vpop.xlane.xlu0 %1455 }
 0x62f   : > { %6352 = vpow2.f32 %v1459_v63  ;;  %v1458_v1 = vsub.f32 %v1450_v53, %v1456_v0 }
 0x631   : > { %v1461_v3 = vmul.f32 1.442695, %v1458_v1 }
 0x632   : > { %v6349_v4 = vpop.eup %6348  ;;  %v1256_v5 = vpop.permute.xlu0 %1255 }
 0x633   : > { %6354 = vpow2.f32 %v1461_v3  ;;  %5926 = vmatprep.subr.mxu0 %v1256_v5  ;;  %v1244_v6 = vsel %vm1023_vm8, %v6349_v4, 0.0 }
 0x634   : > { %v6351_v7 = vpop.eup %6350  ;;  %5927 = vmatpush3.msra.mxu0 %v1256_v5  ;;  %1245 = vadd.xlane.f32.xlu1 %v1244_v6 }
 0x635   : > { %5928 = vmatprep.subr.mxu0 %v1254_v2  ;;  %v1241_v8 = vsel %vm1023_vm8, %v6351_v7, 0.0 }
 0x636   : > { %1242 = vadd.xlane.f32.xlu0 %v1241_v8  ;;  %5929 = vmatpush3.msra.mxu0 %v1254_v2 }
 0x637   : > { %5940 = vmatprep.subr.mxu0 %v1476_v9 }
 0x63c   : > { %v6353_v10 = vpop.eup %6352 }
 0x63d   : > { %v1463_v11 = vsel %vm1023_vm8, %v6353_v10, 0.0 }
 0x63e   : > { %1464 = vadd.xlane.f32.xlu0 %v1463_v11 }
 0x640   : > { %v6355_v12 = vpop.eup %6354 }
 0x641   : > { %v1466_v13 = vsel %vm1023_vm8, %v6355_v12, 0.0 }
 0x642   : > { %1467 = vadd.xlane.f32.xlu1 %v1466_v13 }
 0x653   : > { %1575 = vrot.lane.b32.xlu1 %v6887_v31, %s7998_s29 }
 0x654   : > { %1577 = vrot.lane.b32.xlu0 %v6893_v34, %s7998_s29 }
 0x657   : > { %1573 = vrot.lane.b32.xlu1 %v6893_v34, %s7974_s19 }
 0x658   : > { %1571 = vrot.lane.b32.xlu0 %v6887_v31, %s7974_s19 }
 0x6bd   : > { %v1246_v15 = vpop.xlane.xlu1 %1245 }
 0x6be   : > { %6356 = vrcp.f32 %v1246_v15 }
 0x6bf   : > { %v1243_v16 = vpop.xlane.xlu0 %1242 }
 0x6c0   : > { %6358 = vrcp.f32 %v1243_v16 }
 0x6c7   : > { %v1465_v17 = vpop.xlane.xlu0 %1464 }
 0x6c8   : > { %6360 = vrcp.f32 %v1465_v17  ;;  %v5523_v17 = vld [vmem:[%s6924_s22 + $0x48] sm:$0xff] }
 0x6cb   : > { %v1468_v18 = vpop.xlane.xlu1 %1467  ;;  %v6357_v19 = vpop.eup %6356 }
 0x6cc   : > { %6362 = vrcp.f32 %v1468_v18  ;;  %v1250_v22 = vmul.f32 %v6357_v19, %v6349_v4  ;;  %v1578_v23 = vpop.permute.xlu0 %1577 }
 0x6cd   : > { %v6359_v20 = vpop.eup %6358 }
 0x6ce   : > { %v1249_v21 = vmul.f32 %v6359_v20, %v6351_v7  ;;  %v5522_v20 = vld [vmem:[%s6924_s22 + $0x40] sm:$0xff] }
 0x6cf   : > { %v1576_v32 = vpop.permute.xlu1 %1575 }
 0x6d0   : > { %5930 = vmatprep.mubr.msk.f32.mxu0 %vm1023_vm8, %v1249_v21  ;;  %v1572_v30 = vpop.permute.xlu0 %1571 }
 0x6d1   : > { %5931 = vmatmul.mubr.msk.f32.vlgmr.msra.gmra.mxu0 %vm1023_vm8, %v1250_v22 }
 0x6d2   : > { %5941 = vmatpush3.msra.mxu0 %v1476_v9 }
 0x6d3   : > { %5942 = vmatprep.subr.mxu0 %v1474_v14  ;;  %v1574_v33 = vpop.permute.xlu1 %1573 }
 0x6d4   : > { %5943 = vmatpush3.msra.mxu0 %v1474_v14 }
 0x6d5   : > { %v6361_v24 = vpop.eup %6360  ;;  %5947 = vmatprep.subr.msk.mxu0 %vm924_vm5, %v1578_v23 }
 0x6d6   : > { %v1471_v25 = vmul.f32 %v6361_v24, %v6353_v10 }
 0x6d8   : > { %5944 = vmatprep.mubr.msk.f32.mxu0 %vm1023_vm8, %v1471_v25 }
 0x6d9   : > { %v6363_v28 = vpop.eup %6362 }
 0x6da   : > { %v1472_v29 = vmul.f32 %v6363_v28, %v6355_v12 }
 0x6dc   : > { %5945 = vmatmul.mubr.msk.f32.vlgmr.msra.gmra.mxu0 %vm1023_vm8, %v1472_v29 }
 0x6dd   : > { %5948 = vmatpush3.xpose.msk.msra.mxu0 %vm924_vm5, %v1578_v23  ;;  %5951 = vmatprep.mubr.msk.f32.mxu0 %vm924_vm5, %v1572_v30 }
 0x6de   : > { %5949 = vmatprep.subr.msk.mxu0 %vm924_vm5, %v1576_v32 }
 0x6e1   : > { %5950 = vmatpush3.xpose.msk.msra.mxu0 %vm924_vm5, %v1576_v32 }
 0x6e4   : > { %5952 = vmatmul.mubr.msk.f32.vlgmr.msra.gmra.mxu0 %vm924_vm5, %v1574_v33 }
 0x791   : > { %v7018_v36 = vpop.f32.mrf.mxu0 }
 0x793   : > { %v7020_v37 = vpop.f32.mrf.mxu0 }
 0x79c   : > { %v7022_v38 = vpop.f32.mrf.mxu0 }
 0x79e   : > { %v7024_v39 = vpop.f32.mrf.mxu0 }
 0x7a4   : > { %v5953_v42 = vpop.f32.mrf.mxu0 }
 0x7a5   : > { %v1663_v44 = vmul.f32 0.35355338, %v5953_v42 }
 0x7a6   : > { %v1653_v45 = vpop.f32.mrf.mxu0 }
 0x7a7   : > { %v1668_v47 = vadd.f32 %v5515_v43, %v1663_v44  ;;  %v1662_v48 = vmul.f32 0.35355338, %v1653_v45 }
 0x7a9   : > { %v1667_v50 = vadd.f32 %v5514_v46, %v1662_v48  ;;  %v1670_v52 = vsel %vm6927_vm7, -1e+09, %v1668_v47 }
 0x7aa   : > { %v1674_v53 = vsel %vm1023_vm8, %v1670_v52, -inf }
 0x7ab   : > { %1675 = vmax.xlane.f32.xlu1 %v1674_v53  ;;  %v1669_v54 = vsel %vm6927_vm7, -1e+09, %v1667_v50 }
 0x7ac   : > { %v1671_v55 = vsel %vm1023_vm8, %v1669_v54, -inf }
 0x7ad   : > { %1672 = vmax.xlane.f32.xlu0 %v1671_v55 }
 0x7bc   : > { %1693 = vrot.lane.b32.xlu1 %v6907_v41, %s7974_s19 }
 0x7c0   : > { %1797 = vrot.lane.b32.xlu1 %v6893_v34, %s7996_s26 }
 0x7c4   : > { %1795 = vrot.lane.b32.xlu1 %v6887_v31, %s7996_s26 }
 0x7c8   : > { %1793 = vrot.lane.b32.xlu1 %v6893_v34, %s7978_s18 }
 0x834   : > { %v1676_v56 = vpop.xlane.xlu1 %1675 }
 0x835   : > { %v1678_v57 = vsub.f32 %v1670_v52, %v1676_v56 }
 0x836   : > { %v1673_v58 = vpop.xlane.xlu0 %1672 }
 0x837   : > { %v1681_v59 = vmul.f32 1.442695, %v1678_v57  ;;  %v1677_v60 = vsub.f32 %v1669_v54, %v1673_v58 }
 0x838   : > { %v1694_v4 = vpop.permute.xlu1 %1693 }
 0x839   : > { %6364 = vpow2.f32 %v1681_v59  ;;  %v1679_v61 = vmul.f32 1.442695, %v1677_v60 }
 0x83b   : > { %6366 = vpow2.f32 %v1679_v61 }
 0x83c   : > { %v1798_v6 = vpop.permute.xlu1 %1797 }
 0x840   : > { %v1796_v12 = vpop.permute.xlu1 %1795 }
 0x844   : > { %v1794_v13 = vpop.permute.xlu1 %1793 }
 0x846   : > { %v6365_v62 = vpop.eup %6364 }
 0x847   : > { %v1686_v63 = vsel %vm1023_vm8, %v6365_v62, 0.0 }
 0x848   : > { %v6367_v0 = vpop.eup %6366  ;;  %1687 = vadd.xlane.f32.xlu0 %v1686_v63 }
 0x849   : > { %v1683_v1 = vsel %vm1023_vm8, %v6367_v0, 0.0 }
 0x84c   : > { %1684 = vadd.xlane.f32.xlu0 %v1683_v1 }
 0x862   : > { %1695 = vrot.lane.b32.xlu0 %v6903_v40, %s7974_s19  ;;  %s7994_s19 = smov 24  }
 0x866   : > { %1791 = vrot.lane.b32.xlu0 %v6887_v31, %s7978_s18 }
 0x8d1   : > { %v1688_v2 = vpop.xlane.xlu0 %1687 }
 0x8d2   : > { %6368 = vrcp.f32 %v1688_v2  ;;  %v5531_v2 = vld [vmem:[%s6924_s22 + $0x58] sm:$0xff] }
 0x8d5   : > { %v1685_v3 = vpop.xlane.xlu0 %1684 }
 0x8d6   : > { %6370 = vrcp.f32 %v1685_v3 }
 0x8d9   : > { %v1696_v5 = vpop.permute.xlu0 %1695 }
 0x8da   : > { %5954 = vmatprep.subr.mxu1 %v1696_v5 }
 0x8db   : > { %5955 = vmatpush3.msra.mxu1 %v1696_v5  ;;  %v5530_v5 = vld [vmem:[%s6924_s22 + $0x50] sm:$0xff] }
 0x8dc   : > { %5956 = vmatprep.subr.mxu1 %v1694_v4 }
 0x8dd   : > { %5957 = vmatpush3.msra.mxu1 %v1694_v4  ;;  %v1792_v11 = vpop.permute.xlu0 %1791 }
 0x8de   : > { %5961 = vmatprep.subr.msk.mxu1 %vm924_vm5, %v1798_v6 }
 0x8df   : > { %v6369_v7 = vpop.eup %6368 }
 0x8e0   : > { %v1692_v10 = vmul.f32 %v6369_v7, %v6365_v62 }
 0x8e3   : > { %v6371_v8 = vpop.eup %6370 }
 0x8e4   : > { %v1691_v9 = vmul.f32 %v6371_v8, %v6367_v0 }
 0x8e6   : > { %5958 = vmatprep.mubr.msk.f32.mxu1 %vm1023_vm8, %v1691_v9 }
 0x8e7   : > { %5959 = vmatmul.mubr.msk.f32.vlgmr.msra.gmra.mxu1 %vm1023_vm8, %v1692_v10 }
 0x8e8   : > { %5962 = vmatpush3.xpose.msk.msra.mxu1 %vm924_vm5, %v1798_v6  ;;  %5965 = vmatprep.mubr.msk.f32.mxu1 %vm924_vm5, %v1792_v11 }
 0x8e9   : > { %5963 = vmatprep.subr.msk.mxu1 %vm924_vm5, %v1796_v12 }
 0x8ec   : > { %5964 = vmatpush3.xpose.msk.msra.mxu1 %vm924_vm5, %v1796_v12 }
 0x8ef   : > { %5966 = vmatmul.mubr.msk.f32.vlgmr.msra.gmra.mxu1 %vm924_vm5, %v1794_v13 }
 0x9a7   : > { %v7056_v14 = vpop.f32.mrf.mxu1 }
 0x9a9   : > { %v7058_v15 = vpop.f32.mrf.mxu1 }
 0x9af   : > { %v5967_v16 = vpop.f32.mrf.mxu1 }
 0x9b0   : > { %v1883_v18 = vmul.f32 0.35355338, %v5967_v16 }
 0x9b1   : > { %v1873_v19 = vpop.f32.mrf.mxu1 }
 0x9b2   : > { %v1888_v21 = vadd.f32 %v5523_v17, %v1883_v18  ;;  %v1882_v22 = vmul.f32 0.35355338, %v1873_v19 }
 0x9b4   : > { %v1887_v23 = vadd.f32 %v5522_v20, %v1882_v22  ;;  %v1890_v24 = vsel %vm6927_vm7, -1e+09, %v1888_v21 }
 0x9b5   : > { %v1894_v25 = vsel %vm1023_vm8, %v1890_v24, -inf }
 0x9b6   : > { %1895 = vmax.xlane.f32.xlu1 %v1894_v25  ;;  %v1889_v28 = vsel %vm6927_vm7, -1e+09, %v1887_v23 }
 0x9b7   : > { %v1891_v29 = vsel %vm1023_vm8, %v1889_v28, -inf }
 0x9b8   : > { %1892 = vmax.xlane.f32.xlu0 %v1891_v29 }
 0x9c7   : > { %1913 = vrot.lane.b32.xlu1 %v6907_v41, %s7978_s18 }
 0x9cb   : > { %2017 = vrot.lane.b32.xlu1 %v6893_v34, %s7994_s19 }
 0x9cf   : > { %2015 = vrot.lane.b32.xlu1 %v6887_v31, %s7994_s19 }
 0x9d3   : > { %2013 = vrot.lane.b32.xlu1 %v6893_v34, %s7982_s20 }
 0xa3f   : > { %v1896_v30 = vpop.xlane.xlu1 %1895 }
 0xa40   : > { %v1898_v32 = vsub.f32 %v1890_v24, %v1896_v30 }
 0xa41   : > { %v1893_v33 = vpop.xlane.xlu0 %1892 }
 0xa42   : > { %v1901_v42 = vmul.f32 1.442695, %v1898_v32  ;;  %v1897_v43 = vsub.f32 %v1889_v28, %v1893_v33 }
 0xa43   : > { %v1914_v53 = vpop.permute.xlu1 %1913 }
 0xa44   : > { %6372 = vpow2.f32 %v1901_v42  ;;  %v1899_v44 = vmul.f32 1.442695, %v1897_v43 }
 0xa46   : > { %6374 = vpow2.f32 %v1899_v44 }
 0xa47   : > { %v2018_v55 = vpop.permute.xlu1 %2017 }
 0xa4b   : > { %v2016_v61 = vpop.permute.xlu1 %2015 }
 0xa4f   : > { %v2014_v62 = vpop.permute.xlu1 %2013 }
 0xa51   : > { %v6373_v45 = vpop.eup %6372 }
 0xa52   : > { %v1906_v46 = vsel %vm1023_vm8, %v6373_v45, 0.0 }
 0xa53   : > { %v6375_v47 = vpop.eup %6374  ;;  %1907 = vadd.xlane.f32.xlu0 %v1906_v46 }
 0xa54   : > { %v1903_v48 = vsel %vm1023_vm8, %v6375_v47, 0.0 }
 0xa57   : > { %1904 = vadd.xlane.f32.xlu0 %v1903_v48 }
 0xa6d   : > { %1915 = vrot.lane.b32.xlu0 %v6903_v40, %s7978_s18  ;;  %s7992_s18 = smov 16  }
 0xa71   : > { %2011 = vrot.lane.b32.xlu0 %v6887_v31, %s7982_s20 }
 0xadc   : > { %v1908_v50 = vpop.xlane.xlu0 %1907 }
 0xadd   : > { %6376 = vrcp.f32 %v1908_v50 }
 0xae0   : > { %v1905_v52 = vpop.xlane.xlu0 %1904 }
 0xae1   : > { %6378 = vrcp.f32 %v1905_v52 }
 0xae4   : > { %v1916_v54 = vpop.permute.xlu0 %1915 }
 0xae5   : > { %5968 = vmatprep.subr.mxu0 %v1916_v54 }
 0xae6   : > { %5969 = vmatpush3.msra.mxu0 %v1916_v54 }
 0xae7   : > { %5970 = vmatprep.subr.mxu0 %v1914_v53 }
 0xae8   : > { %5971 = vmatpush3.msra.mxu0 %v1914_v53  ;;  %v2012_v60 = vpop.permute.xlu0 %2011  ;;  %v5539_v53 = vld [vmem:[%s6924_s22 + $0x68] sm:$0xff] }
 0xae9   : > { %5975 = vmatprep.subr.msk.mxu0 %vm924_vm5, %v2018_v55 }
 0xaea   : > { %v6377_v56 = vpop.eup %6376 }
 0xaeb   : > { %v1912_v59 = vmul.f32 %v6377_v56, %v6373_v45  ;;  %v5538_v56 = vld [vmem:[%s6924_s22 + $0x60] sm:$0xff] }
 0xaee   : > { %v6379_v57 = vpop.eup %6378 }
 0xaef   : > { %v1911_v58 = vmul.f32 %v6379_v57, %v6375_v47 }
 0xaf1   : > { %5972 = vmatprep.mubr.msk.f32.mxu0 %vm1023_vm8, %v1911_v58 }
 0xaf2   : > { %5973 = vmatmul.mubr.msk.f32.vlgmr.msra.gmra.mxu0 %vm1023_vm8, %v1912_v59 }
 0xaf3   : > { %5976 = vmatpush3.xpose.msk.msra.mxu0 %vm924_vm5, %v2018_v55  ;;  %5979 = vmatprep.mubr.msk.f32.mxu0 %vm924_vm5, %v2012_v60 }
 0xaf4   : > { %5977 = vmatprep.subr.msk.mxu0 %vm924_vm5, %v2016_v61 }
 0xaf7   : > { %5978 = vmatpush3.xpose.msk.msra.mxu0 %vm924_vm5, %v2016_v61 }
 0xafa   : > { %5980 = vmatmul.mubr.msk.f32.vlgmr.msra.gmra.mxu0 %vm924_vm5, %v2014_v62 }
 0xbb2   : > { %v7090_v63 = vpop.f32.mrf.mxu0 }
 0xbb4   : > { %v7092_v0 = vpop.f32.mrf.mxu0 }
 0xbba   : > { %v5981_v1 = vpop.f32.mrf.mxu0 }
 0xbbb   : > { %v2103_v3 = vmul.f32 0.35355338, %v5981_v1 }
 0xbbc   : > { %v2093_v4 = vpop.f32.mrf.mxu0 }
 0xbbd   : > { %v2108_v6 = vadd.f32 %v5531_v2, %v2103_v3  ;;  %v2102_v7 = vmul.f32 0.35355338, %v2093_v4 }
 0xbbf   : > { %v2107_v8 = vadd.f32 %v5530_v5, %v2102_v7  ;;  %v2110_v9 = vsel %vm6927_vm7, -1e+09, %v2108_v6 }
 0xbc0   : > { %v2114_v10 = vsel %vm1023_vm8, %v2110_v9, -inf }
 0xbc1   : > { %2115 = vmax.xlane.f32.xlu1 %v2114_v10  ;;  %v2109_v11 = vsel %vm6927_vm7, -1e+09, %v2107_v8 }
 0xbc2   : > { %v2111_v12 = vsel %vm1023_vm8, %v2109_v11, -inf }
 0xbc3   : > { %2112 = vmax.xlane.f32.xlu0 %v2111_v12 }
 0xbd2   : > { %2133 = vrot.lane.b32.xlu1 %v6907_v41, %s7982_s20 }
 0xbd6   : > { %2237 = vrot.lane.b32.xlu1 %v6893_v34, %s7992_s18 }
 0xbda   : > { %2235 = vrot.lane.b32.xlu1 %v6887_v31, %s7992_s18 }
 0xbde   : > { %2233 = vrot.lane.b32.xlu1 %v6893_v34, %s7990_s23 }
 0xc4a   : > { %v2116_v13 = vpop.xlane.xlu1 %2115 }
 0xc4b   : > { %v2118_v16 = vsub.f32 %v2110_v9, %v2116_v13 }
 0xc4c   : > { %v2113_v17 = vpop.xlane.xlu0 %2112 }
 0xc4d   : > { %v2121_v18 = vmul.f32 1.442695, %v2118_v16  ;;  %v2117_v19 = vsub.f32 %v2109_v11, %v2113_v17 }
 0xc4e   : > { %v2134_v29 = vpop.permute.xlu1 %2133 }
 0xc4f   : > { %6380 = vpow2.f32 %v2121_v18  ;;  %v2119_v20 = vmul.f32 1.442695, %v2117_v19 }
 0xc51   : > { %6382 = vpow2.f32 %v2119_v20 }
 0xc52   : > { %v2238_v32 = vpop.permute.xlu1 %2237 }
 0xc56   : > { %v2236_v46 = vpop.permute.xlu1 %2235 }
 0xc5a   : > { %v2234_v47 = vpop.permute.xlu1 %2233 }
 0xc5c   : > { %v6381_v21 = vpop.eup %6380 }
 0xc5d   : > { %v2126_v22 = vsel %vm1023_vm8, %v6381_v21, 0.0 }
 0xc5e   : > { %v6383_v23 = vpop.eup %6382  ;;  %2127 = vadd.xlane.f32.xlu0 %v2126_v22 }
 0xc5f   : > { %v2123_v24 = vsel %vm1023_vm8, %v6383_v23, 0.0 }
 0xc62   : > { %2124 = vadd.xlane.f32.xlu0 %v2123_v24 }
 0xc78   : > { %2135 = vrot.lane.b32.xlu0 %v6903_v40, %s7982_s20  ;;  %s7988_s20 = smov 8  }
 0xc7c   : > { %2231 = vrot.lane.b32.xlu0 %v6887_v31, %s7990_s23 }
 0xce7   : > { %v2128_v25 = vpop.xlane.xlu0 %2127 }
 0xce8   : > { %6384 = vrcp.f32 %v2128_v25 }
 0xceb   : > { %v2125_v28 = vpop.xlane.xlu0 %2124 }
 0xcec   : > { %6386 = vrcp.f32 %v2125_v28 }
 0xcef   : > { %v2136_v30 = vpop.permute.xlu0 %2135 }
 0xcf0   : > { %5982 = vmatprep.subr.mxu1 %v2136_v30 }
 0xcf1   : > { %5983 = vmatpush3.msra.mxu1 %v2136_v30 }
 0xcf2   : > { %5984 = vmatprep.subr.mxu1 %v2134_v29 }
 0xcf3   : > { %5985 = vmatpush3.msra.mxu1 %v2134_v29  ;;  %v2232_v45 = vpop.permute.xlu0 %2231  ;;  %v5547_v29 = vld [vmem:[%s6924_s22 + $0x78] sm:$0xff] }
 0xcf4   : > { %5989 = vmatprep.subr.msk.mxu1 %vm924_vm5, %v2238_v32 }
 0xcf5   : > { %v6385_v33 = vpop.eup %6384 }
 0xcf6   : > { %v2132_v44 = vmul.f32 %v6385_v33, %v6381_v21  ;;  %v5546_v33 = vld [vmem:[%s6924_s22 + $0x70] sm:$0xff] }
 0xcf9   : > { %v6387_v42 = vpop.eup %6386 }
 0xcfa   : > { %v2131_v43 = vmul.f32 %v6387_v42, %v6383_v23 }
 0xcfc   : > { %5986 = vmatprep.mubr.msk.f32.mxu1 %vm1023_vm8, %v2131_v43 }
 0xcfd   : > { %5987 = vmatmul.mubr.msk.f32.vlgmr.msra.gmra.mxu1 %vm1023_vm8, %v2132_v44 }
 0xcfe   : > { %5990 = vmatpush3.xpose.msk.msra.mxu1 %vm924_vm5, %v2238_v32  ;;  %5993 = vmatprep.mubr.msk.f32.mxu1 %vm924_vm5, %v2232_v45 }
 0xcff   : > { %5991 = vmatprep.subr.msk.mxu1 %vm924_vm5, %v2236_v46 }
 0xd02   : > { %5992 = vmatpush3.xpose.msk.msra.mxu1 %vm924_vm5, %v2236_v46 }
 0xd05   : > { %5994 = vmatmul.mubr.msk.f32.vlgmr.msra.gmra.mxu1 %vm924_vm5, %v2234_v47 }
 0xdbd   : > { %v7124_v48 = vpop.f32.mrf.mxu1 }
 0xdbf   : > { %v7126_v50 = vpop.f32.mrf.mxu1 }
 0xdc5   : > { %v5995_v52 = vpop.f32.mrf.mxu1 }
 0xdc6   : > { %v2323_v54 = vmul.f32 0.35355338, %v5995_v52 }
 0xdc7   : > { %v2313_v55 = vpop.f32.mrf.mxu1 }
 0xdc8   : > { %v2328_v57 = vadd.f32 %v5539_v53, %v2323_v54  ;;  %v2322_v58 = vmul.f32 0.35355338, %v2313_v55 }
 0xdca   : > { %v2327_v59 = vadd.f32 %v5538_v56, %v2322_v58  ;;  %v2330_v60 = vsel %vm6927_vm7, -1e+09, %v2328_v57 }
 0xdcb   : > { %v2334_v61 = vsel %vm1023_vm8, %v2330_v60, -inf }
 0xdcc   : > { %2335 = vmax.xlane.f32.xlu1 %v2334_v61  ;;  %v2329_v62 = vsel %vm6927_vm7, -1e+09, %v2327_v59 }
 0xdcd   : > { %v2331_v1 = vsel %vm1023_vm8, %v2329_v62, -inf }
 0xdce   : > { %2332 = vmax.xlane.f32.xlu0 %v2331_v1 }
 0xddd   : > { %2353 = vrot.lane.b32.xlu1 %v6907_v41, %s7990_s23 }
 0xde1   : > { %2457 = vrot.lane.b32.xlu1 %v6893_v34, %s7988_s20 }
 0xde5   : > { %2455 = vrot.lane.b32.xlu1 %v6887_v31, %s7988_s20 }
 0xde9   : > { %2453 = vrot.lane.b32.xlu1 %v6893_v34, %s7986_s27 }
 0xe55   : > { %v2336_v2 = vpop.xlane.xlu1 %2335 }
 0xe56   : > { %v2338_v3 = vsub.f32 %v2330_v60, %v2336_v2 }
 0xe57   : > { %v2333_v4 = vpop.xlane.xlu0 %2332 }
 0xe58   : > { %v2341_v5 = vmul.f32 1.442695, %v2338_v3  ;;  %v2337_v6 = vsub.f32 %v2329_v62, %v2333_v4 }
 0xe59   : > { %v2354_v13 = vpop.permute.xlu1 %2353 }
 0xe5a   : > { %6388 = vpow2.f32 %v2341_v5  ;;  %v2339_v7 = vmul.f32 1.442695, %v2337_v6 }
 0xe5c   : > { %6390 = vpow2.f32 %v2339_v7 }
 0xe5d   : > { %v2458_v17 = vpop.permute.xlu1 %2457 }
 0xe61   : > { %v2456_v22 = vpop.permute.xlu1 %2455 }
 0xe65   : > { %v2454_v23 = vpop.permute.xlu1 %2453 }
 0xe67   : > { %v6389_v8 = vpop.eup %6388 }
 0xe68   : > { %v2346_v9 = vsel %vm1023_vm8, %v6389_v8, 0.0 }
 0xe69   : > { %v6391_v10 = vpop.eup %6390  ;;  %2347 = vadd.xlane.f32.xlu0 %v2346_v9  ;;  %v2680_v9 = vld [vmem:[%s7954_s5 + $0x38] sm:$0xff] }
 0xe6a   : > { %v2343_v11 = vsel %vm1023_vm8, %v6391_v10, 0.0 }
 0xe6d   : > { %2344 = vadd.xlane.f32.xlu0 %v2343_v11  ;;  %v2678_v11 = vld [vmem:[%s7954_s5 + $0x28] sm:$0xff] }
 0xe83   : > { %2355 = vrot.lane.b32.xlu0 %v6903_v40, %s7990_s23  ;;  %s8029_s23 = smov 88  }
 0xe87   : > { %2451 = vrot.lane.b32.xlu0 %v6887_v31, %s7986_s27 }
 0xef2   : > { %v2348_v34 = vpop.xlane.xlu0 %2347 }
 0xef3   : > { %6392 = vrcp.f32 %v2348_v34  ;;  %v2677_v34 = vld [vmem:[%s7954_s5 + $0x20] sm:$0xff] }
 0xef6   : > { %v2345_v12 = vpop.xlane.xlu0 %2344 }
 0xef7   : > { %6394 = vrcp.f32 %v2345_v12  ;;  %v2676_v12 = vld [vmem:[%s7954_s5 + $0x18] sm:$0xff] }
 0xefa   : > { %v2356_v16 = vpop.permute.xlu0 %2355 }
 0xefb   : > { %5996 = vmatprep.subr.mxu0 %v2356_v16 }
 0xefc   : > { %5997 = vmatpush3.msra.mxu0 %v2356_v16  ;;  %v2674_v16 = vld [vmem:[%s7954_s5 + $0x8] sm:$0xff] }
 0xefd   : > { %5998 = vmatprep.subr.mxu0 %v2354_v13 }
 0xefe   : > { %5999 = vmatpush3.msra.mxu0 %v2354_v13  ;;  %v2452_v31 = vpop.permute.xlu0 %2451  ;;  %v2675_v13 = vld [vmem:[%s7954_s5 + $0x10] sm:$0xff] }
 0xeff   : > { %6003 = vmatprep.subr.msk.mxu0 %vm924_vm5, %v2458_v17 }
 0xf00   : > { %v6393_v18 = vpop.eup %6392 }
 0xf01   : > { %v2352_v21 = vmul.f32 %v6393_v18, %v6389_v8 }
 0xf04   : > { %v6395_v19 = vpop.eup %6394 }
 0xf05   : > { %v2351_v20 = vmul.f32 %v6395_v19, %v6391_v10  ;;  %v2679_v10 = vld [vmem:[%s7954_s5 + $0x30] sm:$0xff] }
 0xf07   : > { %6000 = vmatprep.mubr.msk.f32.mxu0 %vm1023_vm8, %v2351_v20 }
 0xf08   : > { %6001 = vmatmul.mubr.msk.f32.vlgmr.msra.gmra.mxu0 %vm1023_vm8, %v2352_v21 }
 0xf09   : > { %6004 = vmatpush3.xpose.msk.msra.mxu0 %vm924_vm5, %v2458_v17  ;;  %6007 = vmatprep.mubr.msk.f32.mxu0 %vm924_vm5, %v2452_v31  ;;  %v2673_v17 = vld [vmem:[%s7954_s5] sm:$0xff] }
 0xf0a   : > { %6005 = vmatprep.subr.msk.mxu0 %vm924_vm5, %v2456_v22 }
 0xf0d   : > { %6006 = vmatpush3.xpose.msk.msra.mxu0 %vm924_vm5, %v2456_v22 }
 0xf0e   : > { %6017 = vmatprep.subr.mxu0 %v2680_v9 }
 0xf10   : > { %6008 = vmatmul.mubr.msk.f32.vlgmr.msra.gmra.mxu0 %vm924_vm5, %v2454_v23 }
 0xf11   : > { %6018 = vmatpush3.msra.mxu0 %v2680_v9 }
 0xf12   : > { %6019 = vmatprep.subr.mxu0 %v2679_v10 }
 0xf13   : > { %6020 = vmatpush3.msra.mxu0 %v2679_v10 }
 0xf14   : > { %6021 = vmatprep.subr.mxu0 %v2678_v11 }
 0xf15   : > { %6022 = vmatpush3.msra.mxu0 %v2678_v11 }
 0xf16   : > { %6023 = vmatprep.subr.mxu0 %v2677_v34 }
 0xf17   : > { %6024 = vmatpush3.msra.mxu0 %v2677_v34 }
 0xf18   : > { %6025 = vmatprep.subr.mxu0 %v2676_v12 }
 0xf19   : > { %6026 = vmatpush3.msra.mxu0 %v2676_v12 }
 0xf1a   : > { %6027 = vmatprep.subr.mxu0 %v2675_v13 }
 0xf1b   : > { %6028 = vmatpush3.msra.mxu0 %v2675_v13 }
 0xf1c   : > { %6029 = vmatprep.subr.mxu0 %v2674_v16 }
 0xf1d   : > { %6030 = vmatpush3.msra.mxu0 %v2674_v16 }
 0xf1e   : > { %6031 = vmatprep.subr.mxu0 %v2673_v17 }
 0xf1f   : > { %6032 = vmatpush3.msra.mxu0 %v2673_v17 }
 0xfc8   : > { %v6002_v24 = vpop.f32.mrf.mxu0 }
 0xfca   : > { %v2431_v25 = vpop.f32.mrf.mxu0 }
 0xfd0   : > { %v6009_v28 = vpop.f32.mrf.mxu0 }
 0xfd1   : > { %v2543_v30 = vmul.f32 0.35355338, %v6009_v28 }
 0xfd2   : > { %v2533_v32 = vpop.f32.mrf.mxu0 }
 0xfd3   : > { %v2548_v42 = vadd.f32 %v5547_v29, %v2543_v30  ;;  %v2542_v43 = vmul.f32 0.35355338, %v2533_v32  ;;  %v6501_v32 = vld [vmem:[%s6802_s0] sm:$0xff] }
 0xfd5   : > { %v2547_v44 = vadd.f32 %v5546_v33, %v2542_v43  ;;  %v2550_v45 = vsel %vm6927_vm7, -1e+09, %v2548_v42 }
 0xfd6   : > { %v2554_v46 = vsel %vm1023_vm8, %v2550_v45, -inf }
 0xfd7   : > { %2555 = vmax.xlane.f32.xlu1 %v2554_v46  ;;  %v2549_v47 = vsel %vm6927_vm7, -1e+09, %v2547_v44 }
 0xfd8   : > { %v2551_v52 = vsel %vm1023_vm8, %v2549_v47, -inf }
 0xfd9   : > { %2552 = vmax.xlane.f32.xlu0 %v2551_v52 }
 0xfe8   : > { %2573 = vrot.lane.b32.xlu1 %v6907_v41, %s7986_s27 }
 0xfec   : > { %1342 = vrot.lane.b32.xlu1 %v7020_v37, %s7988_s20 }
 0xff0   : > { %1344 = vrot.lane.b32.xlu1 %v7018_v36, %s7988_s20  ;;  %s8028_s20 = smov 24  }
 0xff4   : > { %1564 = vrot.lane.b32.xlu1 %v7022_v38, %s7992_s18 }
 0xff8   : > { %1784 = vrot.lane.b32.xlu1 %v7056_v14, %s7994_s19 }
 0xffc   : > { %2004 = vrot.lane.b32.xlu1 %v7090_v63, %s7996_s26 }
0x1000   : > { %2224 = vrot.lane.b32.xlu1 %v7124_v48, %s7998_s29 }
0x1004   : > { %2444 = vrot.lane.b32.xlu1 %v6002_v24, %s8000_s30  ;;  %v5552_v24 = vld [vmem:[%s7955_s6] ss:$0 sm:$0xff] }
0x1060   : > { %v2556_v41 = vpop.xlane.xlu1 %2555 }
0x1061   : > { %v2558_v53 = vsub.f32 %v2550_v45, %v2556_v41 }
0x1062   : > { %v2553_v37 = vpop.xlane.xlu0 %2552 }
0x1063   : > { %v2561_v54 = vmul.f32 1.442695, %v2558_v53  ;;  %v2557_v55 = vsub.f32 %v2549_v47, %v2553_v37 }
0x1064   : > { %v2574_v36 = vpop.permute.xlu1 %2573 }
0x1065   : > { %6396 = vpow2.f32 %v2561_v54  ;;  %v2559_v56 = vmul.f32 1.442695, %v2557_v55 }
0x1067   : > { %6398 = vpow2.f32 %v2559_v56  ;;  %v2838_v56 = vld [vmem:[%s7956_s7 + $0x38] sm:$0xff] }
0x1068   : > { %v1343_v38 = vpop.permute.xlu1 %1342  ;;  %6036 = vmatprep.subr.mxu0 %v2838_v56 }
0x1069   : > { %1349 = vst.msk [vmem:[#allocation2] sm:$0xff] %vm1348_vm9, %v1343_v38  ;;  %v2837_v38 = vld [vmem:[%s7956_s7 + $0x30] sm:$0xff] }
0x106c   : > { %v1345_v14 = vpop.permute.xlu1 %1344 }
0x106d   : > { %1350 = vst.msk [vmem:[#allocation2 + $0x8] sm:$0xff] %vm1348_vm9, %v1345_v14  ;;  %v2836_v14 = vld [vmem:[%s7956_s7 + $0x28] sm:$0xff] }
0x1070   : > { %v1565_v63 = vpop.permute.xlu1 %1564 }
0x1071   : > { %1570 = vst.msk [vmem:[#allocation2 + $0x8] sm:$0xff] %vm1568_vm10, %v1565_v63  ;;  %v2835_v63 = vld [vmem:[%s7956_s7 + $0x20] sm:$0xff] }
0x1072   : > { %v6397_v48 = vpop.eup %6396 }
0x1073   : > { %v2566_v57 = vsel %vm1023_vm8, %v6397_v48, 0.0 }
0x1074   : > { %v6399_v58 = vpop.eup %6398  ;;  %v1785_v59 = vpop.permute.xlu1 %1784  ;;  %2567 = vadd.xlane.f32.xlu0 %v2566_v57  ;;  %v2833_v57 = vld [vmem:[%s7956_s7 + $0x10] sm:$0xff] }
0x1075   : > { %1790 = vst.msk [vmem:[#allocation2 + $0x8] sm:$0xff] %vm1788_vm11, %v1785_v59  ;;  %v2563_v60 = vsel %vm1023_vm8, %v6399_v58, 0.0  ;;  %v2831_v59 = vld [vmem:[%s7956_s7] sm:$0xff] }
0x1078   : > { %v2005_v61 = vpop.permute.xlu1 %2004  ;;  %2564 = vadd.xlane.f32.xlu0 %v2563_v60  ;;  %v2944_v60 = vld [vmem:[%s7958_s9 + $0x78] sm:$0xff] }
0x1079   : > { %2010 = vst.msk [vmem:[#allocation2 + $0x8] sm:$0xff] %vm2008_vm12, %v2005_v61  ;;  %v2943_v61 = vld [vmem:[%s7958_s9 + $0x70] sm:$0xff] }
0x107c   : > { %v2225_v62 = vpop.permute.xlu1 %2224 }
0x107d   : > { %2230 = vst.msk [vmem:[#allocation2 + $0x8] sm:$0xff] %vm2228_vm13, %v2225_v62  ;;  %v2942_v62 = vld [vmem:[%s7958_s9 + $0x68] sm:$0xff] }
0x1080   : > { %v2445_v1 = vpop.permute.xlu1 %2444 }
0x1081   : > { %2450 = vst.msk [vmem:[#allocation2 + $0x8] sm:$0xff] %vm2448_vm14, %v2445_v1  ;;  %v2941_v1 = vld [vmem:[%s7958_s9 + $0x60] sm:$0xff] }
0x108e   : > { %2575 = vrot.lane.b32.xlu0 %v6903_v40, %s7986_s27  ;;  %s8019_s27 = smov 56  }
0x1092   : > { %1562 = vrot.lane.b32.xlu0 %v7024_v39, %s7992_s18  ;;  %s8023_s18 = smov 112  }
0x1096   : > { %1782 = vrot.lane.b32.xlu0 %v7058_v15, %s7994_s19  ;;  %s8024_s19 = smov 40  }
0x109a   : > { %2002 = vrot.lane.b32.xlu0 %v7092_v0, %s7996_s26  ;;  %s8025_s26 = smov 104  }
0x109e   : > { %2222 = vrot.lane.b32.xlu0 %v7126_v50, %s7998_s29  ;;  %s8027_s29 = smov 96  }
0x10a2   : > { %2442 = vrot.lane.b32.xlu0 %v2431_v25, %s8000_s30  ;;  %v6500_v25 = vld [vmem:[%s6802_s0 + $0x8] sm:$0xff]  ;;  %s8022_s0 = smov 48   ;;  %s8026_s30 = smov 32  }
0x10fd   : > { %v2568_v2 = vpop.xlane.xlu0 %2567 }
0x10fe   : > { %6400 = vrcp.f32 %v2568_v2  ;;  %v2940_v2 = vld [vmem:[%s7958_s9 + $0x58] sm:$0xff] }
0x1101   : > { %v2565_v3 = vpop.xlane.xlu0 %2564 }
0x1102   : > { %6402 = vrcp.f32 %v2565_v3  ;;  %v2939_v3 = vld [vmem:[%s7958_s9 + $0x50] sm:$0xff] }
0x1105   : > { %v2576_v4 = vpop.permute.xlu0 %2575 }
0x1106   : > { %6010 = vmatprep.subr.mxu1 %v2576_v4 }
0x1107   : > { %6011 = vmatpush3.msra.mxu1 %v2576_v4  ;;  %v2938_v4 = vld [vmem:[%s7958_s9 + $0x48] sm:$0xff] }
0x1108   : > { %6012 = vmatprep.subr.mxu1 %v2574_v36 }
0x1109   : > { %6013 = vmatpush3.msra.mxu1 %v2574_v36  ;;  %v1563_v40 = vpop.permute.xlu0 %1562 }
0x110a   : > { %1569 = vst.msk [vmem:[#allocation2] sm:$0xff] %vm1568_vm10, %v1563_v40  ;;  %6055 = vmatprep.subr.mxu1 %v2944_v60  ;;  %v2937_v40 = vld [vmem:[%s7958_s9 + $0x40] sm:$0xff] }
0x110b   : > { %v6401_v15 = vpop.eup %6400 }
0x110c   : > { %v2572_v6 = vmul.f32 %v6401_v15, %v6397_v48  ;;  %v2834_v48 = vld [vmem:[%s7956_s7 + $0x18] sm:$0xff]  ;;  %v2935_v15 = vld [vmem:[%s7958_s9 + $0x30] sm:$0xff] }
0x110d   : > { %v1783_v39 = vpop.permute.xlu0 %1782 }
0x110e   : > { %1789 = vst.msk [vmem:[#allocation2] sm:$0xff] %vm1788_vm11, %v1783_v39  ;;  %v2936_v39 = vld [vmem:[%s7958_s9 + $0x38] sm:$0xff] }
0x110f   : > { %v6403_v0 = vpop.eup %6402 }
0x1110   : > { %v2571_v50 = vmul.f32 %v6403_v0, %v6399_v58  ;;  %v2832_v58 = vld [vmem:[%s7956_s7 + $0x8] sm:$0xff] }
0x1111   : > { %v2003_v5 = vpop.permute.xlu0 %2002  ;;  %v2934_v0 = vld [vmem:[%s7958_s9 + $0x28] sm:$0xff] }
0x1112   : > { %2009 = vst.msk [vmem:[#allocation2] sm:$0xff] %vm2008_vm12, %v2003_v5  ;;  %6014 = vmatprep.mubr.msk.f32.mxu1 %vm1023_vm8, %v2571_v50  ;;  %v2933_v50 = vld [vmem:[%s7958_s9 + $0x20] sm:$0xff] }
0x1113   : > { %6015 = vmatmul.mubr.msk.f32.vlgmr.msra.gmra.mxu1 %vm1023_vm8, %v2572_v6 }
0x1114   : > { %6056 = vmatpush3.msra.mxu1 %v2944_v60 }
0x1115   : > { %v2223_v7 = vpop.permute.xlu0 %2222  ;;  %6057 = vmatprep.subr.mxu1 %v2943_v61 }
0x1116   : > { %2229 = vst.msk [vmem:[#allocation2] sm:$0xff] %vm2228_vm13, %v2223_v7  ;;  %6058 = vmatpush3.msra.mxu1 %v2943_v61 }
0x1117   : > { %6059 = vmatprep.subr.mxu1 %v2942_v62 }
0x1118   : > { %6060 = vmatpush3.msra.mxu1 %v2942_v62 }
0x1119   : > { %v2443_v8 = vpop.permute.xlu0 %2442  ;;  %6061 = vmatprep.subr.mxu1 %v2941_v1 }
0x111a   : > { %2449 = vst.msk [vmem:[#allocation2] sm:$0xff] %vm2448_vm14, %v2443_v8  ;;  %6062 = vmatpush3.msra.mxu1 %v2941_v1 }
0x111b   : > { %6063 = vmatprep.subr.mxu1 %v2940_v2 }
0x111c   : > { %6064 = vmatpush3.msra.mxu1 %v2940_v2 }
0x111d   : > { %6065 = vmatprep.subr.mxu1 %v2939_v3 }
0x111e   : > { %6066 = vmatpush3.msra.mxu1 %v2939_v3 }
0x111f   : > { %6067 = vmatprep.subr.mxu1 %v2938_v4 }
0x1120   : > { %6068 = vmatpush3.msra.mxu1 %v2938_v4 }
0x1121   : > { %6069 = vmatprep.subr.mxu1 %v2937_v40 }
0x1122   : > { %6070 = vmatpush3.msra.mxu1 %v2937_v40 }
0x1123   : > { %6071 = vmatprep.subr.mxu1 %v2936_v39 }
0x1124   : > { %6072 = vmatpush3.msra.mxu1 %v2936_v39 }
0x1125   : > { %6073 = vmatprep.subr.mxu1 %v2935_v15 }
0x1126   : > { %6074 = vmatpush3.msra.mxu1 %v2935_v15  ;;  %v5578_v15 = vld [vmem:[%s7952_s3 + $0xf8] sm:$0xff] }
0x1127   : > { %6075 = vmatprep.subr.mxu1 %v2934_v0 }
0x1128   : > { %6076 = vmatpush3.msra.mxu1 %v2934_v0  ;;  %v5577_v0 = vld [vmem:[%s7952_s3 + $0xf0] sm:$0xff] }
0x1129   : > { %6077 = vmatprep.subr.mxu1 %v2933_v50 }
0x112a   : > { %6078 = vmatpush3.msra.mxu1 %v2933_v50  ;;  %v5576_v50 = vld [vmem:[%s7952_s3 + $0xe8] sm:$0xff] }
0x11d3   : > { %v6016_v18 = vpop.f32.mrf.mxu1 }
0x11d4   : > { %2664 = vrot.lane.b32.xlu1 %v6016_v18, %s8019_s27 }
0x11d5   : > { %v2651_v19 = vpop.f32.mrf.mxu1 }
0x11d6   : > { %2662 = vrot.lane.b32.xlu0 %v2651_v19, %s8019_s27 }
0x1246   : > { %v2665_v20 = vpop.permute.xlu1 %2664 }
0x1247   : > { %2670 = vst.msk [vmem:[#allocation2 + $0x8] sm:$0xff] %vm2668_vm15, %v2665_v20 }
0x1248   : > { %v2663_v21 = vpop.permute.xlu0 %2662 }
0x1249   : > { %2669 = vst.msk [vmem:[#allocation2] sm:$0xff] %vm2668_vm15, %v2663_v21 }
0x124e   : > { %v2672_v22 = vld [vmem:[#allocation2 + $0x8] sm:$0xff] }
0x1250   : > { %v2671_v31 = vld [vmem:[#allocation2] sm:$0xff] }
0x1251   : > { %6033 = vmatprep.mubr.msk.f32.mxu0 %vm749_vm0, %v2671_v31 }
0x1252   : > { %6034 = vmatmul.mubr.msk.f32.vlgmr.msra.gmra.mxu0 %vm749_vm0, %v2672_v22  ;;  %v5553_v22 = vld [vmem:[%s7962_s13] ss:$0 sm:$0xff] }
0x1253   : > { %6037 = vmatpush3.msra.mxu0 %v2838_v56 }
0x1254   : > { %6038 = vmatprep.subr.mxu0 %v2837_v38 }
0x1255   : > { %6039 = vmatpush3.msra.mxu0 %v2837_v38  ;;  %v5558_v38 = vld [vmem:[%s7959_s10] ss:$0 sm:$0xff] }
0x1256   : > { %6040 = vmatprep.subr.mxu0 %v2836_v14 }
0x1257   : > { %6041 = vmatpush3.msra.mxu0 %v2836_v14 }
0x1258   : > { %6042 = vmatprep.subr.mxu0 %v2835_v63 }
0x1259   : > { %6043 = vmatpush3.msra.mxu0 %v2835_v63 }
0x125a   : > { %6044 = vmatprep.subr.mxu0 %v2834_v48 }
0x125b   : > { %6045 = vmatpush3.msra.mxu0 %v2834_v48 }
0x125c   : > { %6046 = vmatprep.subr.mxu0 %v2833_v57 }
0x125d   : > { %6047 = vmatpush3.msra.mxu0 %v2833_v57 }
0x125e   : > { %6048 = vmatprep.subr.mxu0 %v2832_v58 }
0x125f   : > { %6049 = vmatpush3.msra.mxu0 %v2832_v58 }
0x1260   : > { %6050 = vmatprep.subr.mxu0 %v2831_v59 }
0x1261   : > { %6051 = vmatpush3.msra.mxu0 %v2831_v59 }
0x1262   : > { %3143 = vmatprep.subr.mxu0 %v5578_v15 }
0x1312   : > { %v6035_v23 = vpop.f32.mrf.mxu0 }
0x1313   : > { %v2763_v28 = vadd.f32 %v6500_v25, %v6035_v23 }
0x1314   : > { %v2753_v29 = vpop.f32.mrf.mxu0 }
0x1315   : > { %v7242_v30 = vadd.f32 %v5552_v24, %v2763_v28  ;;  %v2762_v33 = vadd.f32 %v6501_v32, %v2753_v29 }
0x1317   : > { %v7245_v42 = vadd.f32 %v5552_v24, %v2762_v33  ;;  %v2778_v43 = vsel %vm749_vm0, %v7242_v30, 0.0  ;;  %v5554_v24 = vld [vmem:[%s7963_s14] ss:$0 sm:$0xff] }
0x1318   : > { %2779 = vadd.xlane.f32.xlu1 %v2778_v43 }
0x1319   : > { %v2775_v44 = vsel %vm749_vm0, %v7245_v42, 0.0 }
0x131a   : > { %2776 = vadd.xlane.f32.xlu0 %v2775_v44  ;;  %v2932_v44 = vld [vmem:[%s7958_s9 + $0x18] sm:$0xff] }
0x131b   : > { %6079 = vmatprep.subr.mxu1 %v2932_v44 }
0x131c   : > { %6080 = vmatpush3.msra.mxu1 %v2932_v44 }
0x13a1   : > { %v2780_v45 = vpop.xlane.xlu1 %2779 }
0x13a2   : > { %v2782_v46 = vmul.f32 0.015625, %v2780_v45  ;;  %v2931_v45 = vld [vmem:[%s7958_s9 + $0x10] sm:$0xff] }
0x13a3   : > { %v2777_v47 = vpop.xlane.xlu0 %2776  ;;  %6081 = vmatprep.subr.mxu1 %v2931_v45 }
0x13a4   : > { %v2781_v52 = vmul.f32 0.015625, %v2777_v47  ;;  %v7252_v41 = vsub.f32 %v7242_v30, %v2782_v46  ;;  %6082 = vmatpush3.msra.mxu1 %v2931_v45  ;;  %v2930_v46 = vld [vmem:[%s7958_s9 + $0x8] sm:$0xff]  ;;  %v2929_v47 = vld [vmem:[%s7958_s9] sm:$0xff] }
0x13a5   : > { %6083 = vmatprep.subr.mxu1 %v2930_v46 }
0x13a6   : > { %v7255_v53 = vsub.f32 %v7245_v42, %v2781_v52  ;;  %v2786_v55 = vmul.f32 %v7252_v41, %v7252_v41  ;;  %6084 = vmatpush3.msra.mxu1 %v2930_v46  ;;  %v5555_v52 = vld [vmem:[%s7957_s8] ss:$0 sm:$0xff] }
0x13a7   : > { %6085 = vmatprep.subr.mxu1 %v2929_v47 }
0x13a8   : > { %v2785_v37 = vmul.f32 %v7255_v53, %v7255_v53  ;;  %v2790_v36 = vsel %vm749_vm0, %v2786_v55, 0.0  ;;  %6086 = vmatpush3.msra.mxu1 %v2929_v47 }
0x13aa   : > { %v2787_v54 = vsel %vm749_vm0, %v2785_v37, 0.0 }
0x13ab   : > { %2788 = vadd.xlane.f32.xlu0 %v2787_v54 }
0x13af   : > { %2791 = vadd.xlane.f32.xlu0 %v2790_v36 }
0x1434   : > { %v2789_v5 = vpop.xlane.xlu0 %2788 }
0x1435   : > { %v2793_v6 = vmul.f32 0.015873017, %v2789_v5  ;;  %v5575_v5 = vld [vmem:[%s7952_s3 + $0xe0] sm:$0xff] }
0x1437   : > { %6404 = vrsqrt.f32 %v2793_v6  ;;  %vm2797_vm1 = vcmp.eq.f32.partialorder %v2793_v6, inf  ;;  %v2800_v11 = vand.u32 2147483648, %v2793_v6  ;;  %vm2799_vm2 = vcmp.eq.f32.partialorder %v2793_v6, 0.0 }
0x1438   : > { %v2792_v7 = vpop.xlane.xlu0 %2791 }
0x1439   : > { %v2794_v8 = vmul.f32 0.015873017, %v2792_v7  ;;  %v5573_v7 = vld [vmem:[%s7952_s3 + $0xd0] sm:$0xff] }
0x143b   : > { %6406 = vrsqrt.f32 %v2794_v8  ;;  %vm2804_vm3 = vcmp.eq.f32.partialorder %v2794_v8, inf  ;;  %v2807_v18 = vand.u32 2147483648, %v2794_v8  ;;  %vm2806_vm4 = vcmp.eq.f32.partialorder %v2794_v8, 0.0 }
0x1444   : > { %v6405_v9 = vpop.eup %6404 }
0x1445   : > { %v2796_v10 = vmul.f32 %v6405_v9, %v2793_v6  ;;  %v5571_v9 = vld [vmem:[%s7952_s3 + $0xc0] sm:$0xff] }
0x1447   : > { %v2798_v34 = vsel %vm2797_vm1, %v2793_v6, %v2796_v10  ;;  %v5574_v6 = vld [vmem:[%s7952_s3 + $0xd8] sm:$0xff] }
0x1448   : > { %v6407_v12 = vpop.eup %6406  ;;  %v2801_v13 = vsel %vm2799_vm2, %v2800_v11, %v2798_v34  ;;  %v5570_v10 = vld [vmem:[%s7952_s3 + $0xb8] sm:$0xff]  ;;  %v5569_v11 = vld [vmem:[%s7952_s3 + $0xb0] sm:$0xff]  ;;  %v5568_v34 = vld [vmem:[%s7952_s3 + $0xa8] sm:$0xff] }
0x1449   : > { %v2809_v16 = vadd.f32 1e-06, %v2801_v13  ;;  %v2803_v17 = vmul.f32 %v6407_v12, %v2794_v8  ;;  %v5567_v12 = vld [vmem:[%s7952_s3 + $0xa0] sm:$0xff]  ;;  %v5566_v13 = vld [vmem:[%s7952_s3 + $0x98] sm:$0xff] }
0x144b   : > { %6408 = vrcp.f32 %v2809_v16  ;;  %v2805_v19 = vsel %vm2804_vm3, %v2794_v8, %v2803_v17  ;;  %v5572_v8 = vld [vmem:[%s7952_s3 + $0xc8] sm:$0xff]  ;;  %v5565_v16 = vld [vmem:[%s7952_s3 + $0x90] sm:$0xff] }
0x144c   : > { %v2808_v20 = vsel %vm2806_vm4, %v2807_v18, %v2805_v19  ;;  %v5564_v17 = vld [vmem:[%s7952_s3 + $0x88] sm:$0xff]  ;;  %v5563_v18 = vld [vmem:[%s7952_s3 + $0x80] sm:$0xff] }
0x144d   : > { %v2810_v21 = vadd.f32 1e-06, %v2808_v20 }
0x144f   : > { %6410 = vrcp.f32 %v2810_v21 }
0x1458   : > { %v6409_v31 = vpop.eup %6408 }
0x1459   : > { %v2813_v23 = vmul.f32 %v6409_v31, %v7255_v53 }
0x145b   : > { %v2821_v25 = vmul.f32 %v5553_v22, %v2813_v23 }
0x145c   : > { %v6411_v28 = vpop.eup %6410 }
0x145d   : > { %v2814_v29 = vmul.f32 %v6411_v28, %v7252_v41  ;;  %v2829_v32 = vadd.f32 %v5554_v24, %v2821_v25 }
0x145f   : > { %v2822_v33 = vmul.f32 %v5553_v22, %v2814_v29  ;;  %6052 = vmatprep.mubr.msk.f32.mxu0 %vm749_vm0, %v2829_v32 }
0x1461   : > { %v2830_v43 = vadd.f32 %v5554_v24, %v2822_v33 }
0x1463   : > { %6053 = vmatmul.mubr.msk.f32.vlgmr.msra.gmra.mxu0 %vm749_vm0, %v2830_v43 }
0x1464   : > { %3191 = vmatprep.mubr.f32.mxu0 %v6564_v51  ;;  %3144 = vmatpush1.msra.mxu0 %v5577_v0 }
0x1465   : > { %3145 = vmatprep.subr.mxu0 %v5576_v50 }
0x1466   : > { %3146 = vmatpush1.msra.mxu0 %v5575_v5 }
0x1467   : > { %3147 = vmatprep.subr.mxu0 %v5574_v6 }
0x1468   : > { %3148 = vmatpush1.msra.mxu0 %v5573_v7 }
0x1469   : > { %3149 = vmatprep.subr.mxu0 %v5572_v8 }
0x146a   : > { %3150 = vmatpush1.msra.mxu0 %v5571_v9 }
0x146b   : > { %3151 = vmatprep.subr.mxu0 %v5570_v10 }
0x146c   : > { %3152 = vmatpush1.msra.mxu0 %v5569_v11 }
0x146d   : > { %3153 = vmatprep.subr.mxu0 %v5568_v34 }
0x146e   : > { %3154 = vmatpush1.msra.mxu0 %v5567_v12 }
0x146f   : > { %3155 = vmatprep.subr.mxu0 %v5566_v13 }
0x1470   : > { %3156 = vmatpush1.msra.mxu0 %v5565_v16 }
0x1471   : > { %3157 = vmatprep.subr.mxu0 %v5564_v17 }
0x1472   : > { %3158 = vmatpush1.msra.mxu0 %v5563_v18 }
0x1523   : > { %v6054_v41 = vpop.f32.mrf.mxu0 }
0x1524   : > { %v2924_v53 = vadd.f32 %v6054_v41, %v5555_v52 }
0x1525   : > { %v2918_v37 = vpop.f32.mrf.mxu0 }
0x1526   : > { %v2919_v54 = vadd.f32 %v5555_v52, %v2918_v37  ;;  %v2928_v36 = vmax.f32 %v2924_v53, 0.0  ;;  %v5561_v37 = vld [vmem:[%s7960_s11 + $0x1] ss:$0 sm:$0xff] }
0x1528   : > { %v2927_v55 = vmax.f32 %v2919_v54, 0.0 }
0x152a   : > { %6087 = vmatprep.mubr.f32.mxu1 %v2927_v55  ;;  %v5562_v55 = vld [vmem:[%s7961_s12 + $0x1] ss:$0 sm:$0xff] }
0x152b   : > { %6088 = vmatmul.mubr.f32.vlgmr.msra.gmra.mxu1 %v2928_v36 }
0x15eb   : > { %v6089_v56 = vpop.f32.mrf.mxu1 }
0x15ec   : > { %v3021_v14 = vadd.f32 %v6089_v56, %v7242_v30 }
0x15ed   : > { %v3011_v63 = vpop.f32.mrf.mxu1 }
0x15ee   : > { %v7353_v48 = vadd.f32 %v5558_v38, %v3021_v14  ;;  %v3020_v57 = vadd.f32 %v3011_v63, %v7245_v42  ;;  %v5579_v14 = vld [vmem:[%s7953_s4 + $0x2] sm:$0x3] }
0x15ef   : > { %v3114_v63 = vrot.slane %v5579_v14, %v6881_v27 }
0x15f0   : > { %v7356_v58 = vadd.f32 %v5558_v38, %v3020_v57  ;;  %v3038_v59 = vsel %vm749_vm0, %v7353_v48, 0.0 }
0x15f1   : > { %3039 = vadd.xlane.f32.xlu1 %v3038_v59 }
0x15f2   : > { %v3035_v60 = vsel %vm749_vm0, %v7356_v58, 0.0 }
0x15f3   : > { %3036 = vadd.xlane.f32.xlu0 %v3035_v60 }
0x167a   : > { %v3040_v61 = vpop.xlane.xlu1 %3039 }
0x167b   : > { %v3042_v62 = vmul.f32 0.015625, %v3040_v61 }
0x167c   : > { %v3037_v1 = vpop.xlane.xlu0 %3036 }
0x167d   : > { %v7363_v30 = vsub.f32 %v7353_v48, %v3042_v62  ;;  %v3041_v2 = vmul.f32 0.015625, %v3037_v1 }
0x167f   : > { %v7366_v3 = vsub.f32 %v7356_v58, %v3041_v2  ;;  %v3046_v42 = vmul.f32 %v7363_v30, %v7363_v30 }
0x1681   : > { %v3050_v4 = vsel %vm749_vm0, %v3046_v42, 0.0  ;;  %v3045_v40 = vmul.f32 %v7366_v3, %v7366_v3 }
0x1682   : > { %3051 = vadd.xlane.f32.xlu1 %v3050_v4 }
0x1683   : > { %v3047_v39 = vsel %vm749_vm0, %v3045_v40, 0.0  ;;  %v5586_v40 = vld [vmem:[%s6924_s22 + $0x80] sm:$0xff] }
0x1684   : > { %3048 = vadd.xlane.f32.xlu0 %v3047_v39 }
0x170b   : > { %v3052_v19 = vpop.xlane.xlu1 %3051 }
0x170c   : > { %v3054_v20 = vmul.f32 0.015873017, %v3052_v19 }
0x170d   : > { %v3049_v21 = vpop.xlane.xlu0 %3048 }
0x170e   : > { %6412 = vrsqrt.f32 %v3054_v20  ;;  %v3053_v31 = vmul.f32 0.015873017, %v3049_v21  ;;  %vm3064_vm6 = vcmp.eq.f32.partialorder %v3054_v20, inf  ;;  %v3067_v24 = vand.u32 2147483648, %v3054_v20 }
0x170f   : > { %vm3066_vm1 = vcmp.eq.f32.partialorder %v3054_v20, 0.0 }
0x1710   : > { %6414 = vrsqrt.f32 %v3053_v31  ;;  %vm3057_vm2 = vcmp.eq.f32.partialorder %v3053_v31, inf  ;;  %v3060_v43 = vand.u32 2147483648, %v3053_v31  ;;  %vm3059_vm3 = vcmp.eq.f32.partialorder %v3053_v31, 0.0 }
0x171b   : > { %v6413_v22 = vpop.eup %6412 }
0x171c   : > { %v3063_v23 = vmul.f32 %v6413_v22, %v3054_v20 }
0x171d   : > { %v6415_v25 = vpop.eup %6414 }
0x171e   : > { %v3065_v28 = vsel %vm3064_vm6, %v3054_v20, %v3063_v23  ;;  %v3056_v32 = vmul.f32 %v6415_v25, %v3053_v31 }
0x171f   : > { %v3068_v29 = vsel %vm3066_vm1, %v3067_v24, %v3065_v28 }
0x1720   : > { %v3070_v33 = vadd.f32 1e-06, %v3068_v29  ;;  %v3058_v44 = vsel %vm3057_vm2, %v3053_v31, %v3056_v32 }
0x1721   : > { %v3061_v45 = vsel %vm3059_vm3, %v3060_v43, %v3058_v44  ;;  %v5595_v44 = vld [vmem:[%s6924_s22 + $0x98] sm:$0xff] }
0x1722   : > { %6416 = vrcp.f32 %v3070_v33  ;;  %v3069_v46 = vadd.f32 1e-06, %v3061_v45 }
0x1724   : > { %6418 = vrcp.f32 %v3069_v46 }
0x172f   : > { %v6417_v47 = vpop.eup %6416 }
0x1730   : > { %v3074_v53 = vmul.f32 %v6417_v47, %v7363_v30  ;;  %v3118_v30 = vrot.slane %v5579_v14, %v831_v35  ;;  %v5587_v35 = vld [vmem:[%s6924_s22 + $0x88] sm:$0xff]  ;;  %v5594_v47 = vld [vmem:[%s6924_s22 + $0x90] sm:$0xff] }
0x1731   : > { %v6419_v52 = vpop.eup %6418 }
0x1732   : > { %v3073_v41 = vmul.f32 %v6419_v52, %v7366_v3  ;;  %v3082_v56 = vmul.f32 %v5561_v37, %v3074_v53 }
0x1734   : > { %v3081_v54 = vmul.f32 %v5561_v37, %v3073_v41  ;;  %v3090_v38 = vadd.f32 %v5562_v55, %v3082_v56 }
0x1736   : > { %v3089_v36 = vadd.f32 %v5562_v55, %v3081_v54 }
0x1738   : > { %5580 = vmatmul.mubr.msk.f32.vlgmr.msra.gmra.mxu0 %vm749_vm0, %v3089_v36 }
0x1739   : > { %3197 = vmatprep.mubr.f32.mxu0 %v6564_v51 }
0x173c   : > { %5581 = vmatmul.mubr.msk.f32.gmra.mxu0 %vm749_vm0, %v3090_v38 }
0x17f8   : > { %v3193_v57 = vpop.f32.mrf.mxu0 }
0x17f9   : > { %v7437_v59 = vadd.f32 %v3193_v57, %v3114_v63 }
0x17fa   : > { %v3195_v60 = vpop.f32.mrf.mxu0 }
0x17fb   : > { %3206 = vrot.lane.b32.xlu1 %v7437_v59, %s8020_s2  ;;  %6094 = vmatprep.mubr.msk.f32.mxu0 %vm924_vm5, %v7437_v59  ;;  %v7456_v3 = vadd.f32 %v3195_v60, %v3118_v30 }
0x17fc   : > { %v3199_v51 = vpop.f32.mrf.mxu0 }
0x17fd   : > { %v7443_v61 = vadd.f32 %v3199_v51, %v3114_v63 }
0x17fe   : > { %v3201_v27 = vpop.f32.mrf.mxu0 }
0x17ff   : > { %3208 = vrot.lane.b32.xlu0 %v7443_v61, %s8020_s2  ;;  %v7452_v2 = vadd.f32 %v3201_v27, %v3118_v30  ;;  %s8030_s2 = smov 16  }
0x186d   : > { %v3207_v1 = vpop.permute.xlu1 %3206 }
0x1871   : > { %v3209_v62 = vpop.permute.xlu0 %3208 }
0x1872   : > { %6090 = vmatprep.subr.msk.mxu0 %vm924_vm5, %v3209_v62 }
0x1873   : > { %6091 = vmatpush3.xpose.msk.msra.mxu0 %vm924_vm5, %v3209_v62 }
0x1874   : > { %6092 = vmatprep.subr.msk.mxu0 %vm924_vm5, %v3207_v1 }
0x1877   : > { %6093 = vmatpush3.xpose.msk.msra.mxu0 %vm924_vm5, %v3207_v1 }
0x1878   : > { %6097 = vmatprep.subr.mxu0 %v7452_v2 }
0x187a   : > { %6095 = vmatmul.mubr.msk.f32.vlgmr.msra.gmra.mxu0 %vm924_vm5, %v7443_v61 }
0x187b   : > { %6098 = vmatpush3.msra.mxu0 %v7452_v2 }
0x187c   : > { %6099 = vmatprep.subr.mxu0 %v7456_v3 }
0x187d   : > { %6100 = vmatpush3.msra.mxu0 %v7456_v3 }
0x193a   : > { %v6096_v26 = vpop.f32.mrf.mxu0 }
0x193b   : > { %v3294_v42 = vmul.f32 0.35355338, %v6096_v26 }
0x193c   : > { %v3284_v4 = vpop.f32.mrf.mxu0 }
0x193d   : > { %v3299_v39 = vadd.f32 %v5587_v35, %v3294_v42  ;;  %v3293_v15 = vmul.f32 0.35355338, %v3284_v4 }
0x193f   : > { %v3298_v0 = vadd.f32 %v5586_v40, %v3293_v15  ;;  %v3301_v50 = vsel %vm6927_vm7, -1e+09, %v3299_v39 }
0x1940   : > { %v3305_v5 = vsel %vm1023_vm8, %v3301_v50, -inf }
0x1941   : > { %3306 = vmax.xlane.f32.xlu0 %v3305_v5  ;;  %v3300_v6 = vsel %vm6927_vm7, -1e+09, %v3298_v0 }
0x1942   : > { %v3302_v7 = vsel %vm1023_vm8, %v3300_v6, -inf }
0x1943   : > { %3303 = vmax.xlane.f32.xlu1 %v3302_v7 }
0x19ca   : > { %v3307_v8 = vpop.xlane.xlu0 %3306 }
0x19cb   : > { %v3309_v9 = vsub.f32 %v3301_v50, %v3307_v8 }
0x19cc   : > { %v3304_v10 = vpop.xlane.xlu1 %3303 }
0x19cd   : > { %v3312_v11 = vmul.f32 1.442695, %v3309_v9  ;;  %v3308_v34 = vsub.f32 %v3300_v6, %v3304_v10  ;;  %v5603_v10 = vld [vmem:[%s6924_s22 + $0xa8] sm:$0xff] }
0x19cf   : > { %6420 = vpow2.f32 %v3312_v11  ;;  %v3310_v12 = vmul.f32 1.442695, %v3308_v34 }
0x19d1   : > { %6422 = vpow2.f32 %v3310_v12  ;;  %v5602_v12 = vld [vmem:[%s6924_s22 + $0xa0] sm:$0xff] }
0x19dc   : > { %v6421_v13 = vpop.eup %6420 }
0x19dd   : > { %v3317_v16 = vsel %vm1023_vm8, %v6421_v13, 0.0 }
0x19de   : > { %v6423_v17 = vpop.eup %6422  ;;  %3318 = vadd.xlane.f32.xlu1 %v3317_v16 }
0x19df   : > { %v3314_v18 = vsel %vm1023_vm8, %v6423_v17, 0.0 }
0x19e0   : > { %3315 = vadd.xlane.f32.xlu0 %v3314_v18 }
0x19ef   : > { %3411 = vrot.lane.b32.xlu1 %v7437_v59, %s8019_s27 }
0x19f3   : > { %3407 = vrot.lane.b32.xlu1 %v7437_v59, %s8021_s25 }
0x19f6   : > { %3413 = vrot.lane.b32.xlu0 %v7443_v61, %s8019_s27 }
0x19f7   : > { %3409 = vrot.lane.b32.xlu1 %v7443_v61, %s8021_s25 }
0x1a67   : > { %v3319_v19 = vpop.xlane.xlu1 %3318 }
0x1a68   : > { %6424 = vrcp.f32 %v3319_v19 }
0x1a69   : > { %v3316_v20 = vpop.xlane.xlu0 %3315 }
0x1a6a   : > { %6426 = vrcp.f32 %v3316_v20 }
0x1a6b   : > { %v3412_v31 = vpop.permute.xlu1 %3411 }
0x1a6d   : > { %v3414_v21 = vpop.permute.xlu0 %3413 }
0x1a6e   : > { %6104 = vmatprep.subr.msk.mxu0 %vm924_vm5, %v3414_v21 }
0x1a6f   : > { %v3408_v28 = vpop.permute.xlu1 %3407 }
0x1a73   : > { %v3410_v29 = vpop.permute.xlu1 %3409 }
0x1a75   : > { %v6425_v22 = vpop.eup %6424 }
0x1a76   : > { %v3323_v25 = vmul.f32 %v6425_v22, %v6421_v13 }
0x1a77   : > { %v6427_v23 = vpop.eup %6426 }
0x1a78   : > { %v3322_v24 = vmul.f32 %v6427_v23, %v6423_v17 }
0x1a7a   : > { %6101 = vmatprep.mubr.msk.f32.mxu0 %vm1023_vm8, %v3322_v24 }
0x1a7b   : > { %6102 = vmatmul.mubr.msk.f32.vlgmr.msra.gmra.mxu0 %vm1023_vm8, %v3323_v25 }
0x1a7c   : > { %6105 = vmatpush3.xpose.msk.msra.mxu0 %vm924_vm5, %v3414_v21  ;;  %6108 = vmatprep.mubr.msk.f32.mxu0 %vm924_vm5, %v3408_v28 }
0x1a7d   : > { %6106 = vmatprep.subr.msk.mxu0 %vm924_vm5, %v3412_v31 }
0x1a80   : > { %6107 = vmatpush3.xpose.msk.msra.mxu0 %vm924_vm5, %v3412_v31 }
0x1a83   : > { %6109 = vmatmul.mubr.msk.f32.vlgmr.msra.gmra.mxu0 %vm924_vm5, %v3410_v29 }
0x1b3b   : > { %v6103_v32 = vpop.f32.mrf.mxu0 }
0x1b3c   : > { %3406 = vst.msk [vmem:[#allocation2 + $0x8] sm:$0xff] %vm924_vm5, %v6103_v32 }
0x1b3d   : > { %v3396_v33 = vpop.f32.mrf.mxu0 }
0x1b3e   : > { %3405 = vst.msk [vmem:[#allocation2] sm:$0xff] %vm924_vm5, %v3396_v33 }
0x1b43   : > { %v6110_v43 = vpop.f32.mrf.mxu0 }
0x1b44   : > { %v3499_v45 = vmul.f32 0.35355338, %v6110_v43 }
0x1b45   : > { %v3489_v46 = vpop.f32.mrf.mxu0 }
0x1b46   : > { %v3504_v52 = vadd.f32 %v5595_v44, %v3499_v45  ;;  %v3498_v41 = vmul.f32 0.35355338, %v3489_v46 }
0x1b48   : > { %v3503_v53 = vadd.f32 %v5594_v47, %v3498_v41  ;;  %v3506_v37 = vsel %vm6927_vm7, -1e+09, %v3504_v52 }
0x1b49   : > { %v3510_v54 = vsel %vm1023_vm8, %v3506_v37, -inf }
0x1b4a   : > { %3511 = vmax.xlane.f32.xlu1 %v3510_v54  ;;  %v3505_v55 = vsel %vm6927_vm7, -1e+09, %v3503_v53 }
0x1b4b   : > { %v3507_v36 = vsel %vm1023_vm8, %v3505_v55, -inf }
0x1b4c   : > { %3508 = vmax.xlane.f32.xlu0 %v3507_v36 }
0x1b5b   : > { %3531 = vrot.lane.b32.xlu1 %v7456_v3, %s8021_s25 }
0x1b5f   : > { %3634 = vrot.lane.b32.xlu1 %v7443_v61, %s8022_s0 }
0x1b63   : > { %3632 = vrot.lane.b32.xlu1 %v7437_v59, %s8022_s0 }
0x1b67   : > { %3630 = vrot.lane.b32.xlu1 %v7443_v61, %s8023_s18 }
0x1bd3   : > { %v3512_v56 = vpop.xlane.xlu1 %3511 }
0x1bd4   : > { %v3514_v38 = vsub.f32 %v3506_v37, %v3512_v56 }
0x1bd5   : > { %v3509_v14 = vpop.xlane.xlu0 %3508 }
0x1bd6   : > { %v3517_v63 = vmul.f32 1.442695, %v3514_v38  ;;  %v3513_v57 = vsub.f32 %v3505_v55, %v3509_v14 }
0x1bd7   : > { %v3532_v35 = vpop.permute.xlu1 %3531 }
0x1bd8   : > { %6428 = vpow2.f32 %v3517_v63  ;;  %v3515_v60 = vmul.f32 1.442695, %v3513_v57  ;;  %v5611_v57 = vld [vmem:[%s6924_s22 + $0xb8] sm:$0xff] }
0x1bda   : > { %6430 = vpow2.f32 %v3515_v60 }
0x1bdb   : > { %v3635_v4 = vpop.permute.xlu1 %3634 }
0x1bdf   : > { %v3633_v5 = vpop.permute.xlu1 %3632 }
0x1be3   : > { %v3631_v6 = vpop.permute.xlu1 %3630 }
0x1be5   : > { %v6429_v51 = vpop.eup %6428 }
0x1be6   : > { %v3522_v62 = vsel %vm1023_vm8, %v6429_v51, 0.0 }
0x1be7   : > { %v6431_v27 = vpop.eup %6430  ;;  %3523 = vadd.xlane.f32.xlu0 %v3522_v62  ;;  %v5610_v62 = vld [vmem:[%s6924_s22 + $0xb0] sm:$0xff] }
0x1be8   : > { %v3519_v1 = vsel %vm1023_vm8, %v6431_v27, 0.0 }
0x1beb   : > { %3520 = vadd.xlane.f32.xlu0 %v3519_v1 }
0x1c01   : > { %3533 = vrot.lane.b32.xlu0 %v7452_v2, %s8021_s25  ;;  %s8031_s25 = smov 80  }
0x1c05   : > { %3628 = vrot.lane.b32.xlu0 %v7437_v59, %s8023_s18 }
0x1c70   : > { %v3524_v30 = vpop.xlane.xlu0 %3523 }
0x1c71   : > { %6432 = vrcp.f32 %v3524_v30 }
0x1c74   : > { %v3521_v26 = vpop.xlane.xlu0 %3520 }
0x1c75   : > { %6434 = vrcp.f32 %v3521_v26 }
0x1c78   : > { %v3534_v42 = vpop.permute.xlu0 %3533 }
0x1c79   : > { %6111 = vmatprep.subr.mxu1 %v3534_v42 }
0x1c7a   : > { %6112 = vmatpush3.msra.mxu1 %v3534_v42 }
0x1c7b   : > { %6113 = vmatprep.subr.mxu1 %v3532_v35 }
0x1c7c   : > { %6114 = vmatpush3.msra.mxu1 %v3532_v35  ;;  %v3629_v50 = vpop.permute.xlu0 %3628 }
0x1c7d   : > { %6118 = vmatprep.subr.msk.mxu1 %vm924_vm5, %v3635_v4 }
0x1c7e   : > { %v6433_v40 = vpop.eup %6432 }
0x1c7f   : > { %v3528_v0 = vmul.f32 %v6433_v40, %v6429_v51 }
0x1c82   : > { %v6435_v39 = vpop.eup %6434 }
0x1c83   : > { %v3527_v15 = vmul.f32 %v6435_v39, %v6431_v27 }
0x1c85   : > { %6115 = vmatprep.mubr.msk.f32.mxu1 %vm1023_vm8, %v3527_v15 }
0x1c86   : > { %6116 = vmatmul.mubr.msk.f32.vlgmr.msra.gmra.mxu1 %vm1023_vm8, %v3528_v0 }
0x1c87   : > { %6119 = vmatpush3.xpose.msk.msra.mxu1 %vm924_vm5, %v3635_v4  ;;  %6122 = vmatprep.mubr.msk.f32.mxu1 %vm924_vm5, %v3629_v50 }
0x1c88   : > { %6120 = vmatprep.subr.msk.mxu1 %vm924_vm5, %v3633_v5 }
0x1c8b   : > { %6121 = vmatpush3.xpose.msk.msra.mxu1 %vm924_vm5, %v3633_v5 }
0x1c8e   : > { %6123 = vmatmul.mubr.msk.f32.vlgmr.msra.gmra.mxu1 %vm924_vm5, %v3631_v6 }
0x1d46   : > { %v7521_v7 = vpop.f32.mrf.mxu1 }
0x1d48   : > { %v7523_v8 = vpop.f32.mrf.mxu1 }
0x1d4e   : > { %v6124_v9 = vpop.f32.mrf.mxu1 }
0x1d4f   : > { %v3720_v11 = vmul.f32 0.35355338, %v6124_v9 }
0x1d50   : > { %v3710_v34 = vpop.f32.mrf.mxu1 }
0x1d51   : > { %v3725_v13 = vadd.f32 %v5603_v10, %v3720_v11  ;;  %v3719_v16 = vmul.f32 0.35355338, %v3710_v34 }
0x1d53   : > { %v3724_v17 = vadd.f32 %v5602_v12, %v3719_v16  ;;  %v3727_v18 = vsel %vm6927_vm7, -1e+09, %v3725_v13 }
0x1d54   : > { %v3731_v19 = vsel %vm1023_vm8, %v3727_v18, -inf }
0x1d55   : > { %3732 = vmax.xlane.f32.xlu1 %v3731_v19  ;;  %v3726_v20 = vsel %vm6927_vm7, -1e+09, %v3724_v17 }
0x1d56   : > { %v3728_v21 = vsel %vm1023_vm8, %v3726_v20, -inf }
0x1d57   : > { %3729 = vmax.xlane.f32.xlu0 %v3728_v21 }
0x1d66   : > { %3750 = vrot.lane.b32.xlu1 %v7456_v3, %s8023_s18 }
0x1d6a   : > { %3853 = vrot.lane.b32.xlu1 %v7443_v61, %s8024_s19 }
0x1d6e   : > { %3851 = vrot.lane.b32.xlu1 %v7437_v59, %s8024_s19 }
0x1d72   : > { %3849 = vrot.lane.b32.xlu1 %v7443_v61, %s8025_s26 }
0x1dde   : > { %v3733_v31 = vpop.xlane.xlu1 %3732 }
0x1ddf   : > { %v3735_v22 = vsub.f32 %v3727_v18, %v3733_v31 }
0x1de0   : > { %v3730_v23 = vpop.xlane.xlu0 %3729 }
0x1de1   : > { %v3738_v24 = vmul.f32 1.442695, %v3735_v22  ;;  %v3734_v25 = vsub.f32 %v3726_v20, %v3730_v23 }
0x1de2   : > { %v3751_v46 = vpop.permute.xlu1 %3750 }
0x1de3   : > { %6436 = vpow2.f32 %v3738_v24  ;;  %v3736_v28 = vmul.f32 1.442695, %v3734_v25 }
0x1de5   : > { %6438 = vpow2.f32 %v3736_v28 }
0x1de6   : > { %v3854_v52 = vpop.permute.xlu1 %3853 }
0x1dea   : > { %v3852_v36 = vpop.permute.xlu1 %3851 }
0x1dee   : > { %v3850_v56 = vpop.permute.xlu1 %3849 }
0x1df0   : > { %v6437_v29 = vpop.eup %6436 }
0x1df1   : > { %v3743_v32 = vsel %vm1023_vm8, %v6437_v29, 0.0 }
0x1df2   : > { %v6439_v33 = vpop.eup %6438  ;;  %3744 = vadd.xlane.f32.xlu0 %v3743_v32 }
0x1df3   : > { %v3740_v43 = vsel %vm1023_vm8, %v6439_v33, 0.0 }
0x1df6   : > { %3741 = vadd.xlane.f32.xlu0 %v3740_v43  ;;  %v5618_v43 = vld [vmem:[%s6924_s22 + $0xc0] sm:$0xff] }
0x1e0c   : > { %3752 = vrot.lane.b32.xlu0 %v7452_v2, %s8023_s18  ;;  %s8032_s18 = smov 8  }
0x1e10   : > { %3847 = vrot.lane.b32.xlu0 %v7437_v59, %s8025_s26 }
0x1e7b   : > { %v3745_v44 = vpop.xlane.xlu0 %3744 }
0x1e7c   : > { %6440 = vrcp.f32 %v3745_v44 }
0x1e7f   : > { %v3742_v45 = vpop.xlane.xlu0 %3741 }
0x1e80   : > { %6442 = vrcp.f32 %v3742_v45 }
0x1e83   : > { %v3753_v47 = vpop.permute.xlu0 %3752 }
0x1e84   : > { %6125 = vmatprep.subr.mxu0 %v3753_v47 }
0x1e85   : > { %6126 = vmatpush3.msra.mxu0 %v3753_v47 }
0x1e86   : > { %6127 = vmatprep.subr.mxu0 %v3751_v46 }
0x1e87   : > { %6128 = vmatpush3.msra.mxu0 %v3751_v46  ;;  %v3848_v55 = vpop.permute.xlu0 %3847 }
0x1e88   : > { %6132 = vmatprep.subr.msk.mxu0 %vm924_vm5, %v3854_v52 }
0x1e89   : > { %v6441_v41 = vpop.eup %6440 }
0x1e8a   : > { %v3749_v54 = vmul.f32 %v6441_v41, %v6437_v29  ;;  %v5619_v29 = vld [vmem:[%s6924_s22 + $0xc8] sm:$0xff] }
0x1e8d   : > { %v6443_v53 = vpop.eup %6442 }
0x1e8e   : > { %v3748_v37 = vmul.f32 %v6443_v53, %v6439_v33 }
0x1e90   : > { %6129 = vmatprep.mubr.msk.f32.mxu0 %vm1023_vm8, %v3748_v37 }
0x1e91   : > { %6130 = vmatmul.mubr.msk.f32.vlgmr.msra.gmra.mxu0 %vm1023_vm8, %v3749_v54 }
0x1e92   : > { %6133 = vmatpush3.xpose.msk.msra.mxu0 %vm924_vm5, %v3854_v52  ;;  %6136 = vmatprep.mubr.msk.f32.mxu0 %vm924_vm5, %v3848_v55 }
0x1e93   : > { %6134 = vmatprep.subr.msk.mxu0 %vm924_vm5, %v3852_v36 }
0x1e96   : > { %6135 = vmatpush3.xpose.msk.msra.mxu0 %vm924_vm5, %v3852_v36 }
0x1e99   : > { %6137 = vmatmul.mubr.msk.f32.vlgmr.msra.gmra.mxu0 %vm924_vm5, %v3850_v56 }
0x1f51   : > { %v7555_v38 = vpop.f32.mrf.mxu0 }
0x1f53   : > { %v7557_v14 = vpop.f32.mrf.mxu0 }
0x1f59   : > { %v6138_v63 = vpop.f32.mrf.mxu0 }
0x1f5a   : > { %v3939_v60 = vmul.f32 0.35355338, %v6138_v63 }
0x1f5b   : > { %v3929_v51 = vpop.f32.mrf.mxu0 }
0x1f5c   : > { %v3944_v27 = vadd.f32 %v5611_v57, %v3939_v60  ;;  %v3938_v1 = vmul.f32 0.35355338, %v3929_v51 }
0x1f5e   : > { %v3943_v30 = vadd.f32 %v5610_v62, %v3938_v1  ;;  %v3946_v26 = vsel %vm6927_vm7, -1e+09, %v3944_v27 }
0x1f5f   : > { %v3950_v35 = vsel %vm1023_vm8, %v3946_v26, -inf }
0x1f60   : > { %3951 = vmax.xlane.f32.xlu1 %v3950_v35  ;;  %v3945_v42 = vsel %vm6927_vm7, -1e+09, %v3943_v30 }
0x1f61   : > { %v3947_v4 = vsel %vm1023_vm8, %v3945_v42, -inf }
0x1f62   : > { %3948 = vmax.xlane.f32.xlu0 %v3947_v4 }
0x1f71   : > { %3969 = vrot.lane.b32.xlu1 %v7456_v3, %s8025_s26 }
0x1f75   : > { %4072 = vrot.lane.b32.xlu1 %v7443_v61, %s8026_s30 }
0x1f79   : > { %4070 = vrot.lane.b32.xlu1 %v7437_v59, %s8026_s30 }
0x1f7d   : > { %4068 = vrot.lane.b32.xlu1 %v7443_v61, %s8027_s29 }
0x1fe9   : > { %v3952_v40 = vpop.xlane.xlu1 %3951 }
0x1fea   : > { %v3954_v39 = vsub.f32 %v3946_v26, %v3952_v40 }
0x1feb   : > { %v3949_v15 = vpop.xlane.xlu0 %3948 }
0x1fec   : > { %v3957_v0 = vmul.f32 1.442695, %v3954_v39  ;;  %v3953_v50 = vsub.f32 %v3945_v42, %v3949_v15 }
0x1fed   : > { %v3970_v13 = vpop.permute.xlu1 %3969 }
0x1fee   : > { %6444 = vpow2.f32 %v3957_v0  ;;  %v3955_v5 = vmul.f32 1.442695, %v3953_v50 }
0x1ff0   : > { %6446 = vpow2.f32 %v3955_v5 }
0x1ff1   : > { %v4073_v17 = vpop.permute.xlu1 %4072 }
0x1ff5   : > { %v4071_v22 = vpop.permute.xlu1 %4070 }
0x1ff9   : > { %v4069_v23 = vpop.permute.xlu1 %4068 }
0x1ffb   : > { %v6445_v6 = vpop.eup %6444 }
0x1ffc   : > { %v3962_v9 = vsel %vm1023_vm8, %v6445_v6, 0.0 }
0x1ffd   : > { %v6447_v10 = vpop.eup %6446  ;;  %3963 = vadd.xlane.f32.xlu0 %v3962_v9 }
0x1ffe   : > { %v3959_v11 = vsel %vm1023_vm8, %v6447_v10, 0.0 }
0x2001   : > { %3960 = vadd.xlane.f32.xlu0 %v3959_v11 }
0x2017   : > { %3971 = vrot.lane.b32.xlu0 %v7452_v2, %s8025_s26  ;;  %s8033_s26 = smov 72  }
0x201b   : > { %4066 = vrot.lane.b32.xlu0 %v7437_v59, %s8027_s29 }
0x2086   : > { %v3964_v34 = vpop.xlane.xlu0 %3963 }
0x2087   : > { %6448 = vrcp.f32 %v3964_v34 }
0x208a   : > { %v3961_v12 = vpop.xlane.xlu0 %3960 }
0x208b   : > { %6450 = vrcp.f32 %v3961_v12  ;;  %v5626_v12 = vld [vmem:[%s6924_s22 + $0xd0] sm:$0xff] }
0x208e   : > { %v3972_v16 = vpop.permute.xlu0 %3971 }
0x208f   : > { %6139 = vmatprep.subr.mxu1 %v3972_v16 }
0x2090   : > { %6140 = vmatpush3.msra.mxu1 %v3972_v16 }
0x2091   : > { %6141 = vmatprep.subr.mxu1 %v3970_v13 }
0x2092   : > { %6142 = vmatpush3.msra.mxu1 %v3970_v13  ;;  %v4067_v31 = vpop.permute.xlu0 %4066 }
0x2093   : > { %6146 = vmatprep.subr.msk.mxu1 %vm924_vm5, %v4073_v17 }
0x2094   : > { %v6449_v18 = vpop.eup %6448 }
0x2095   : > { %v3968_v21 = vmul.f32 %v6449_v18, %v6445_v6 }
0x2098   : > { %v6451_v19 = vpop.eup %6450 }
0x2099   : > { %v3967_v20 = vmul.f32 %v6451_v19, %v6447_v10  ;;  %v5627_v10 = vld [vmem:[%s6924_s22 + $0xd8] sm:$0xff] }
0x209b   : > { %6143 = vmatprep.mubr.msk.f32.mxu1 %vm1023_vm8, %v3967_v20 }
0x209c   : > { %6144 = vmatmul.mubr.msk.f32.vlgmr.msra.gmra.mxu1 %vm1023_vm8, %v3968_v21 }
0x209d   : > { %6147 = vmatpush3.xpose.msk.msra.mxu1 %vm924_vm5, %v4073_v17  ;;  %6150 = vmatprep.mubr.msk.f32.mxu1 %vm924_vm5, %v4067_v31 }
0x209e   : > { %6148 = vmatprep.subr.msk.mxu1 %vm924_vm5, %v4071_v22 }
0x20a1   : > { %6149 = vmatpush3.xpose.msk.msra.mxu1 %vm924_vm5, %v4071_v22 }
0x20a4   : > { %6151 = vmatmul.mubr.msk.f32.vlgmr.msra.gmra.mxu1 %vm924_vm5, %v4069_v23 }
0x215c   : > { %v7589_v24 = vpop.f32.mrf.mxu1 }
0x215e   : > { %v7591_v25 = vpop.f32.mrf.mxu1 }
0x2164   : > { %v6152_v28 = vpop.f32.mrf.mxu1 }
0x2165   : > { %v4158_v32 = vmul.f32 0.35355338, %v6152_v28 }
0x2166   : > { %v4148_v33 = vpop.f32.mrf.mxu1 }
0x2167   : > { %v4163_v44 = vadd.f32 %v5619_v29, %v4158_v32  ;;  %v4157_v45 = vmul.f32 0.35355338, %v4148_v33 }
0x2169   : > { %v4162_v46 = vadd.f32 %v5618_v43, %v4157_v45  ;;  %v4165_v47 = vsel %vm6927_vm7, -1e+09, %v4163_v44 }
0x216a   : > { %v4169_v52 = vsel %vm1023_vm8, %v4165_v47, -inf }
0x216b   : > { %4170 = vmax.xlane.f32.xlu1 %v4169_v52  ;;  %v4164_v41 = vsel %vm6927_vm7, -1e+09, %v4162_v46 }
0x216c   : > { %v4166_v53 = vsel %vm1023_vm8, %v4164_v41, -inf }
0x216d   : > { %4167 = vmax.xlane.f32.xlu0 %v4166_v53 }
0x217c   : > { %4188 = vrot.lane.b32.xlu1 %v7456_v3, %s8027_s29 }
0x2180   : > { %4291 = vrot.lane.b32.xlu1 %v7443_v61, %s8028_s20 }
0x2184   : > { %4289 = vrot.lane.b32.xlu1 %v7437_v59, %s8028_s20 }
0x2188   : > { %4287 = vrot.lane.b32.xlu1 %v7443_v61, %s8029_s23 }
0x21f4   : > { %v4171_v37 = vpop.xlane.xlu1 %4170 }
0x21f5   : > { %v4173_v54 = vsub.f32 %v4165_v47, %v4171_v37 }
0x21f6   : > { %v4168_v55 = vpop.xlane.xlu0 %4167 }
0x21f7   : > { %v4176_v36 = vmul.f32 1.442695, %v4173_v54  ;;  %v4172_v56 = vsub.f32 %v4164_v41, %v4168_v55 }
0x21f8   : > { %v4189_v30 = vpop.permute.xlu1 %4188 }
0x21f9   : > { %6452 = vpow2.f32 %v4176_v36  ;;  %v4174_v63 = vmul.f32 1.442695, %v4172_v56 }
0x21fb   : > { %6454 = vpow2.f32 %v4174_v63 }
0x21fc   : > { %v4292_v35 = vpop.permute.xlu1 %4291 }
0x2200   : > { %v4290_v0 = vpop.permute.xlu1 %4289 }
0x2204   : > { %v4288_v50 = vpop.permute.xlu1 %4287 }
0x2206   : > { %v6453_v57 = vpop.eup %6452 }
0x2207   : > { %v4181_v60 = vsel %vm1023_vm8, %v6453_v57, 0.0 }
0x2208   : > { %v6455_v51 = vpop.eup %6454  ;;  %4182 = vadd.xlane.f32.xlu0 %v4181_v60 }
0x2209   : > { %v4178_v62 = vsel %vm1023_vm8, %v6455_v51, 0.0 }
0x220c   : > { %4179 = vadd.xlane.f32.xlu0 %v4178_v62 }
0x2222   : > { %4190 = vrot.lane.b32.xlu0 %v7452_v2, %s8027_s29 }
0x2226   : > { %4285 = vrot.lane.b32.xlu0 %v7437_v59, %s8029_s23 }
0x2291   : > { %v4183_v27 = vpop.xlane.xlu0 %4182 }
0x2292   : > { %6456 = vrcp.f32 %v4183_v27  ;;  %v5635_v27 = vld [vmem:[%s6924_s22 + $0xe8] sm:$0xff] }
0x2295   : > { %v4180_v1 = vpop.xlane.xlu0 %4179 }
0x2296   : > { %6458 = vrcp.f32 %v4180_v1 }
0x2299   : > { %v4191_v26 = vpop.permute.xlu0 %4190 }
0x229a   : > { %6153 = vmatprep.subr.mxu0 %v4191_v26 }
0x229b   : > { %6154 = vmatpush3.msra.mxu0 %v4191_v26  ;;  %v5634_v26 = vld [vmem:[%s6924_s22 + $0xe0] sm:$0xff] }
0x229c   : > { %6155 = vmatprep.subr.mxu0 %v4189_v30 }
0x229d   : > { %6156 = vmatpush3.msra.mxu0 %v4189_v30  ;;  %v4286_v15 = vpop.permute.xlu0 %4285 }
0x229e   : > { %6160 = vmatprep.subr.msk.mxu0 %vm924_vm5, %v4292_v35 }
0x229f   : > { %v6457_v42 = vpop.eup %6456 }
0x22a0   : > { %v4187_v39 = vmul.f32 %v6457_v42, %v6453_v57 }
0x22a3   : > { %v6459_v4 = vpop.eup %6458 }
0x22a4   : > { %v4186_v40 = vmul.f32 %v6459_v4, %v6455_v51 }
0x22a6   : > { %6157 = vmatprep.mubr.msk.f32.mxu0 %vm1023_vm8, %v4186_v40 }
0x22a7   : > { %6158 = vmatmul.mubr.msk.f32.vlgmr.msra.gmra.mxu0 %vm1023_vm8, %v4187_v39 }
0x22a8   : > { %6161 = vmatpush3.xpose.msk.msra.mxu0 %vm924_vm5, %v4292_v35  ;;  %6164 = vmatprep.mubr.msk.f32.mxu0 %vm924_vm5, %v4286_v15 }
0x22a9   : > { %6162 = vmatprep.subr.msk.mxu0 %vm924_vm5, %v4290_v0 }
0x22ac   : > { %6163 = vmatpush3.xpose.msk.msra.mxu0 %vm924_vm5, %v4290_v0 }
0x22af   : > { %6165 = vmatmul.mubr.msk.f32.vlgmr.msra.gmra.mxu0 %vm924_vm5, %v4288_v50 }
0x2367   : > { %v7623_v5 = vpop.f32.mrf.mxu0 }
0x2369   : > { %v7625_v6 = vpop.f32.mrf.mxu0 }
0x236f   : > { %v6166_v9 = vpop.f32.mrf.mxu0 }
0x2370   : > { %v4377_v11 = vmul.f32 0.35355338, %v6166_v9 }
0x2371   : > { %v4367_v34 = vpop.f32.mrf.mxu0 }
0x2372   : > { %v4382_v13 = vadd.f32 %v5627_v10, %v4377_v11  ;;  %v4376_v16 = vmul.f32 0.35355338, %v4367_v34 }
0x2374   : > { %v4381_v17 = vadd.f32 %v5626_v12, %v4376_v16  ;;  %v4384_v18 = vsel %vm6927_vm7, -1e+09, %v4382_v13 }
0x2375   : > { %v4388_v19 = vsel %vm1023_vm8, %v4384_v18, -inf }
0x2376   : > { %4389 = vmax.xlane.f32.xlu1 %v4388_v19  ;;  %v4383_v20 = vsel %vm6927_vm7, -1e+09, %v4381_v17 }
0x2377   : > { %v4385_v21 = vsel %vm1023_vm8, %v4383_v20, -inf }
0x2378   : > { %4386 = vmax.xlane.f32.xlu0 %v4385_v21 }
0x2387   : > { %4407 = vrot.lane.b32.xlu1 %v7456_v3, %s8029_s23 }
0x238b   : > { %4510 = vrot.lane.b32.xlu1 %v7443_v61, %s8030_s2 }
0x238f   : > { %4508 = vrot.lane.b32.xlu1 %v7437_v59, %s8030_s2 }
0x2393   : > { %4506 = vrot.lane.b32.xlu1 %v7443_v61, %s8031_s25 }
0x23ff   : > { %v4390_v31 = vpop.xlane.xlu1 %4389 }
0x2400   : > { %v4392_v22 = vsub.f32 %v4384_v18, %v4390_v31 }
0x2401   : > { %v4387_v23 = vpop.xlane.xlu0 %4386 }
0x2402   : > { %v4395_v28 = vmul.f32 1.442695, %v4392_v22  ;;  %v4391_v29 = vsub.f32 %v4383_v20, %v4387_v23 }
0x2403   : > { %v4408_v52 = vpop.permute.xlu1 %4407 }
0x2404   : > { %6460 = vpow2.f32 %v4395_v28  ;;  %v4393_v32 = vmul.f32 1.442695, %v4391_v29 }
0x2406   : > { %6462 = vpow2.f32 %v4393_v32 }
0x2407   : > { %v4511_v53 = vpop.permute.xlu1 %4510 }
0x240b   : > { %v4509_v63 = vpop.permute.xlu1 %4508 }
0x240f   : > { %v4507_v57 = vpop.permute.xlu1 %4506 }
0x2411   : > { %v6461_v33 = vpop.eup %6460 }
0x2412   : > { %v4400_v43 = vsel %vm1023_vm8, %v6461_v33, 0.0 }
0x2413   : > { %v6463_v44 = vpop.eup %6462  ;;  %4401 = vadd.xlane.f32.xlu0 %v4400_v43 }
0x2414   : > { %v4397_v45 = vsel %vm1023_vm8, %v6463_v44, 0.0 }
0x2417   : > { %4398 = vadd.xlane.f32.xlu0 %v4397_v45 }
0x242d   : > { %4409 = vrot.lane.b32.xlu0 %v7452_v2, %s8029_s23 }
0x2431   : > { %4504 = vrot.lane.b32.xlu0 %v7437_v59, %s8031_s25 }
0x249c   : > { %v4402_v46 = vpop.xlane.xlu0 %4401 }
0x249d   : > { %6464 = vrcp.f32 %v4402_v46  ;;  %v5643_v46 = vld [vmem:[%s6924_s22 + $0xf8] sm:$0xff] }
0x24a0   : > { %v4399_v47 = vpop.xlane.xlu0 %4398 }
0x24a1   : > { %6466 = vrcp.f32 %v4399_v47 }
0x24a4   : > { %v4410_v41 = vpop.permute.xlu0 %4409 }
0x24a5   : > { %6167 = vmatprep.subr.mxu1 %v4410_v41 }
0x24a6   : > { %6168 = vmatpush3.msra.mxu1 %v4410_v41  ;;  %v5642_v41 = vld [vmem:[%s6924_s22 + $0xf0] sm:$0xff] }
0x24a7   : > { %6169 = vmatprep.subr.mxu1 %v4408_v52 }
0x24a8   : > { %6170 = vmatpush3.msra.mxu1 %v4408_v52  ;;  %v4505_v56 = vpop.permute.xlu0 %4504 }
0x24a9   : > { %6174 = vmatprep.subr.msk.mxu1 %vm924_vm5, %v4511_v53 }
0x24aa   : > { %v6465_v37 = vpop.eup %6464 }
0x24ab   : > { %v4406_v36 = vmul.f32 %v6465_v37, %v6461_v33 }
0x24ae   : > { %v6467_v54 = vpop.eup %6466 }
0x24af   : > { %v4405_v55 = vmul.f32 %v6467_v54, %v6463_v44 }
0x24b1   : > { %6171 = vmatprep.mubr.msk.f32.mxu1 %vm1023_vm8, %v4405_v55 }
0x24b2   : > { %6172 = vmatmul.mubr.msk.f32.vlgmr.msra.gmra.mxu1 %vm1023_vm8, %v4406_v36 }
0x24b3   : > { %6175 = vmatpush3.xpose.msk.msra.mxu1 %vm924_vm5, %v4511_v53  ;;  %6178 = vmatprep.mubr.msk.f32.mxu1 %vm924_vm5, %v4505_v56 }
0x24b4   : > { %6176 = vmatprep.subr.msk.mxu1 %vm924_vm5, %v4509_v63 }
0x24b7   : > { %6177 = vmatpush3.xpose.msk.msra.mxu1 %vm924_vm5, %v4509_v63 }
0x24ba   : > { %6179 = vmatmul.mubr.msk.f32.vlgmr.msra.gmra.mxu1 %vm924_vm5, %v4507_v57 }
0x2572   : > { %v7657_v60 = vpop.f32.mrf.mxu1 }
0x2574   : > { %v7659_v51 = vpop.f32.mrf.mxu1 }
0x257a   : > { %v6180_v62 = vpop.f32.mrf.mxu1 }
0x257b   : > { %v4596_v1 = vmul.f32 0.35355338, %v6180_v62 }
0x257c   : > { %v4586_v30 = vpop.f32.mrf.mxu1 }
0x257d   : > { %v4601_v35 = vadd.f32 %v5635_v27, %v4596_v1  ;;  %v4595_v42 = vmul.f32 0.35355338, %v4586_v30 }
0x257f   : > { %v4600_v4 = vadd.f32 %v5634_v26, %v4595_v42  ;;  %v4603_v40 = vsel %vm6927_vm7, -1e+09, %v4601_v35 }
0x2580   : > { %v4607_v39 = vsel %vm1023_vm8, %v4603_v40, -inf }
0x2581   : > { %4608 = vmax.xlane.f32.xlu1 %v4607_v39  ;;  %v4602_v15 = vsel %vm6927_vm7, -1e+09, %v4600_v4 }
0x2582   : > { %v4604_v0 = vsel %vm1023_vm8, %v4602_v15, -inf }
0x2583   : > { %4605 = vmax.xlane.f32.xlu0 %v4604_v0 }
0x2592   : > { %4626 = vrot.lane.b32.xlu1 %v7456_v3, %s8031_s25 }
0x2596   : > { %4729 = vrot.lane.b32.xlu1 %v7443_v61, %s8032_s18 }
0x259a   : > { %4727 = vrot.lane.b32.xlu1 %v7437_v59, %s8032_s18 }
0x259e   : > { %4725 = vrot.lane.b32.xlu1 %v7443_v61, %s8033_s26 }
0x260a   : > { %v4609_v50 = vpop.xlane.xlu1 %4608 }
0x260b   : > { %v4611_v9 = vsub.f32 %v4603_v40, %v4609_v50 }
0x260c   : > { %v4606_v10 = vpop.xlane.xlu0 %4605 }
0x260d   : > { %v4614_v11 = vmul.f32 1.442695, %v4611_v9  ;;  %v4610_v34 = vsub.f32 %v4602_v15, %v4606_v10 }
0x260e   : > { %v4627_v20 = vpop.permute.xlu1 %4626 }
0x260f   : > { %6468 = vpow2.f32 %v4614_v11  ;;  %v4612_v12 = vmul.f32 1.442695, %v4610_v34  ;;  %v5653_v34 = vld [vmem:[%s7954_s5 + $0x78] sm:$0xff] }
0x2611   : > { %6470 = vpow2.f32 %v4612_v12  ;;  %v5652_v12 = vld [vmem:[%s7954_s5 + $0x70] sm:$0xff] }
0x2612   : > { %v4730_v31 = vpop.permute.xlu1 %4729 }
0x2616   : > { %v4728_v32 = vpop.permute.xlu1 %4727 }
0x261a   : > { %v4726_v33 = vpop.permute.xlu1 %4725 }
0x261c   : > { %v6469_v13 = vpop.eup %6468 }
0x261d   : > { %v4619_v16 = vsel %vm1023_vm8, %v6469_v13, 0.0 }
0x261e   : > { %v6471_v17 = vpop.eup %6470  ;;  %4620 = vadd.xlane.f32.xlu0 %v4619_v16  ;;  %v5650_v16 = vld [vmem:[%s7954_s5 + $0x60] sm:$0xff] }
0x261f   : > { %v4616_v18 = vsel %vm1023_vm8, %v6471_v17, 0.0 }
0x2622   : > { %4617 = vadd.xlane.f32.xlu0 %v4616_v18  ;;  %v5648_v18 = vld [vmem:[%s7954_s5 + $0x50] sm:$0xff] }
0x2638   : > { %4628 = vrot.lane.b32.xlu0 %v7452_v2, %s8031_s25  ;;  %s5481_s25 = sshll.u32 %s6920_s21, 4 }
0x2639   : > { %s733_s29 = scalar_lea.vmem [#allocation4], %s5481_s25  ;;  %s6581_s25 = smov [#allocation4]  }
0x263a   : > { %s6506_s22 = sshll.u32 %s6581_s25, 4  ;;  %s6507_s22 = int_to_ptr.vmem [resolvable:$false] %s6506_s22 }
0x263c   : > { %4723 = vrot.lane.b32.xlu0 %v7437_v59, %s8033_s26 }
0x26a7   : > { %v4621_v61 = vpop.xlane.xlu0 %4620 }
0x26a8   : > { %6472 = vrcp.f32 %v4621_v61  ;;  %v5647_v61 = vld [vmem:[%s7954_s5 + $0x48] sm:$0xff] }
0x26ab   : > { %v4618_v19 = vpop.xlane.xlu0 %4617 }
0x26ac   : > { %6474 = vrcp.f32 %v4618_v19  ;;  %v5646_v19 = vld [vmem:[%s7954_s5 + $0x40] sm:$0xff] }
0x26af   : > { %v4629_v21 = vpop.permute.xlu0 %4628 }
0x26b0   : > { %6181 = vmatprep.subr.mxu0 %v4629_v21 }
0x26b1   : > { %6182 = vmatpush3.msra.mxu0 %v4629_v21 }
0x26b2   : > { %6183 = vmatprep.subr.mxu0 %v4627_v20 }
0x26b3   : > { %6184 = vmatpush3.msra.mxu0 %v4627_v20  ;;  %v4724_v59 = vpop.permute.xlu0 %4723 }
0x26b4   : > { %6188 = vmatprep.subr.msk.mxu0 %vm924_vm5, %v4730_v31 }
0x26b5   : > { %v6473_v22 = vpop.eup %6472 }
0x26b6   : > { %v4625_v29 = vmul.f32 %v6473_v22, %v6469_v13  ;;  %v5651_v13 = vld [vmem:[%s7954_s5 + $0x68] sm:$0xff] }
0x26b9   : > { %v6475_v23 = vpop.eup %6474 }
0x26ba   : > { %v4624_v28 = vmul.f32 %v6475_v23, %v6471_v17  ;;  %v5649_v17 = vld [vmem:[%s7954_s5 + $0x58] sm:$0xff] }
0x26bc   : > { %6185 = vmatprep.mubr.msk.f32.mxu0 %vm1023_vm8, %v4624_v28 }
0x26bd   : > { %6186 = vmatmul.mubr.msk.f32.vlgmr.msra.gmra.mxu0 %vm1023_vm8, %v4625_v29 }
0x26be   : > { %6189 = vmatpush3.xpose.msk.msra.mxu0 %vm924_vm5, %v4730_v31  ;;  %6192 = vmatprep.mubr.msk.f32.mxu0 %vm924_vm5, %v4724_v59  ;;  %v5657_v59 = vld [vmem:[%s7955_s6 + $0x1] ss:$0 sm:$0xff] }
0x26bf   : > { %6190 = vmatprep.subr.msk.mxu0 %vm924_vm5, %v4728_v32 }
0x26c2   : > { %6191 = vmatpush3.xpose.msk.msra.mxu0 %vm924_vm5, %v4728_v32 }
0x26c5   : > { %6193 = vmatmul.mubr.msk.f32.vlgmr.msra.gmra.mxu0 %vm924_vm5, %v4726_v33 }
0x277d   : > { %v6187_v43 = vpop.f32.mrf.mxu0 }
0x277f   : > { %v4704_v44 = vpop.f32.mrf.mxu0 }
0x2785   : > { %v6194_v45 = vpop.f32.mrf.mxu0 }
0x2786   : > { %v4815_v47 = vmul.f32 0.35355338, %v6194_v45 }
0x2787   : > { %v4805_v52 = vpop.f32.mrf.mxu0 }
0x2788   : > { %v4820_v53 = vadd.f32 %v5643_v46, %v4815_v47  ;;  %v4814_v37 = vmul.f32 0.35355338, %v4805_v52 }
0x278a   : > { %v4819_v54 = vadd.f32 %v5642_v41, %v4814_v37  ;;  %v4822_v55 = vsel %vm6927_vm7, -1e+09, %v4820_v53 }
0x278b   : > { %v4826_v36 = vsel %vm1023_vm8, %v4822_v55, -inf }
0x278c   : > { %4827 = vmax.xlane.f32.xlu1 %v4826_v36  ;;  %v4821_v56 = vsel %vm6927_vm7, -1e+09, %v4819_v54 }
0x278d   : > { %v4823_v63 = vsel %vm1023_vm8, %v4821_v56, -inf }
0x278e   : > { %4824 = vmax.xlane.f32.xlu0 %v4823_v63  ;;  %v5669_v63 = vld [vmem:[%s7956_s7 + $0x78] sm:$0xff] }
0x278f   : > { %6221 = vmatprep.subr.mxu0 %v5669_v63 }
0x2790   : > { %6222 = vmatpush3.msra.mxu0 %v5669_v63 }
0x279d   : > { %4845 = vrot.lane.b32.xlu1 %v7456_v3, %s8033_s26 }
0x27a1   : > { %3620 = vrot.lane.b32.xlu1 %v7523_v8, %s8032_s18 }
0x27a5   : > { %3622 = vrot.lane.b32.xlu1 %v7521_v7, %s8032_s18 }
0x27a9   : > { %3841 = vrot.lane.b32.xlu1 %v7555_v38, %s8030_s2 }
0x27ad   : > { %4060 = vrot.lane.b32.xlu1 %v7589_v24, %s8028_s20 }
0x27b1   : > { %4279 = vrot.lane.b32.xlu1 %v7623_v5, %s8026_s30 }
0x27b5   : > { %4498 = vrot.lane.b32.xlu1 %v7657_v60, %s8024_s19 }
0x27b9   : > { %4717 = vrot.lane.b32.xlu1 %v6187_v43, %s8022_s0 }
0x2815   : > { %v4828_v49 = vpop.xlane.xlu1 %4827 }
0x2816   : > { %v4830_v3 = vsub.f32 %v4822_v55, %v4828_v49  ;;  %v5668_v49 = vld [vmem:[%s7956_s7 + $0x70] sm:$0xff] }
0x2817   : > { %v4825_v8 = vpop.xlane.xlu0 %4824  ;;  %6223 = vmatprep.subr.mxu0 %v5668_v49 }
0x2818   : > { %v4833_v57 = vmul.f32 1.442695, %v4830_v3  ;;  %v4829_v62 = vsub.f32 %v4821_v56, %v4825_v8  ;;  %v5667_v3 = vld [vmem:[%s7956_s7 + $0x68] sm:$0xff]  ;;  %6224 = vmatpush3.msra.mxu0 %v5668_v49  ;;  %v5666_v8 = vld [vmem:[%s7956_s7 + $0x60] sm:$0xff] }
0x2819   : > { %v4846_v7 = vpop.permute.xlu1 %4845  ;;  %6225 = vmatprep.subr.mxu0 %v5667_v3 }
0x281a   : > { %6476 = vpow2.f32 %v4833_v57  ;;  %v4831_v27 = vmul.f32 1.442695, %v4829_v62  ;;  %6226 = vmatpush3.msra.mxu0 %v5667_v3  ;;  %v5665_v57 = vld [vmem:[%s7956_s7 + $0x58] sm:$0xff]  ;;  %v5664_v62 = vld [vmem:[%s7956_s7 + $0x50] sm:$0xff] }
0x281b   : > { %6227 = vmatprep.subr.mxu0 %v5666_v8 }
0x281c   : > { %6478 = vpow2.f32 %v4831_v27  ;;  %6228 = vmatpush3.msra.mxu0 %v5666_v8  ;;  %v5662_v27 = vld [vmem:[%s7956_s7 + $0x40] sm:$0xff] }
0x281d   : > { %v3621_v38 = vpop.permute.xlu1 %3620  ;;  %6229 = vmatprep.subr.mxu0 %v5665_v57 }
0x281e   : > { %3626 = vst.msk [vmem:[#allocation2] sm:$0xff] %vm1348_vm9, %v3621_v38  ;;  %6230 = vmatpush3.msra.mxu0 %v5665_v57  ;;  %v5689_v38 = vld [vmem:[%s7958_s9 + $0xf8] sm:$0xff] }
0x281f   : > { %6231 = vmatprep.subr.mxu0 %v5664_v62 }
0x2820   : > { %6232 = vmatpush3.msra.mxu0 %v5664_v62 }
0x2821   : > { %v3623_v24 = vpop.permute.xlu1 %3622 }
0x2822   : > { %3627 = vst.msk [vmem:[#allocation2 + $0x8] sm:$0xff] %vm1348_vm9, %v3623_v24  ;;  %v5688_v24 = vld [vmem:[%s7958_s9 + $0xf0] sm:$0xff] }
0x2825   : > { %v3842_v5 = vpop.permute.xlu1 %3841 }
0x2826   : > { %3846 = vst.msk [vmem:[#allocation2 + $0x8] sm:$0xff] %vm1568_vm10, %v3842_v5  ;;  %v5687_v5 = vld [vmem:[%s7958_s9 + $0xe8] sm:$0xff] }
0x2827   : > { %v6477_v60 = vpop.eup %6476 }
0x2828   : > { %v4838_v1 = vsel %vm1023_vm8, %v6477_v60, 0.0 }
0x2829   : > { %v6479_v30 = vpop.eup %6478  ;;  %v4061_v26 = vpop.permute.xlu1 %4060  ;;  %4839 = vadd.xlane.f32.xlu0 %v4838_v1  ;;  %v5685_v1 = vld [vmem:[%s7958_s9 + $0xd8] sm:$0xff] }
0x282a   : > { %4065 = vst.msk [vmem:[#allocation2 + $0x8] sm:$0xff] %vm1788_vm11, %v4061_v26  ;;  %v4835_v35 = vsel %vm1023_vm8, %v6479_v30, 0.0  ;;  %v5683_v26 = vld [vmem:[%s7958_s9 + $0xc8] sm:$0xff] }
0x282d   : > { %v4280_v42 = vpop.permute.xlu1 %4279  ;;  %4836 = vadd.xlane.f32.xlu0 %v4835_v35  ;;  %v5682_v35 = vld [vmem:[%s7958_s9 + $0xc0] sm:$0xff] }
0x282e   : > { %4284 = vst.msk [vmem:[#allocation2 + $0x8] sm:$0xff] %vm2008_vm12, %v4280_v42  ;;  %v5681_v42 = vld [vmem:[%s7958_s9 + $0xb8] sm:$0xff] }
0x2831   : > { %v4499_v4 = vpop.permute.xlu1 %4498 }
0x2832   : > { %4503 = vst.msk [vmem:[#allocation2 + $0x8] sm:$0xff] %vm2228_vm13, %v4499_v4  ;;  %v5680_v4 = vld [vmem:[%s7958_s9 + $0xb0] sm:$0xff] }
0x2835   : > { %v4718_v40 = vpop.permute.xlu1 %4717 }
0x2836   : > { %4722 = vst.msk [vmem:[#allocation2 + $0x8] sm:$0xff] %vm2448_vm14, %v4718_v40  ;;  %v5679_v40 = vld [vmem:[%s7958_s9 + $0xa8] sm:$0xff] }
0x2843   : > { %4847 = vrot.lane.b32.xlu0 %v7452_v2, %s8033_s26 }
0x2847   : > { %3839 = vrot.lane.b32.xlu0 %v7557_v14, %s8030_s2 }
0x284b   : > { %4058 = vrot.lane.b32.xlu0 %v7591_v25, %s8028_s20  ;;  %s5384_s20 = sshll.u32 %s733_s29, 4  ;;  %s7904_s20 = int_to_ptr.vmem [resolvable:$true] %s5384_s20 }
0x284c   : > { %s6502_s26 = scalar_lea.vmem %s7904_s20, 256  ;;  %p6509_p4 = scmp.lt.s32.totalorder %s7904_s20, %s6507_s22 }
0x284d   : > { %p6503_p1 = scmp.ne.s32.totalorder %s7904_s20, %s6502_s26 }
0x284f   : > { %4277 = vrot.lane.b32.xlu0 %v7625_v6, %s8026_s30  ;;  %s5700_s30 = sshll.u32 %s6694_s28, 8  ;;  %s5371_s28 = scalar_lea.sflag [#allocation5], %s6920_s21 }
0x2850   : > { %p6504_p2 = pnand %p6503_p1, %p6712_p6 }
0x2852   : > { %p6505_p3 = pneg %p6504_p2 }
0x2853   : > { %4496 = vrot.lane.b32.xlu0 %v7659_v51, %s8024_s19 }
0x2857   : > { %4715 = vrot.lane.b32.xlu0 %v4704_v44, %s8022_s0  ;;  %s6508_s0 = scalar_lea.vmem %s6507_s22, 512 }
0x2858   : > { %p6510_p5 = scmp.lt.s32.totalorder %s6508_s0, %s6502_s26 }
0x285a   : > { %p6511_p7 = por %p6510_p5, %p6509_p4 }
0x285c   : > { %p6512_p10 = pnand %p6511_p7, %p6505_p3 }
0x28b2   : > { %v4840_v39 = vpop.xlane.xlu0 %4839 }
0x28b3   : > { %6480 = vrcp.f32 %v4840_v39  ;;  %v5678_v39 = vld [vmem:[%s7958_s9 + $0xa0] sm:$0xff] }
0x28b6   : > { %v4837_v15 = vpop.xlane.xlu0 %4836 }
0x28b7   : > { %6482 = vrcp.f32 %v4837_v15 }
0x28ba   : > { %v4848_v0 = vpop.permute.xlu0 %4847 }
0x28bb   : > { %6195 = vmatprep.subr.mxu1 %v4848_v0 }
0x28bc   : > { %6196 = vmatpush3.msra.mxu1 %v4848_v0 }
0x28bd   : > { %6197 = vmatprep.subr.mxu1 %v4846_v7 }
0x28be   : > { %6198 = vmatpush3.msra.mxu1 %v4846_v7  ;;  %v3840_v2 = vpop.permute.xlu0 %3839  ;;  %v5663_v7 = vld [vmem:[%s7956_s7 + $0x48] sm:$0xff] }
0x28bf   : > { %3845 = vst.msk [vmem:[#allocation2] sm:$0xff] %vm1568_vm10, %v3840_v2  ;;  %6202 = vmatprep.subr.mxu1 %v5653_v34  ;;  %6233 = vmatprep.subr.mxu0 %v5663_v7 }
0x28c0   : > { %v6481_v25 = vpop.eup %6480  ;;  %6234 = vmatpush3.msra.mxu0 %v5663_v7 }
0x28c1   : > { %v4844_v9 = vmul.f32 %v6481_v25, %v6477_v60  ;;  %6235 = vmatprep.subr.mxu0 %v5662_v27  ;;  %v5686_v60 = vld [vmem:[%s7958_s9 + $0xe0] sm:$0xff] }
0x28c2   : > { %v4059_v14 = vpop.permute.xlu0 %4058  ;;  %6236 = vmatpush3.msra.mxu0 %v5662_v27 }
0x28c3   : > { %4064 = vst.msk [vmem:[#allocation2] sm:$0xff] %vm1788_vm11, %v4059_v14 }
0x28c4   : > { %v6483_v6 = vpop.eup %6482 }
0x28c5   : > { %v4843_v51 = vmul.f32 %v6483_v6, %v6479_v30  ;;  %v5684_v30 = vld [vmem:[%s7958_s9 + $0xd0] sm:$0xff] }
0x28c6   : > { %v4278_v50 = vpop.permute.xlu0 %4277 }
0x28c7   : > { %4283 = vst.msk [vmem:[#allocation2] sm:$0xff] %vm2008_vm12, %v4278_v50  ;;  %6199 = vmatprep.mubr.msk.f32.mxu1 %vm1023_vm8, %v4843_v51 }
0x28c8   : > { %6200 = vmatmul.mubr.msk.f32.vlgmr.msra.gmra.mxu1 %vm1023_vm8, %v4844_v9 }
0x28c9   : > { %6203 = vmatpush3.msra.mxu1 %v5653_v34 }
0x28ca   : > { %v4497_v10 = vpop.permute.xlu0 %4496  ;;  %6204 = vmatprep.subr.mxu1 %v5652_v12 }
0x28cb   : > { %4502 = vst.msk [vmem:[#allocation2] sm:$0xff] %vm2228_vm13, %v4497_v10  ;;  %6205 = vmatpush3.msra.mxu1 %v5652_v12 }
0x28cc   : > { %6206 = vmatprep.subr.mxu1 %v5651_v13 }
0x28cd   : > { %6207 = vmatpush3.msra.mxu1 %v5651_v13 }
0x28ce   : > { %v4716_v11 = vpop.permute.xlu0 %4715  ;;  %6208 = vmatprep.subr.mxu1 %v5650_v16 }
0x28cf   : > { %4721 = vst.msk [vmem:[#allocation2] sm:$0xff] %vm2448_vm14, %v4716_v11  ;;  %6209 = vmatpush3.msra.mxu1 %v5650_v16 }
0x28d0   : > { %6210 = vmatprep.subr.mxu1 %v5649_v17 }
0x28d1   : > { %6211 = vmatpush3.msra.mxu1 %v5649_v17 }
0x28d2   : > { %6212 = vmatprep.subr.mxu1 %v5648_v18 }
0x28d3   : > { %6213 = vmatpush3.msra.mxu1 %v5648_v18 }
0x28d4   : > { %6214 = vmatprep.subr.mxu1 %v5647_v61 }
0x28d5   : > { %6215 = vmatpush3.msra.mxu1 %v5647_v61  ;;  %v5660_v61 = vld [vmem:[%s7962_s13 + $0x1] ss:$0 sm:$0xff] }
0x28d6   : > { %6216 = vmatprep.subr.mxu1 %v5646_v19 }
0x28d7   : > { %6217 = vmatpush3.msra.mxu1 %v5646_v19 }
0x28d8   : > { %6240 = vmatprep.subr.mxu1 %v5689_v38 }
0x2988   : > { %v6201_v20 = vpop.f32.mrf.mxu1 }
0x2989   : > { %4936 = vrot.lane.b32.xlu1 %v6201_v20, %s8019_s27  ;;  %v5661_v20 = vld [vmem:[%s7963_s14 + $0x1] ss:$0 sm:$0xff] }
0x298a   : > { %v4923_v21 = vpop.f32.mrf.mxu1 }
0x298b   : > { %4934 = vrot.lane.b32.xlu0 %v4923_v21, %s8019_s27  ;;  %s7902_s27 = scalar_lea.hbm %s7966_s17, %s5700_s30 }
0x29fb   : > { %v4937_v31 = vpop.permute.xlu1 %4936 }
0x29fc   : > { %4941 = vst.msk [vmem:[#allocation2 + $0x8] sm:$0xff] %vm2668_vm15, %v4937_v31 }
0x29fd   : > { %v4935_v22 = vpop.permute.xlu0 %4934 }
0x29fe   : > { %4940 = vst.msk [vmem:[#allocation2] sm:$0xff] %vm2668_vm15, %v4935_v22 }
0x2a03   : > { %v4943_v28 = vld [vmem:[#allocation2 + $0x8] sm:$0xff] }
0x2a05   : > { %v4942_v23 = vld [vmem:[#allocation2] sm:$0xff] }
0x2a06   : > { %6218 = vmatprep.mubr.msk.f32.mxu1 %vm749_vm0, %v4942_v23 }
0x2a07   : > { %6219 = vmatmul.mubr.msk.f32.vlgmr.msra.gmra.mxu1 %vm749_vm0, %v4943_v28 }
0x2a08   : > { %6241 = vmatpush3.msra.mxu1 %v5689_v38 }
0x2a09   : > { %6242 = vmatprep.subr.mxu1 %v5688_v24 }
0x2a0a   : > { %6243 = vmatpush3.msra.mxu1 %v5688_v24 }
0x2a0b   : > { %6244 = vmatprep.subr.mxu1 %v5687_v5 }
0x2a0c   : > { %6245 = vmatpush3.msra.mxu1 %v5687_v5 }
0x2a0d   : > { %6246 = vmatprep.subr.mxu1 %v5686_v60 }
0x2a0e   : > { %6247 = vmatpush3.msra.mxu1 %v5686_v60 }
0x2a0f   : > { %6248 = vmatprep.subr.mxu1 %v5685_v1 }
0x2a10   : > { %6249 = vmatpush3.msra.mxu1 %v5685_v1 }
0x2a11   : > { %6250 = vmatprep.subr.mxu1 %v5684_v30 }
0x2a12   : > { %6251 = vmatpush3.msra.mxu1 %v5684_v30 }
0x2a13   : > { %6252 = vmatprep.subr.mxu1 %v5683_v26 }
0x2a14   : > { %6253 = vmatpush3.msra.mxu1 %v5683_v26 }
0x2a15   : > { %6254 = vmatprep.subr.mxu1 %v5682_v35 }
0x2a16   : > { %6255 = vmatpush3.msra.mxu1 %v5682_v35 }
0x2a17   : > { %6256 = vmatprep.subr.mxu1 %v5681_v42 }
0x2a18   : > { %6257 = vmatpush3.msra.mxu1 %v5681_v42 }
0x2a19   : > { %6258 = vmatprep.subr.mxu1 %v5680_v4 }
0x2a1a   : > { %6259 = vmatpush3.msra.mxu1 %v5680_v4 }
0x2a1b   : > { %6260 = vmatprep.subr.mxu1 %v5679_v40 }
0x2a1c   : > { %6261 = vmatpush3.msra.mxu1 %v5679_v40 }
0x2a1d   : > { %6262 = vmatprep.subr.mxu1 %v5678_v39 }
0x2a1e   : > { %6263 = vmatpush3.msra.mxu1 %v5678_v39 }
0x2ac7   : > { %v6220_v29 = vpop.f32.mrf.mxu1 }
0x2ac8   : > { %v5035_v32 = vadd.f32 %v6220_v29, %v7353_v48 }
0x2ac9   : > { %v5025_v33 = vpop.f32.mrf.mxu1 }
0x2aca   : > { %v7775_v43 = vadd.f32 %v5657_v59, %v5035_v32  ;;  %v5034_v44 = vadd.f32 %v5025_v33, %v7356_v58  ;;  %v5676_v32 = vld [vmem:[%s7958_s9 + $0x90] sm:$0xff]  ;;  %v5675_v33 = vld [vmem:[%s7958_s9 + $0x88] sm:$0xff] }
0x2acc   : > { %v7778_v45 = vadd.f32 %v5657_v59, %v5034_v44  ;;  %v5053_v46 = vsel %vm749_vm0, %v7775_v43, 0.0  ;;  %v5677_v59 = vld [vmem:[%s7958_s9 + $0x98] sm:$0xff]  ;;  %v5674_v44 = vld [vmem:[%s7958_s9 + $0x80] sm:$0xff] }
0x2acd   : > { %5054 = vadd.xlane.f32.xlu1 %v5053_v46  ;;  %6264 = vmatprep.subr.mxu1 %v5677_v59  ;;  %v5671_v46 = vld [vmem:[%s7957_s8 + $0x1] ss:$0 sm:$0xff] }
0x2ace   : > { %v5050_v47 = vsel %vm749_vm0, %v7778_v45, 0.0  ;;  %6265 = vmatpush3.msra.mxu1 %v5677_v59 }
0x2acf   : > { %5051 = vadd.xlane.f32.xlu0 %v5050_v47  ;;  %6266 = vmatprep.subr.mxu1 %v5676_v32 }
0x2ad0   : > { %6267 = vmatpush3.msra.mxu1 %v5676_v32 }
0x2ad1   : > { %6268 = vmatprep.subr.mxu1 %v5675_v33 }
0x2ad2   : > { %6269 = vmatpush3.msra.mxu1 %v5675_v33 }
0x2ad3   : > { %6270 = vmatprep.subr.mxu1 %v5674_v44 }
0x2ad4   : > { %6271 = vmatpush3.msra.mxu1 %v5674_v44 }
0x2b56   : > { %v5055_v52 = vpop.xlane.xlu1 %5054 }
0x2b57   : > { %v5057_v41 = vmul.f32 0.015625, %v5055_v52 }
0x2b58   : > { %v5052_v53 = vpop.xlane.xlu0 %5051 }
0x2b59   : > { %v5056_v37 = vmul.f32 0.015625, %v5052_v53  ;;  %v7785_v48 = vsub.f32 %v7775_v43, %v5057_v41 }
0x2b5b   : > { %v7788_v54 = vsub.f32 %v7778_v45, %v5056_v37  ;;  %v5061_v36 = vmul.f32 %v7785_v48, %v7785_v48 }
0x2b5d   : > { %v5060_v58 = vmul.f32 %v7788_v54, %v7788_v54  ;;  %v5065_v56 = vsel %vm749_vm0, %v5061_v36, 0.0 }
0x2b5f   : > { %v5062_v55 = vsel %vm749_vm0, %v5060_v58, 0.0  ;;  %v5691_v58 = vld [vmem:[%s7959_s10 + $0x1] ss:$0 sm:$0xff] }
0x2b60   : > { %5063 = vadd.xlane.f32.xlu0 %v5062_v55 }
0x2b64   : > { %5066 = vadd.xlane.f32.xlu0 %v5065_v56 }
0x2be9   : > { %v5064_v15 = vpop.xlane.xlu0 %5063 }
0x2bea   : > { %v5068_v0 = vmul.f32 0.015873017, %v5064_v15 }
0x2bec   : > { %6484 = vrsqrt.f32 %v5068_v0  ;;  %vm5072_vm5 = vcmp.eq.f32.partialorder %v5068_v0, inf  ;;  %v5075_v51 = vand.u32 2147483648, %v5068_v0  ;;  %vm5074_vm7 = vcmp.eq.f32.partialorder %v5068_v0, 0.0 }
0x2bed   : > { %v5067_v2 = vpop.xlane.xlu0 %5066 }
0x2bee   : > { %v5069_v14 = vmul.f32 0.015873017, %v5067_v2 }
0x2bf0   : > { %6486 = vrsqrt.f32 %v5069_v14  ;;  %vm5079_vm8 = vcmp.eq.f32.partialorder %v5069_v14, inf  ;;  %v5082_v12 = vand.u32 2147483648, %v5069_v14  ;;  %vm5081_vm9 = vcmp.eq.f32.partialorder %v5069_v14, 0.0 }
0x2bf9   : > { %v6485_v25 = vpop.eup %6484 }
0x2bfa   : > { %v5071_v6 = vmul.f32 %v6485_v25, %v5068_v0 }
0x2bfc   : > { %v5073_v50 = vsel %vm5072_vm5, %v5068_v0, %v5071_v6 }
0x2bfd   : > { %v6487_v9 = vpop.eup %6486  ;;  %v5076_v10 = vsel %vm5074_vm7, %v5075_v51, %v5073_v50 }
0x2bfe   : > { %v5084_v11 = vadd.f32 1e-06, %v5076_v10  ;;  %v5078_v34 = vmul.f32 %v6487_v9, %v5069_v14  ;;  %v5692_v10 = vld [vmem:[%s7964_s15] ss:$0 sm:$0xff] }
0x2c00   : > { %6488 = vrcp.f32 %v5084_v11  ;;  %v5080_v13 = vsel %vm5079_vm8, %v5069_v14, %v5078_v34  ;;  %v5693_v34 = vld [vmem:[%s7965_s16] ss:$0 sm:$0xff] }
0x2c01   : > { %v5083_v16 = vsel %vm5081_vm9, %v5082_v12, %v5080_v13 }
0x2c02   : > { %v5085_v17 = vadd.f32 1e-06, %v5083_v16 }
0x2c04   : > { %6490 = vrcp.f32 %v5085_v17 }
0x2c0d   : > { %v6489_v18 = vpop.eup %6488 }
0x2c0e   : > { %v5088_v19 = vmul.f32 %v6489_v18, %v7788_v54 }
0x2c10   : > { %v5096_v21 = vmul.f32 %v5660_v61, %v5088_v19 }
0x2c11   : > { %v6491_v31 = vpop.eup %6490 }
0x2c12   : > { %v5089_v22 = vmul.f32 %v6491_v31, %v7785_v48  ;;  %v5104_v23 = vadd.f32 %v5661_v20, %v5096_v21 }
0x2c14   : > { %v5097_v28 = vmul.f32 %v5660_v61, %v5089_v22  ;;  %6237 = vmatprep.mubr.msk.f32.mxu0 %vm749_vm0, %v5104_v23 }
0x2c16   : > { %v5105_v29 = vadd.f32 %v5661_v20, %v5097_v28 }
0x2c18   : > { %6238 = vmatmul.mubr.msk.f32.vlgmr.msra.gmra.mxu0 %vm749_vm0, %v5105_v29 }
0x2cd8   : > { %v6239_v47 = vpop.f32.mrf.mxu0 }
0x2cd9   : > { %v5201_v52 = vadd.f32 %v6239_v47, %v5671_v46 }
0x2cda   : > { %v5195_v41 = vpop.f32.mrf.mxu0 }
0x2cdb   : > { %v5196_v53 = vadd.f32 %v5671_v46, %v5195_v41  ;;  %v5205_v48 = vmax.f32 %v5201_v52, 0.0 }
0x2cdd   : > { %v5204_v37 = vmax.f32 %v5196_v53, 0.0 }
0x2cdf   : > { %6272 = vmatprep.mubr.f32.mxu1 %v5204_v37 }
0x2ce0   : > { %6273 = vmatmul.mubr.f32.vlgmr.msra.gmra.mxu1 %v5205_v48 }
0x2da0   : > { %v6274_v54 = vpop.f32.mrf.mxu1 }
0x2da1   : > { %v5299_v55 = vadd.f32 %v6274_v54, %v7775_v43 }
0x2da2   : > { %v5289_v36 = vpop.f32.mrf.mxu1 }
0x2da3   : > { %v5309_v56 = vadd.f32 %v5691_v58, %v5299_v55  ;;  %v5298_v63 = vadd.f32 %v5289_v36, %v7778_v45 }
0x2da5   : > { %v5308_v49 = vadd.f32 %v5691_v58, %v5298_v63  ;;  %v5315_v3 = vsel %vm749_vm0, %v5309_v56, 0.0 }
0x2da6   : > { %5316 = vadd.xlane.f32.xlu1 %v5315_v3 }
0x2da7   : > { %v5312_v8 = vsel %vm749_vm0, %v5308_v49, 0.0 }
0x2da8   : > { %5313 = vadd.xlane.f32.xlu0 %v5312_v8 }
0x2e2f   : > { %v5317_v57 = vpop.xlane.xlu1 %5316 }
0x2e30   : > { %v5319_v62 = vmul.f32 0.015625, %v5317_v57 }
0x2e31   : > { %v5314_v7 = vpop.xlane.xlu0 %5313 }
0x2e32   : > { %v5321_v27 = vsub.f32 %v5309_v56, %v5319_v62  ;;  %v5318_v38 = vmul.f32 0.015625, %v5314_v7 }
0x2e34   : > { %v5320_v24 = vsub.f32 %v5308_v49, %v5318_v38  ;;  %v5323_v5 = vmul.f32 %v5321_v27, %v5321_v27 }
0x2e36   : > { %v5327_v43 = vsel %vm749_vm0, %v5323_v5, 0.0  ;;  %v5322_v60 = vmul.f32 %v5320_v24, %v5320_v24 }
0x2e37   : > { %5328 = vadd.xlane.f32.xlu1 %v5327_v43 }
0x2e38   : > { %v5324_v45 = vsel %vm749_vm0, %v5322_v60, 0.0 }
0x2e39   : > { %5325 = vadd.xlane.f32.xlu0 %v5324_v45 }
0x2ec0   : > { %v5329_v1 = vpop.xlane.xlu1 %5328 }
0x2ec1   : > { %v5331_v30 = vmul.f32 0.015873017, %v5329_v1 }
0x2ec2   : > { %v5326_v26 = vpop.xlane.xlu0 %5325 }
0x2ec3   : > { %6492 = vrsqrt.f32 %v5331_v30  ;;  %v5330_v35 = vmul.f32 0.015873017, %v5326_v26  ;;  %vm5341_vm10 = vcmp.eq.f32.partialorder %v5331_v30, inf  ;;  %v5344_v40 = vand.u32 2147483648, %v5331_v30 }
0x2ec4   : > { %vm5343_vm11 = vcmp.eq.f32.partialorder %v5331_v30, 0.0 }
0x2ec5   : > { %6494 = vrsqrt.f32 %v5330_v35  ;;  %vm5334_vm12 = vcmp.eq.f32.partialorder %v5330_v35, inf  ;;  %v5337_v25 = vand.u32 2147483648, %v5330_v35  ;;  %vm5336_vm13 = vcmp.eq.f32.partialorder %v5330_v35, 0.0 }
0x2ed0   : > { %v6493_v42 = vpop.eup %6492 }
0x2ed1   : > { %v5340_v4 = vmul.f32 %v6493_v42, %v5331_v30 }
0x2ed2   : > { %v6495_v39 = vpop.eup %6494 }
0x2ed3   : > { %v5342_v15 = vsel %vm5341_vm10, %v5331_v30, %v5340_v4  ;;  %v5333_v2 = vmul.f32 %v6495_v39, %v5330_v35 }
0x2ed4   : > { %v5345_v0 = vsel %vm5343_vm11, %v5344_v40, %v5342_v15 }
0x2ed5   : > { %v5347_v14 = vadd.f32 1e-06, %v5345_v0  ;;  %v5335_v6 = vsel %vm5334_vm12, %v5330_v35, %v5333_v2 }
0x2ed6   : > { %v5338_v51 = vsel %vm5336_vm13, %v5337_v25, %v5335_v6 }
0x2ed7   : > { %6496 = vrcp.f32 %v5347_v14  ;;  %v5346_v50 = vadd.f32 1e-06, %v5338_v51 }
0x2ed9   : > { %6498 = vrcp.f32 %v5346_v50 }
0x2ee4   : > { %v6497_v9 = vpop.eup %6496 }
0x2ee5   : > { %v5351_v11 = vmul.f32 %v6497_v9, %v5321_v27 }
0x2ee6   : > { %v6499_v12 = vpop.eup %6498 }
0x2ee7   : > { %v5359_v13 = vmul.f32 %v5692_v10, %v5351_v11  ;;  %v5350_v16 = vmul.f32 %v6499_v12, %v5320_v24 }
0x2ee9   : > { %v5367_v17 = vadd.f32 %v5693_v34, %v5359_v13  ;;  %v5358_v18 = vmul.f32 %v5692_v10, %v5350_v16 }
0x2eeb   : > { %5369 = vst.msk [vmem:[%s733_s29 + $0x8] sm:$0xff] %vm749_vm0, %v5367_v17  ;;  %v5366_v61 = vadd.f32 %v5693_v34, %v5358_v18 }
0x2eed   : > { %5368 = vst.msk [vmem:[%s733_s29] sm:$0xff] %vm749_vm0, %v5366_v61 }
0x2eee   : > { %6515 = shalt.err (!%p6512_p10)
}
0x2eef   : > { %s6516_s19 = scalar_lea.hbm %s7902_s27, 256  ;;  %s6520_s23 = scalar_lea.hbm %s7966_s17, 512 }
0x2ef0   : > { %p6517_p11 = scmp.ne.s32.totalorder %s7902_s27, %s6516_s19  ;;  %p6521_p0 = scmp.lt.s32.totalorder %s7902_s27, %s7966_s17 }
0x2ef1   : > { %p6522_p1 = scmp.lt.s32.totalorder %s6520_s23, %s6516_s19 }
0x2ef2   : > { %p6518_p12 = pnand %p6517_p11, %p6712_p6 }
0x2ef3   : > { %p6523_p2 = por %p6522_p1, %p6521_p0 }
0x2ef4   : > { %p6519_p13 = pneg %p6518_p12 }
0x2ef6   : > { %p6524_p3 = pnand %p6523_p2, %p6519_p13 }
0x2ef8   : > { %6527 = shalt.err (!%p6524_p3)
}
0x2ef9   : > { %s6582_s26 = smov 128  }
0x2efa   : > { %6275 = dma.vmem_to_hbm [thread:$0]  (%p6712_p6), %s7904_s20, 256, %s7902_s27, %s5371_s28, %s6582_s26, %s6582_s26, %s8032_s18  }
0x2efb PF: > { %s5399_s30 = sand.u32 1, %s6550_s24   ;;  %p6278_p4 = pnand %p5475_p9, %p6716_p8 }
0x2efc   : > { %s5400_s19 = scalar_lea.sflag [#allocation5], %s5399_s30 }
0x2efd   : > { %p6279_p5 = pneg %p6278_p4 }
0x2eff   : > { %6545 = dma.done.wait (%p6279_p5), %s5400_s19, 256  }
0x2f00   : > { %6547 = vsyncadd (%p6279_p5), %s5400_s19, 4294967040  ;;  %s8036_s27 = sld [smem:[#allocation10_spill]] }
0x2f01   : > { %s8037_s24 = sld [smem:[#allocation7_spill]] }
0x2f02   : > { %s8038_s25 = sld [smem:[#allocation8_spill]] }
0x2f03   : > { %s8039_s26 = sld [smem:[#allocation11_spill]] }
0x2f06   : > { %p27_p7 = scmp.ge.s32.totalorder %s8036_s27, 4  }
0x2f08   :  { %29 = sbr.rel (!%p27_p7) target bundleno = 7 (0x7), region = 199 }
0x2f0d   :  { %5405 = vsyncpa [#allocation5], 1 }
0x2f0e   :  { %5407 = vsyncpa [#allocation5 + $0x1], 1 }

</bundles_post_ra>
